<compile_context>
chip_gen: v7x
topology: tpu7x:2x2x1
jax: 0.10.0
libtpu: 0.0.40
codegen_flags: <defaults>
</compile_context>

<pallas_src>
import math
import functools

import jax
import jax.numpy as jnp
from jax import lax
from jax.experimental import pallas as pl
from jax.experimental.pallas import tpu as pltpu


def _pick_block(dim, target, align):
    """Largest multiple of `align` that is <= target and divides `dim`; else `dim`."""
    if dim <= target:
        return dim
    t = (target // align) * align
    while t >= align:
        if dim % t == 0:
            return t
        t -= align
    return dim


def _flash_attn_kernel(*refs, scale, block_k, num_kv_blocks, has_bias):
    if has_bias:
        (bias_ref, q_ref, k_ref, v_ref,
         o_ref, w_ref, m_ref, l_ref, acc_ref) = refs
    else:
        (q_ref, k_ref, v_ref,
         o_ref, w_ref, m_ref, l_ref, acc_ref) = refs
        bias_ref = None

    ki = pl.program_id(2)

    @pl.when(ki == 0)
    def _init():
        m_ref[...] = jnp.full_like(m_ref, -jnp.inf)
        l_ref[...] = jnp.zeros_like(l_ref)
        acc_ref[...] = jnp.zeros_like(acc_ref)

    # Fold the 1/sqrt(d_k) scale into Q (cheaper than scaling the score tile).
    q = q_ref[...] * scale            # (tq, D)
    k = k_ref[...]                    # (tk, D)
    v = v_ref[...]                    # (tk, D)

    # Q @ K^T without materializing a transpose: contract the last dim of both.
    s = lax.dot_general(
        q, k, dimension_numbers=(((1,), (1,)), ((), ())),
        preferred_element_type=jnp.float32)                 # (tq, tk)

    if has_bias:
        # Additive -1e9 bias; (1, tk) broadcasts over query rows, (tq, tk) is exact.
        s = s + bias_ref[...]

    # Stash the raw (scaled + masked) scores into this q-row's resident (tq, S)
    # weights block; they are normalized in one pass at the finalize step.
    if num_kv_blocks == 1:
        w_ref[...] = s.astype(w_ref.dtype)
    else:
        col = pl.multiple_of(ki * block_k, block_k)          # 128-aligned lane offset
        w_ref[:, pl.ds(col, block_k)] = s.astype(w_ref.dtype)

    # Online softmax update for the attention output.
    m_prev = m_ref[...]                                      # (tq, 1)
    m_new = jnp.maximum(m_prev, jnp.max(s, axis=-1, keepdims=True))
    alpha = jnp.exp(m_prev - m_new)                          # (tq, 1)
    p = jnp.exp(s - m_new)                                   # (tq, tk)
    l_ref[...] = alpha * l_ref[...] + jnp.sum(p, axis=-1, keepdims=True)
    acc_ref[...] = alpha * acc_ref[...] + jnp.dot(
        p.astype(v.dtype), v, preferred_element_type=jnp.float32)
    m_ref[...] = m_new

    @pl.when(ki == pl.num_programs(2) - 1)
    def _finalize():
        inv_l = pl.reciprocal(l_ref[...], approx=False)      # (tq, 1) per-row
        o_ref[...] = (acc_ref[...] * inv_l).astype(o_ref.dtype)
        # Exact softmax weights: exp(s - rowmax) / rowsum, over the full row.
        w_ref[...] = (jnp.exp(w_ref[...] - m_ref[...]) * inv_l).astype(w_ref.dtype)


def scaled_dot_product_attention(query, key, value, mask=None, epsilon=1e-12, *,
                                 block_q=256, block_k=256):
    """Pallas implementation of ScaledDotProductAttention.forward.

    Returns (output [B,H,S,D], attention_weights [B,H,S,S] float32).
    `epsilon` is accepted for interface parity with the PyTorch module (unused there too).
    """
    del epsilon
    B, H, S, D = query.shape
    assert key.shape == (B, H, S, D) and value.shape == (B, H, S, D)
    BH = B * H

    tq = _pick_block(S, block_q, 8)      # sublane-aligned (or full S)
    tk = _pick_block(S, block_k, 128)    # lane-aligned    (or full S)
    nq = S // tq
    nk = S // tk

    q3 = query.reshape(BH, S, D)
    k3 = key.reshape(BH, S, D)
    v3 = value.reshape(BH, S, D)

    scale = 1.0 / math.sqrt(D)

    q_spec = pl.BlockSpec((pl.Squeezed(), tq, D), lambda bh, qi, ki: (bh, qi, 0))
    kv_spec = pl.BlockSpec((pl.Squeezed(), tk, D), lambda bh, qi, ki: (bh, ki, 0))
    o_spec = pl.BlockSpec((pl.Squeezed(), tq, D), lambda bh, qi, ki: (bh, qi, 0))
    # Full (tq, S) weights row stays resident in VMEM across the kv (reduction) axis.
    w_spec = pl.BlockSpec((pl.Squeezed(), tq, S), lambda bh, qi, ki: (bh, qi, 0))

    in_specs = [q_spec, kv_spec, kv_spec]
    args = [q3, k3, v3]
    has_bias = mask is not None
    if has_bias:
        assert mask.ndim == 4 and mask.shape[0] == B and mask.shape[1] == 1 \
            and mask.shape[3] == S and mask.shape[2] in (1, S), \
            "mask must be [B,1,1,S] or [B,1,S,S]"
        Mq = mask.shape[2]
        bias = jnp.where(mask == 0, jnp.float32(-1e9), jnp.float32(0.0))
        bias = bias.reshape(B, Mq, S)
        if Mq == 1:
            bias_spec = pl.BlockSpec((pl.Squeezed(), 1, tk),
                                     lambda bh, qi, ki: (bh // H, 0, ki))
        else:
            bias_spec = pl.BlockSpec((pl.Squeezed(), tq, tk),
                                     lambda bh, qi, ki: (bh // H, qi, ki))
        in_specs = [bias_spec] + in_specs
        args = [bias] + args

    kernel = functools.partial(
        _flash_attn_kernel, scale=scale, block_k=tk,
        num_kv_blocks=nk, has_bias=has_bias)

    out3, w3 = pl.pallas_call(
        kernel,
        out_shape=(jax.ShapeDtypeStruct((BH, S, D), query.dtype),
                   jax.ShapeDtypeStruct((BH, S, S), jnp.float32)),
        grid_spec=pltpu.PrefetchScalarGridSpec(
            num_scalar_prefetch=0,
            grid=(BH, nq, nk),
            in_specs=in_specs,
            out_specs=(o_spec, w_spec),
            scratch_shapes=[pltpu.VMEM((tq, 1), jnp.float32),   # running max m
                            pltpu.VMEM((tq, 1), jnp.float32),   # running sum l
                            pltpu.VMEM((tq, D), jnp.float32)]), # output accumulator
        compiler_params=pltpu.CompilerParams(
            dimension_semantics=("parallel", "parallel", "arbitrary"),
            # Tiled blocks stay small; bump scoped VMEM a bit for large-S / large-tq
            # configs while staying under every generation's physical VMEM.
            vmem_limit_bytes=48 * 1024 * 1024),
    )(*args)

    return out3.reshape(B, H, S, D), w3.reshape(B, H, S, S)


def _reference(query, key, value, mask=None):
    d_k = query.shape[-1]
    scores = jnp.einsum("bhqd,bhkd->bhqk", query, key) / math.sqrt(d_k)
    if mask is not None:
        scores = jnp.where(mask == 0, -1e9, scores)
    weights = jax.nn.softmax(scores, axis=-1)
    out = jnp.einsum("bhqk,bhkd->bhqd", weights, value)
    return out, weights


if __name__ == "__main__":
    B, H, S, D = 2, 4, 512, 64
    rng = jax.random.PRNGKey(0)
    kq, kk, kv, km = jax.random.split(rng, 4)
    q = jax.random.normal(kq, (B, H, S, D), dtype=jnp.float32)
    k = jax.random.normal(kk, (B, H, S, D), dtype=jnp.float32)
    v = jax.random.normal(kv, (B, H, S, D), dtype=jnp.float32)

    # Padding-style mask [B, 1, 1, S] and full [B, 1, S, S] (causal) mask.
    pad_mask = (jax.random.uniform(km, (B, 1, 1, S)) > 0.2).astype(jnp.int32)
    causal_mask = jnp.broadcast_to(
        jnp.tril(jnp.ones((S, S), jnp.int32))[None, None], (B, 1, S, S))

    for name, m in (("none", None), ("padding", pad_mask), ("causal", causal_mask)):
        out, w = scaled_dot_product_attention(q, k, v, mask=m)
        jax.block_until_ready((out, w))
        ref_out, ref_w = _reference(q, k, v, mask=m)
        assert jnp.allclose(out, ref_out, atol=5e-5, rtol=1e-5), f"output mismatch ({name})"
        assert jnp.allclose(w, ref_w, atol=5e-6, rtol=1e-5), f"weights mismatch ({name})"

    print("KERNEL_OK")
</pallas_src>

<mosaic_0001>
module attributes {stable_mosaic.version = 11 : i64} {
  func.func @_flash_attn_kernel(%arg0: i32, %arg1: i32, %arg2: i32, %arg3: memref<1x256x64xf32, #tpu.memory_space<vmem>>, %arg4: memref<1x256x64xf32, #tpu.memory_space<vmem>>, %arg5: memref<1x256x64xf32, #tpu.memory_space<vmem>>, %arg6: memref<1x256x64xf32, #tpu.memory_space<vmem>>, %arg7: memref<1x256x512xf32, #tpu.memory_space<vmem>>, %arg8: memref<256x1xf32, #tpu.memory_space<vmem>>, %arg9: memref<256x1xf32, #tpu.memory_space<vmem>>, %arg10: memref<256x64xf32, #tpu.memory_space<vmem>>) attributes {dimension_semantics = [#tpu.dimension_semantics<parallel>, #tpu.dimension_semantics<parallel>, #tpu.dimension_semantics<arbitrary>], iteration_bounds = array<i64: 8, 2, 2>, scalar_prefetch = 0 : i64, scratch_operands = 3 : i64, tpu.core_type = #tpu.core_type<tc>, window_params = [{transform_indices = @transform_0, window_bounds = array<i64: 1, 256, 64>}, {transform_indices = @transform_1, window_bounds = array<i64: 1, 256, 64>}, {transform_indices = @transform_2, window_bounds = array<i64: 1, 256, 64>}, {transform_indices = @transform_3, window_bounds = array<i64: 1, 256, 64>}, {transform_indices = @transform_4, window_bounds = array<i64: 1, 256, 512>}]} {
    %c0_i32 = arith.constant 0 : i32
    %0 = arith.cmpi eq, %arg2, %c0_i32 : i32
    %1 = arith.extui %0 : i1 to i32
    %c0_i32_0 = arith.constant 0 : i32
    %2 = arith.cmpi ne, %1, %c0_i32_0 : i32
    scf.if %2 {
      %cst_28 = arith.constant 0xFF800000 : f32
      %43 = vector.broadcast %cst_28 : f32 to vector<256x1xf32>
      %c0_29 = arith.constant 0 : index
      %c0_30 = arith.constant 0 : index
      %44 = vector.load %arg8[%c0_29, %c0_30] : memref<256x1xf32, #tpu.memory_space<vmem>>, vector<256x1xf32>
      tpu.vector_store %arg8[%c0_29, %c0_30], %43 {strides = array<i32>} : memref<256x1xf32, #tpu.memory_space<vmem>>, vector<256x1xf32>,
      %cst_31 = arith.constant 0.000000e+00 : f32
      %45 = vector.broadcast %cst_31 : f32 to vector<256x1xf32>
      %c0_32 = arith.constant 0 : index
      %c0_33 = arith.constant 0 : index
      %46 = vector.load %arg9[%c0_32, %c0_33] : memref<256x1xf32, #tpu.memory_space<vmem>>, vector<256x1xf32>
      tpu.vector_store %arg9[%c0_32, %c0_33], %45 {strides = array<i32>} : memref<256x1xf32, #tpu.memory_space<vmem>>, vector<256x1xf32>,
      %cst_34 = arith.constant 0.000000e+00 : f32
      %47 = vector.broadcast %cst_34 : f32 to vector<256x64xf32>
      %c0_35 = arith.constant 0 : index
      %c0_36 = arith.constant 0 : index
      %48 = vector.load %arg10[%c0_35, %c0_36] : memref<256x64xf32, #tpu.memory_space<vmem>>, vector<256x64xf32>
      tpu.vector_store %arg10[%c0_35, %c0_36], %47 {strides = array<i32>} : memref<256x64xf32, #tpu.memory_space<vmem>>, vector<256x64xf32>,
    } else {
    }
    %c0 = arith.constant 0 : index
    %c0_1 = arith.constant 0 : index
    %c0_2 = arith.constant 0 : index
    %3 = vector.load %arg3[%c0, %c0_1, %c0_2] : memref<1x256x64xf32, #tpu.memory_space<vmem>>, vector<1x256x64xf32>
    %4 = vector.shape_cast %3 : vector<1x256x64xf32> to vector<256x64xf32>
    %cst = arith.constant 1.250000e-01 : f32
    %5 = vector.broadcast %cst : f32 to vector<256x64xf32>
    %6 = arith.mulf %4, %5 : vector<256x64xf32>
    %c0_3 = arith.constant 0 : index
    %c0_4 = arith.constant 0 : index
    %c0_5 = arith.constant 0 : index
    %7 = vector.load %arg4[%c0_3, %c0_4, %c0_5] : memref<1x256x64xf32, #tpu.memory_space<vmem>>, vector<1x256x64xf32>
    %8 = vector.shape_cast %7 : vector<1x256x64xf32> to vector<256x64xf32>
    %c0_6 = arith.constant 0 : index
    %c0_7 = arith.constant 0 : index
    %c0_8 = arith.constant 0 : index
    %9 = vector.load %arg5[%c0_6, %c0_7, %c0_8] : memref<1x256x64xf32, #tpu.memory_space<vmem>>, vector<1x256x64xf32>
    %10 = vector.shape_cast %9 : vector<1x256x64xf32> to vector<256x64xf32>
    %cst_9 = arith.constant dense<0.000000e+00> : vector<256x256xf32>
    %11 = tpu.matmul %6, %8, %cst_9 {dimension_numbers = #tpu.dot_dimension_numbers<[1], [1], [0], [0], [0, 0, 1, 0], [], []>} : vector<256x64xf32>, vector<256x64xf32>, vector<256x256xf32> -> vector<256x256xf32>
    %c256_i32 = arith.constant 256 : i32
    %12 = arith.muli %arg2, %c256_i32 : i32
    %13 = tpu.assume_multiple %12, 256 : i32
    %c0_10 = arith.constant 0 : index
    %c0_11 = arith.constant 0 : index
    %14 = arith.index_cast %13 : i32 to index
    %15 = vector.load %arg7[%c0_10, %c0_11, %14] : memref<1x256x512xf32, #tpu.memory_space<vmem>>, vector<1x256x256xf32>
    %16 = vector.shape_cast %15 : vector<1x256x256xf32> to vector<256x256xf32>
    %17 = vector.shape_cast %11 : vector<256x256xf32> to vector<1x256x256xf32>
    tpu.vector_store %arg7[%c0_10, %c0_11, %14], %17 {strides = array<i32>} : memref<1x256x512xf32, #tpu.memory_space<vmem>>, vector<1x256x256xf32>,
    %c0_12 = arith.constant 0 : index
    %c0_13 = arith.constant 0 : index
    %18 = vector.load %arg8[%c0_12, %c0_13] : memref<256x1xf32, #tpu.memory_space<vmem>>, vector<256x1xf32>
    %cst_14 = arith.constant dense<0xFF800000> : vector<256xf32>
    %19 = vector.multi_reduction <maximumf>, %11, %cst_14 [1] : vector<256x256xf32> to vector<256xf32>
    %20 = vector.shape_cast %19 : vector<256xf32> to vector<256x1xf32>
    %21 = arith.maximumf %18, %20 : vector<256x1xf32>
    %22 = arith.subf %18, %21 : vector<256x1xf32>
    %23 = math.exp %22 : vector<256x1xf32>
    %24 = vector.broadcast %21 : vector<256x1xf32> to vector<256x256xf32>
    %25 = arith.subf %11, %24 : vector<256x256xf32>
    %26 = math.exp %25 : vector<256x256xf32>
    %c0_15 = arith.constant 0 : index
    %c0_16 = arith.constant 0 : index
    %27 = vector.load %arg9[%c0_15, %c0_16] : memref<256x1xf32, #tpu.memory_space<vmem>>, vector<256x1xf32>
    %28 = arith.mulf %23, %27 : vector<256x1xf32>
    %cst_17 = arith.constant dense<0.000000e+00> : vector<256xf32>
    %29 = vector.multi_reduction <add>, %26, %cst_17 [1] : vector<256x256xf32> to vector<256xf32>
    %30 = vector.shape_cast %29 : vector<256xf32> to vector<256x1xf32>
    %31 = arith.addf %28, %30 : vector<256x1xf32>
    %c0_18 = arith.constant 0 : index
    %c0_19 = arith.constant 0 : index
    %32 = vector.load %arg9[%c0_18, %c0_19] : memref<256x1xf32, #tpu.memory_space<vmem>>, vector<256x1xf32>
    tpu.vector_store %arg9[%c0_18, %c0_19], %31 {strides = array<i32>} : memref<256x1xf32, #tpu.memory_space<vmem>>, vector<256x1xf32>,
    %c0_20 = arith.constant 0 : index
    %c0_21 = arith.constant 0 : index
    %33 = vector.load %arg10[%c0_20, %c0_21] : memref<256x64xf32, #tpu.memory_space<vmem>>, vector<256x64xf32>
    %34 = vector.broadcast %23 : vector<256x1xf32> to vector<256x64xf32>
    %35 = arith.mulf %34, %33 : vector<256x64xf32>
    %cst_22 = arith.constant dense<0.000000e+00> : vector<256x64xf32>
    %36 = tpu.matmul %26, %10, %cst_22 {dimension_numbers = #tpu.dot_dimension_numbers<[1], [0], [0], [1], [0, 0, 1, 1], [], []>} : vector<256x256xf32>, vector<256x64xf32>, vector<256x64xf32> -> vector<256x64xf32>
    %37 = arith.addf %35, %36 : vector<256x64xf32>
    %c0_23 = arith.constant 0 : index
    %c0_24 = arith.constant 0 : index
    %38 = vector.load %arg10[%c0_23, %c0_24] : memref<256x64xf32, #tpu.memory_space<vmem>>, vector<256x64xf32>
    tpu.vector_store %arg10[%c0_23, %c0_24], %37 {strides = array<i32>} : memref<256x64xf32, #tpu.memory_space<vmem>>, vector<256x64xf32>,
    %c0_25 = arith.constant 0 : index
    %c0_26 = arith.constant 0 : index
    %39 = vector.load %arg8[%c0_25, %c0_26] : memref<256x1xf32, #tpu.memory_space<vmem>>, vector<256x1xf32>
    tpu.vector_store %arg8[%c0_25, %c0_26], %21 {strides = array<i32>} : memref<256x1xf32, #tpu.memory_space<vmem>>, vector<256x1xf32>,
    %c1_i32 = arith.constant 1 : i32
    %40 = arith.cmpi eq, %arg2, %c1_i32 : i32
    %41 = arith.extui %40 : i1 to i32
    %c0_i32_27 = arith.constant 0 : i32
    %42 = arith.cmpi ne, %41, %c0_i32_27 : i32
    scf.if %42 {
      %c0_28 = arith.constant 0 : index
      %c0_29 = arith.constant 0 : index
      %43 = vector.load %arg9[%c0_28, %c0_29] : memref<256x1xf32, #tpu.memory_space<vmem>>, vector<256x1xf32>
      %44 = tpu.reciprocal %43 : vector<256x1xf32> -> vector<256x1xf32>
      %c0_30 = arith.constant 0 : index
      %c0_31 = arith.constant 0 : index
      %45 = vector.load %arg10[%c0_30, %c0_31] : memref<256x64xf32, #tpu.memory_space<vmem>>, vector<256x64xf32>
      %46 = vector.broadcast %44 : vector<256x1xf32> to vector<256x64xf32>
      %47 = arith.mulf %45, %46 : vector<256x64xf32>
      %c0_32 = arith.constant 0 : index
      %c0_33 = arith.constant 0 : index
      %c0_34 = arith.constant 0 : index
      %48 = vector.load %arg6[%c0_32, %c0_33, %c0_34] : memref<1x256x64xf32, #tpu.memory_space<vmem>>, vector<1x256x64xf32>
      %49 = vector.shape_cast %48 : vector<1x256x64xf32> to vector<256x64xf32>
      %50 = vector.shape_cast %47 : vector<256x64xf32> to vector<1x256x64xf32>
      tpu.vector_store %arg6[%c0_32, %c0_33, %c0_34], %50 {strides = array<i32>} : memref<1x256x64xf32, #tpu.memory_space<vmem>>, vector<1x256x64xf32>,
      %c0_35 = arith.constant 0 : index
      %c0_36 = arith.constant 0 : index
      %c0_37 = arith.constant 0 : index
      %51 = vector.load %arg7[%c0_35, %c0_36, %c0_37] : memref<1x256x512xf32, #tpu.memory_space<vmem>>, vector<1x256x512xf32>
      %52 = vector.shape_cast %51 : vector<1x256x512xf32> to vector<256x512xf32>
      %c0_38 = arith.constant 0 : index
      %c0_39 = arith.constant 0 : index
      %53 = vector.load %arg8[%c0_38, %c0_39] : memref<256x1xf32, #tpu.memory_space<vmem>>, vector<256x1xf32>
      %54 = vector.broadcast %53 : vector<256x1xf32> to vector<256x512xf32>
      %55 = arith.subf %52, %54 : vector<256x512xf32>
      %56 = math.exp %55 : vector<256x512xf32>
      %57 = vector.broadcast %44 : vector<256x1xf32> to vector<256x512xf32>
      %58 = arith.mulf %56, %57 : vector<256x512xf32>
      %c0_40 = arith.constant 0 : index
      %c0_41 = arith.constant 0 : index
      %c0_42 = arith.constant 0 : index
      %59 = vector.load %arg7[%c0_40, %c0_41, %c0_42] : memref<1x256x512xf32, #tpu.memory_space<vmem>>, vector<1x256x512xf32>
      %60 = vector.shape_cast %59 : vector<1x256x512xf32> to vector<256x512xf32>
      %61 = vector.shape_cast %58 : vector<256x512xf32> to vector<1x256x512xf32>
      tpu.vector_store %arg7[%c0_40, %c0_41, %c0_42], %61 {strides = array<i32>} : memref<1x256x512xf32, #tpu.memory_space<vmem>>, vector<1x256x512xf32>,
    } else {
    }
    return
  }
  func.func @transform_0(%arg0: i32, %arg1: i32, %arg2: i32) -> (i32, i32, i32) {
    %c0_i32 = arith.constant 0 : i32
    %c0_i32_0 = arith.constant 0 : i32
    return %arg0, %arg1, %c0_i32 : i32, i32, i32
  }
  func.func @transform_1(%arg0: i32, %arg1: i32, %arg2: i32) -> (i32, i32, i32) {
    %c0_i32 = arith.constant 0 : i32
    %c0_i32_0 = arith.constant 0 : i32
    return %arg0, %arg2, %c0_i32 : i32, i32, i32
  }
  func.func @transform_2(%arg0: i32, %arg1: i32, %arg2: i32) -> (i32, i32, i32) {
    %c0_i32 = arith.constant 0 : i32
    %c0_i32_0 = arith.constant 0 : i32
    return %arg0, %arg2, %c0_i32 : i32, i32, i32
  }
  func.func @transform_3(%arg0: i32, %arg1: i32, %arg2: i32) -> (i32, i32, i32) {
    %c0_i32 = arith.constant 0 : i32
    %c0_i32_0 = arith.constant 0 : i32
    return %arg0, %arg1, %c0_i32 : i32, i32, i32
  }
  func.func @transform_4(%arg0: i32, %arg1: i32, %arg2: i32) -> (i32, i32, i32) {
    %c0_i32 = arith.constant 0 : i32
    %c0_i32_0 = arith.constant 0 : i32
    return %arg0, %arg1, %c0_i32 : i32, i32, i32
  }
}

</mosaic_0001>

<bundles_post_ra>
// kernel: tpu_custom_call.1
= control target key start
LH: loop header
LB: loop body
LE: loop exit
PB: predicated region body
PF: predicated region fallthrough
CT: control target
= control target key end

     0   :  { %10 = vsyncpa [#allocation6], 0  ;;  %s7274_s0 = inlined_call_operand.vmem [shape: f32[8,512,64], index: 0, kind: input, shape index: {}]   ;;  %s7275_s1 = inlined_call_operand.vmem [shape: f32[8,512,64], index: 1, kind: input, shape index: {}]   ;;  %s7276_s2 = inlined_call_operand.vmem [shape: f32[8,512,64], index: 2, kind: input, shape index: {}]   ;;  %s7277_s3 = inlined_call_operand.vmem [shape: f32[8,512,64], index: 3, kind: output, shape index: {0}]   ;;  %s7278_s4 = inlined_call_operand.hbm [shape: f32[8,512,512], index: 4, kind: output, shape index: {1}]  }
   0x1   :  { %12 = vsyncpa [#allocation6 + $0x1], 0  ;;  %s5015_s15 = smov 0   ;;  %s5017_s16 = smov 0  }
   0x2   :  { %s5019_s17 = smov 0   ;;  %s5021_s18 = smov 0  }
   0x3   :  { %s5023_s19 = smov 0   ;;  %s5025_s20 = smov 0  }
   0x4   :  { %s5027_s21 = smov 0   ;;  %s5029_s22 = smov 0  }
   0x5   :  { %s5031_s23 = smov 0   ;;  %s5033_s24 = smov 0  }
   0x6 LB: > { %7328 = sst [smem:[#allocation8_spill]] %s4952_s17  ;;  %s3934_s25 = sadd.s32 4294967295, %s4980_s24   ;;  %s4980_s24 = sphi %s5033_s24, %s18_s24   ;;  %s4976_s23 = sphi %s5031_s23, %s7464_s23   ;;  %s4972_s22 = sphi %s5029_s22, %s7463_s22   ;;  %s4968_s21 = sphi %s5027_s21, %s7462_s21   ;;  %s4964_s20 = sphi %s5025_s20, %s7461_s20   ;;  %s4960_s19 = sphi %s5023_s19, %s7460_s19   ;;  %s4956_s18 = sphi %s5021_s18, %s7459_s18   ;;  %s4952_s17 = sphi %s5019_s17, %s7458_s17   ;;  %s4948_s16 = sphi %s5017_s16, %s7466_s16   ;;  %s4944_s15 = sphi %s5015_s15, %s7465_s15  }
   0x7   : > { %7329 = sst [smem:[#allocation9_spill]] %s4968_s21  ;;  %s3935_s26 = sadd.s32 4294967294, %s4980_s24  }
   0x8   : > { %7330 = sst [smem:[#allocation10_spill]] %s4972_s22  ;;  %s30_s27 = sadd.s32 1, %s4968_s21 }
   0x9   : > { %7331 = sst [smem:[#allocation11_spill]] %s4976_s23  ;;  %p31_p0 = scmp.ge.s32.totalorder %s30_s27, 2 }
   0xa   : > { %s33_s28 = sadd.s32 1, %s4972_s22  ;;  %s37_s29 = sadd.s32 1, %s4976_s23 }
   0xb   : > { %p168_p1 = scmp.ne.s32.totalorder %s4952_s17, %s4948_s16  ;;  %s7468_s27 = smov (%p31_p0, %s30_s27), 0 }
   0xc   : > { %7332 = sst [smem:[#allocation12_spill]] %s7468_s27  ;;  %s7470_s28 = smov (!%p31_p0, %s33_s28), %s4972_s22 }
   0xd   : > { %p169_p2 = scmp.eq.s32.totalorder %s3934_s25, 31  ;;  %p174_p3 = scmp.ne.s32.totalorder %s4948_s16, %s4944_s15 }
   0xe   : > { %p35_p4 = scmp.ge.s32.totalorder %s7470_s28, 2  ;;  %p175_p5 = scmp.eq.s32.totalorder %s3935_s26, 31 }
   0xf   : > { %p5077_p6 = por %p169_p2, %p168_p1  ;;  %p3938_p8 = scmp.ge.s32.totalorder %s4980_s24, 1 }
  0x10   : > { %s7472_s28 = smov (%p35_p4, %s7470_s28), 0  ;;  %s7474_s29 = smov (!%p35_p4, %s37_s29), %s4976_s23 }
  0x11   : > { %7334 = sst [smem:[#allocation13_spill]] %s7472_s28  ;;  %p5084_p7 = por %p175_p5, %p174_p3 }
  0x12   : > { %p39_p9 = scmp.ge.s32.totalorder %s7474_s29, 8  ;;  %p232_p10 = scmp.lt.s32.totalorder %s4980_s24, 33 }
  0x13   : > { %s154_s6 = ssub.s32 %s4972_s22, %s7472_s28  ;;  %s158_s9 = sadd.s32 1, %s4952_s17 }
  0x14   : > { %s7476_s29 = smov (%p39_p9, %s7474_s29), 0  ;;  %p233_p11 = pnand %p3938_p8, %p232_p10 }
  0x15   : > { %7336 = sst [smem:[#allocation14_spill]] %s7476_s29  ;;  %s153_s7 = ssub.s32 %s4976_s23, %s7476_s29 }
  0x16   : > { %s155_s8 = sor.u32 %s154_s6, %s153_s7  ;;  %236 = sbr.rel (%p233_p11) target bundleno = 1369 (0x559), region = 32 }
  0x17   : > { %p156_p12 = scmp.eq.s32.totalorder %s155_s8, 0 }
  0x19   : > { %s5098_s10 = scalar_select %p156_p12, %s4952_s17, %s158_s9  }
  0x1b   : > { %7337 = sst [smem:[#allocation15_spill]] %s5098_s10 }
  0x1d   : > { %s7282_s11 = sand.u32 1, %s4948_s16   ;;  %s3940_s12 = sshll.u32 %s4960_s19, 5 }
  0x1e   : > { %s3939_s13 = sshll.u32 %s7282_s11, 10  ;;  %p290_p13 = scmp.lt.s32.totalorder %s4964_s20, 7 }
  0x1f   : > { %p292_p0 = scmp.lt.s32.totalorder %s3940_s12, 63  ;;  %s3943_s26 = sshll.u32 %s4956_s18, 5 }
  0x20   : > { %s291_s14 = scalar_select %p290_p13, %s4964_s20, 7 }
  0x21   : > { %s7478_s12 = smov (!%p292_p0, %s3940_s12), 63  ;;  %p302_p1 = scmp.lt.s32.totalorder %s3943_s26, 63 }
  0x22   : > { %s3941_s25 = sshll.u32 %s291_s14, 6  ;;  %s5127_s8 = scalar_lea.vmem [#allocation5], %s3939_s13 }
  0x23   : > { %s295_s6 = sadd.s32 %s3941_s25, %s7478_s12  ;;  %s7480_s26 = smov (!%p302_p1, %s3943_s26), 63 }
  0x24   : > { %s3942_s7 = sshll.u32 %s295_s6, 3  ;;  %s305_s11 = sadd.s32 %s3941_s25, %s7480_s26 }
  0x25   : > { %s5110_s29 = scalar_lea.vmem %s7274_s0, %s3942_s7  ;;  %s5115_s23 = scalar_lea.vmem %s7277_s3, %s3942_s7 }
  0x26   : > { %s3945_s22 = sshll.u32 %s305_s11, 3  ;;  %p3952_p2 = scmp.ne.s32.totalorder %s4956_s18, 0 }
  0x27   : > { %s5120_s14 = scalar_lea.vmem %s7275_s1, %s3945_s22  ;;  %s5125_s17 = scalar_lea.vmem %s7276_s2, %s3945_s22  ;;  %vm334_vm0 = vcmask (!%p3952_p2), 7168   ;;  %vm399_vm1 = vcmask (!%p3952_p2), 523264   ;;  %v4982_v0 = vmov (!%p3952_p2), -inf   ;;  %v4983_v1 = vmov (!%p3952_p2), 0.0  }
  0x28   : > { %333 = sbr.rel (%p3952_p2) target bundleno = 88 (0x58), region = 36  ;;  %335 = vst.msk [vmem:[#allocation2] sm:$0xff] (!%p3952_p2), %vm334_vm0, %v4982_v0  ;;  %336 = vst.msk [vmem:[#allocation2 + $0x8] sm:$0xff] (!%p3952_p2), %vm334_vm0, %v4982_v0 }
  0x29   : > { %337 = vst.msk [vmem:[#allocation2 + $0x10] sm:$0xff] (!%p3952_p2), %vm334_vm0, %v4982_v0  ;;  %338 = vst.msk [vmem:[#allocation2 + $0x18] sm:$0xff] (!%p3952_p2), %vm334_vm0, %v4982_v0 }
  0x2a   : > { %339 = vst.msk [vmem:[#allocation2 + $0x20] sm:$0xff] (!%p3952_p2), %vm334_vm0, %v4982_v0  ;;  %340 = vst.msk [vmem:[#allocation2 + $0x28] sm:$0xff] (!%p3952_p2), %vm334_vm0, %v4982_v0 }
  0x2b   : > { %341 = vst.msk [vmem:[#allocation2 + $0x30] sm:$0xff] (!%p3952_p2), %vm334_vm0, %v4982_v0  ;;  %342 = vst.msk [vmem:[#allocation2 + $0x38] sm:$0xff] (!%p3952_p2), %vm334_vm0, %v4982_v0 }
  0x2c   : > { %343 = vst.msk [vmem:[#allocation2 + $0x40] sm:$0xff] (!%p3952_p2), %vm334_vm0, %v4982_v0  ;;  %344 = vst.msk [vmem:[#allocation2 + $0x48] sm:$0xff] (!%p3952_p2), %vm334_vm0, %v4982_v0 }
  0x2d   : > { %345 = vst.msk [vmem:[#allocation2 + $0x50] sm:$0xff] (!%p3952_p2), %vm334_vm0, %v4982_v0  ;;  %346 = vst.msk [vmem:[#allocation2 + $0x58] sm:$0xff] (!%p3952_p2), %vm334_vm0, %v4982_v0 }
  0x2e   : > { %347 = vst.msk [vmem:[#allocation2 + $0x60] sm:$0xff] (!%p3952_p2), %vm334_vm0, %v4982_v0  ;;  %348 = vst.msk [vmem:[#allocation2 + $0x68] sm:$0xff] (!%p3952_p2), %vm334_vm0, %v4982_v0 }
  0x2f   : > { %349 = vst.msk [vmem:[#allocation2 + $0x70] sm:$0xff] %vm334_vm0, %v4982_v0  ;;  %350 = vst.msk [vmem:[#allocation2 + $0x78] sm:$0xff] %vm334_vm0, %v4982_v0 }
  0x30   : > { %351 = vst.msk [vmem:[#allocation2 + $0x80] sm:$0xff] %vm334_vm0, %v4982_v0  ;;  %352 = vst.msk [vmem:[#allocation2 + $0x88] sm:$0xff] %vm334_vm0, %v4982_v0 }
  0x31   : > { %353 = vst.msk [vmem:[#allocation2 + $0x90] sm:$0xff] %vm334_vm0, %v4982_v0  ;;  %354 = vst.msk [vmem:[#allocation2 + $0x98] sm:$0xff] %vm334_vm0, %v4982_v0 }
  0x32   : > { %355 = vst.msk [vmem:[#allocation2 + $0xa0] sm:$0xff] %vm334_vm0, %v4982_v0  ;;  %356 = vst.msk [vmem:[#allocation2 + $0xa8] sm:$0xff] %vm334_vm0, %v4982_v0 }
  0x33   : > { %357 = vst.msk [vmem:[#allocation2 + $0xb0] sm:$0xff] %vm334_vm0, %v4982_v0  ;;  %358 = vst.msk [vmem:[#allocation2 + $0xb8] sm:$0xff] %vm334_vm0, %v4982_v0 }
  0x34   : > { %359 = vst.msk [vmem:[#allocation2 + $0xc0] sm:$0xff] %vm334_vm0, %v4982_v0  ;;  %360 = vst.msk [vmem:[#allocation2 + $0xc8] sm:$0xff] %vm334_vm0, %v4982_v0 }
  0x35   : > { %361 = vst.msk [vmem:[#allocation2 + $0xd0] sm:$0xff] %vm334_vm0, %v4982_v0  ;;  %362 = vst.msk [vmem:[#allocation2 + $0xd8] sm:$0xff] %vm334_vm0, %v4982_v0 }
  0x36   : > { %363 = vst.msk [vmem:[#allocation2 + $0xe0] sm:$0xff] %vm334_vm0, %v4982_v0  ;;  %364 = vst.msk [vmem:[#allocation2 + $0xe8] sm:$0xff] %vm334_vm0, %v4982_v0 }
  0x37   : > { %365 = vst.msk [vmem:[#allocation2 + $0xf0] sm:$0xff] %vm334_vm0, %v4982_v0  ;;  %366 = vst.msk [vmem:[#allocation2 + $0xf8] sm:$0xff] %vm334_vm0, %v4982_v0 }
  0x38   : > { %367 = vst.msk [vmem:[#allocation3] sm:$0xff] %vm334_vm0, %v4983_v1  ;;  %368 = vst.msk [vmem:[#allocation3 + $0x8] sm:$0xff] %vm334_vm0, %v4983_v1 }
  0x39   : > { %369 = vst.msk [vmem:[#allocation3 + $0x10] sm:$0xff] %vm334_vm0, %v4983_v1  ;;  %370 = vst.msk [vmem:[#allocation3 + $0x18] sm:$0xff] %vm334_vm0, %v4983_v1 }
  0x3a   : > { %371 = vst.msk [vmem:[#allocation3 + $0x20] sm:$0xff] %vm334_vm0, %v4983_v1  ;;  %372 = vst.msk [vmem:[#allocation3 + $0x28] sm:$0xff] %vm334_vm0, %v4983_v1 }
  0x3b   : > { %373 = vst.msk [vmem:[#allocation3 + $0x30] sm:$0xff] %vm334_vm0, %v4983_v1  ;;  %374 = vst.msk [vmem:[#allocation3 + $0x38] sm:$0xff] %vm334_vm0, %v4983_v1 }
  0x3c   : > { %375 = vst.msk [vmem:[#allocation3 + $0x40] sm:$0xff] %vm334_vm0, %v4983_v1  ;;  %376 = vst.msk [vmem:[#allocation3 + $0x48] sm:$0xff] %vm334_vm0, %v4983_v1 }
  0x3d   : > { %377 = vst.msk [vmem:[#allocation3 + $0x50] sm:$0xff] %vm334_vm0, %v4983_v1  ;;  %378 = vst.msk [vmem:[#allocation3 + $0x58] sm:$0xff] %vm334_vm0, %v4983_v1 }
  0x3e   : > { %379 = vst.msk [vmem:[#allocation3 + $0x60] sm:$0xff] %vm334_vm0, %v4983_v1  ;;  %380 = vst.msk [vmem:[#allocation3 + $0x68] sm:$0xff] %vm334_vm0, %v4983_v1 }
  0x3f   : > { %381 = vst.msk [vmem:[#allocation3 + $0x70] sm:$0xff] %vm334_vm0, %v4983_v1  ;;  %382 = vst.msk [vmem:[#allocation3 + $0x78] sm:$0xff] %vm334_vm0, %v4983_v1 }
  0x40   : > { %383 = vst.msk [vmem:[#allocation3 + $0x80] sm:$0xff] %vm334_vm0, %v4983_v1  ;;  %384 = vst.msk [vmem:[#allocation3 + $0x88] sm:$0xff] %vm334_vm0, %v4983_v1 }
  0x41   : > { %385 = vst.msk [vmem:[#allocation3 + $0x90] sm:$0xff] %vm334_vm0, %v4983_v1  ;;  %386 = vst.msk [vmem:[#allocation3 + $0x98] sm:$0xff] %vm334_vm0, %v4983_v1 }
  0x42   : > { %387 = vst.msk [vmem:[#allocation3 + $0xa0] sm:$0xff] %vm334_vm0, %v4983_v1  ;;  %388 = vst.msk [vmem:[#allocation3 + $0xa8] sm:$0xff] %vm334_vm0, %v4983_v1 }
  0x43   : > { %389 = vst.msk [vmem:[#allocation3 + $0xb0] sm:$0xff] %vm334_vm0, %v4983_v1  ;;  %390 = vst.msk [vmem:[#allocation3 + $0xb8] sm:$0xff] %vm334_vm0, %v4983_v1 }
  0x44   : > { %391 = vst.msk [vmem:[#allocation3 + $0xc0] sm:$0xff] %vm334_vm0, %v4983_v1  ;;  %392 = vst.msk [vmem:[#allocation3 + $0xc8] sm:$0xff] %vm334_vm0, %v4983_v1 }
  0x45   : > { %393 = vst.msk [vmem:[#allocation3 + $0xd0] sm:$0xff] %vm334_vm0, %v4983_v1  ;;  %394 = vst.msk [vmem:[#allocation3 + $0xd8] sm:$0xff] %vm334_vm0, %v4983_v1 }
  0x46   : > { %395 = vst.msk [vmem:[#allocation3 + $0xe0] sm:$0xff] %vm334_vm0, %v4983_v1  ;;  %396 = vst.msk [vmem:[#allocation3 + $0xe8] sm:$0xff] %vm334_vm0, %v4983_v1 }
  0x47   : > { %397 = vst.msk [vmem:[#allocation3 + $0xf0] sm:$0xff] %vm334_vm0, %v4983_v1  ;;  %398 = vst.msk [vmem:[#allocation3 + $0xf8] sm:$0xff] %vm334_vm0, %v4983_v1 }
  0x48   : > { %400 = vst.msk [vmem:[#allocation4] sm:$0xff] %vm399_vm1, %v4983_v1  ;;  %401 = vst.msk [vmem:[#allocation4 + $0x8] sm:$0xff] %vm399_vm1, %v4983_v1 }
  0x49   : > { %402 = vst.msk [vmem:[#allocation4 + $0x10] sm:$0xff] %vm399_vm1, %v4983_v1  ;;  %403 = vst.msk [vmem:[#allocation4 + $0x18] sm:$0xff] %vm399_vm1, %v4983_v1 }
  0x4a   : > { %404 = vst.msk [vmem:[#allocation4 + $0x20] sm:$0xff] %vm399_vm1, %v4983_v1  ;;  %405 = vst.msk [vmem:[#allocation4 + $0x28] sm:$0xff] %vm399_vm1, %v4983_v1 }
  0x4b   : > { %406 = vst.msk [vmem:[#allocation4 + $0x30] sm:$0xff] %vm399_vm1, %v4983_v1  ;;  %407 = vst.msk [vmem:[#allocation4 + $0x38] sm:$0xff] %vm399_vm1, %v4983_v1 }
  0x4c   : > { %408 = vst.msk [vmem:[#allocation4 + $0x40] sm:$0xff] %vm399_vm1, %v4983_v1  ;;  %409 = vst.msk [vmem:[#allocation4 + $0x48] sm:$0xff] %vm399_vm1, %v4983_v1 }
  0x4d   : > { %410 = vst.msk [vmem:[#allocation4 + $0x50] sm:$0xff] %vm399_vm1, %v4983_v1  ;;  %411 = vst.msk [vmem:[#allocation4 + $0x58] sm:$0xff] %vm399_vm1, %v4983_v1 }
  0x4e   : > { %412 = vst.msk [vmem:[#allocation4 + $0x60] sm:$0xff] %vm399_vm1, %v4983_v1  ;;  %413 = vst.msk [vmem:[#allocation4 + $0x68] sm:$0xff] %vm399_vm1, %v4983_v1 }
  0x4f   : > { %414 = vst.msk [vmem:[#allocation4 + $0x70] sm:$0xff] %vm399_vm1, %v4983_v1  ;;  %415 = vst.msk [vmem:[#allocation4 + $0x78] sm:$0xff] %vm399_vm1, %v4983_v1 }
  0x50   : > { %416 = vst.msk [vmem:[#allocation4 + $0x80] sm:$0xff] %vm399_vm1, %v4983_v1  ;;  %417 = vst.msk [vmem:[#allocation4 + $0x88] sm:$0xff] %vm399_vm1, %v4983_v1 }
  0x51   : > { %418 = vst.msk [vmem:[#allocation4 + $0x90] sm:$0xff] %vm399_vm1, %v4983_v1  ;;  %419 = vst.msk [vmem:[#allocation4 + $0x98] sm:$0xff] %vm399_vm1, %v4983_v1 }
  0x52   : > { %420 = vst.msk [vmem:[#allocation4 + $0xa0] sm:$0xff] %vm399_vm1, %v4983_v1  ;;  %421 = vst.msk [vmem:[#allocation4 + $0xa8] sm:$0xff] %vm399_vm1, %v4983_v1 }
  0x53   : > { %422 = vst.msk [vmem:[#allocation4 + $0xb0] sm:$0xff] %vm399_vm1, %v4983_v1  ;;  %423 = vst.msk [vmem:[#allocation4 + $0xb8] sm:$0xff] %vm399_vm1, %v4983_v1 }
  0x54   : > { %424 = vst.msk [vmem:[#allocation4 + $0xc0] sm:$0xff] %vm399_vm1, %v4983_v1  ;;  %425 = vst.msk [vmem:[#allocation4 + $0xc8] sm:$0xff] %vm399_vm1, %v4983_v1 }
  0x55   : > { %426 = vst.msk [vmem:[#allocation4 + $0xd0] sm:$0xff] %vm399_vm1, %v4983_v1  ;;  %427 = vst.msk [vmem:[#allocation4 + $0xd8] sm:$0xff] %vm399_vm1, %v4983_v1 }
  0x56   : > { %428 = vst.msk [vmem:[#allocation4 + $0xe0] sm:$0xff] %vm399_vm1, %v4983_v1  ;;  %429 = vst.msk [vmem:[#allocation4 + $0xe8] sm:$0xff] %vm399_vm1, %v4983_v1 }
  0x57   : > { %430 = vst.msk [vmem:[#allocation4 + $0xf0] sm:$0xff] %vm399_vm1, %v4983_v1  ;;  %431 = vst.msk [vmem:[#allocation4 + $0xf8] sm:$0xff] %vm399_vm1, %v4983_v1 }
  0x58 PF: > { %v512_v2 = vld [vmem:[%s5120_s14 + $0x80] sm:$0xff]  ;;  %v513_v3 = vld [vmem:[%s5120_s14 + $0x88] sm:$0xff]  ;;  %vm560_vm2 = vcmask 523264   ;;  %v514_v8 = vld [vmem:[%s5120_s14 + $0x90] sm:$0xff]  ;;  %s4017_s21 = sshll.u32 %s4956_s18, 8  ;;  %vm1879_vm4 = vcmask 7168  }
  0x59   : > { %v496_v4 = vld [vmem:[%s5120_s14] sm:$0xff]  ;;  %v4124_v5 = vpack.c.bf16 %v513_v3, %v512_v2  ;;  %vm5295_vm3 = vmpackc.low %vm560_vm2, %vm560_vm2  ;;  %v497_v7 = vld [vmem:[%s5120_s14 + $0x8] sm:$0xff]  ;;  %s1011_s22 = sshra.s32 %s4017_s21, 7  ;;  %p4019_p3 = scmp.ne.s32.totalorder %s4956_s18, 1 }
  0x5a   : > { %v4127_v9 = vpack.c.bf16 %v497_v7, %v496_v4  ;;  %v515_v10 = vld [vmem:[%s5120_s14 + $0x98] sm:$0xff]  ;;  %v498_v12 = vld [vmem:[%s5120_s14 + $0x10] sm:$0xff]  ;;  %v516_v14 = vld [vmem:[%s5120_s14 + $0xa0] sm:$0xff]  ;;  %s4018_s27 = sshll.u32 %s1011_s22, 3 }
  0x5b   : > { %4126 = vmatprep.subr.msk.bf16.mxu0 %vm5295_vm3, %v4124_v5  ;;  %v4130_v11 = vpack.c.bf16 %v515_v10, %v514_v8  ;;  %v499_v13 = vld [vmem:[%s5120_s14 + $0x18] sm:$0xff]  ;;  %v517_v15 = vld [vmem:[%s5120_s14 + $0xa8] sm:$0xff]  ;;  %v432_v18 = vld [vmem:[%s5110_s29] sm:$0xff]  ;;  %s5458_s28 = scalar_lea.vmem %s5127_s8, %s4018_s27 [#allocation5] }
  0x5c   : > { %4129 = vmatpush3.bf16.xpose.msk.msra.mxu0 %vm5295_vm3, %v4127_v9  ;;  %v4133_v16 = vpack.c.bf16 %v499_v13, %v498_v12  ;;  %v4136_v17 = vpack.c.bf16 %v517_v15, %v516_v14  ;;  %v464_v19 = vmul.f32 0.125, %v432_v18  ;;  %v500_v20 = vld [vmem:[%s5120_s14 + $0x20] sm:$0xff]  ;;  %v501_v21 = vld [vmem:[%s5120_s14 + $0x28] sm:$0xff]  ;;  %v518_v22 = vld [vmem:[%s5120_s14 + $0xb0] sm:$0xff] }
  0x5d   : > { %4132 = vmatprep.subr.msk.bf16.mxu0 %vm5295_vm3, %v4130_v11  ;;  %v519_v23 = vld [vmem:[%s5120_s14 + $0xb8] sm:$0xff]  ;;  %v4139_v24 = vpack.c.bf16 %v501_v21, %v500_v20  ;;  %v502_v26 = vld [vmem:[%s5120_s14 + $0x30] sm:$0xff]  ;;  %v520_v28 = vld [vmem:[%s5120_s14 + $0xc0] sm:$0xff] }
  0x5e   : > { %4060 = vmatprep.mubr.msk.f32.mxu0 %vm560_vm2, %v464_v19  ;;  %v4142_v25 = vpack.c.bf16 %v519_v23, %v518_v22  ;;  %v503_v27 = vld [vmem:[%s5120_s14 + $0x38] sm:$0xff]  ;;  %v521_v29 = vld [vmem:[%s5120_s14 + $0xc8] sm:$0xff]  ;;  %v504_v32 = vld [vmem:[%s5120_s14 + $0x40] sm:$0xff] }
  0x5f   : > { %v4145_v30 = vpack.c.bf16 %v503_v27, %v502_v26  ;;  %v4148_v31 = vpack.c.bf16 %v521_v29, %v520_v28  ;;  %v505_v33 = vld [vmem:[%s5120_s14 + $0x48] sm:$0xff]  ;;  %v522_v34 = vld [vmem:[%s5120_s14 + $0xd0] sm:$0xff]  ;;  %v523_v35 = vld [vmem:[%s5120_s14 + $0xd8] sm:$0xff] }
  0x60   : > { %v4151_v36 = vpack.c.bf16 %v505_v33, %v504_v32  ;;  %v4154_v37 = vpack.c.bf16 %v523_v35, %v522_v34  ;;  %v506_v38 = vld [vmem:[%s5120_s14 + $0x50] sm:$0xff]  ;;  %v507_v39 = vld [vmem:[%s5120_s14 + $0x58] sm:$0xff]  ;;  %v524_v40 = vld [vmem:[%s5120_s14 + $0xe0] sm:$0xff] }
  0x61   : > { %v525_v41 = vld [vmem:[%s5120_s14 + $0xe8] sm:$0xff]  ;;  %v4157_v42 = vpack.c.bf16 %v507_v39, %v506_v38  ;;  %v508_v44 = vld [vmem:[%s5120_s14 + $0x60] sm:$0xff]  ;;  %v526_v46 = vld [vmem:[%s5120_s14 + $0xf0] sm:$0xff] }
  0x62   : > { %v4160_v43 = vpack.c.bf16 %v525_v41, %v524_v40  ;;  %v509_v45 = vld [vmem:[%s5120_s14 + $0x68] sm:$0xff]  ;;  %v527_v47 = vld [vmem:[%s5120_s14 + $0xf8] sm:$0xff]  ;;  %v510_v50 = vld [vmem:[%s5120_s14 + $0x70] sm:$0xff] }
  0x63   : > { %v4163_v48 = vpack.c.bf16 %v509_v45, %v508_v44  ;;  %v4166_v49 = vpack.c.bf16 %v527_v47, %v526_v46  ;;  %v511_v51 = vld [vmem:[%s5120_s14 + $0x78] sm:$0xff]  ;;  %v433_v53 = vld [vmem:[%s5110_s29 + $0x8] sm:$0xff]  ;;  %v434_v55 = vld [vmem:[%s5110_s29 + $0x10] sm:$0xff] }
  0x64   : > { %4135 = vmatpush3.bf16.xpose.msk.msra.mxu0 %vm5295_vm3, %v4133_v16  ;;  %v4169_v52 = vpack.c.bf16 %v511_v51, %v510_v50  ;;  %v465_v54 = vmul.f32 0.125, %v433_v53  ;;  %v466_v56 = vmul.f32 0.125, %v434_v55  ;;  %v435_v57 = vld [vmem:[%s5110_s29 + $0x18] sm:$0xff]  ;;  %v436_v59 = vld [vmem:[%s5110_s29 + $0x20] sm:$0xff]  ;;  %v437_v61 = vld [vmem:[%s5110_s29 + $0x28] sm:$0xff] }
  0x65   : > { %4138 = vmatprep.subr.msk.bf16.mxu0 %vm5295_vm3, %v4136_v17  ;;  %v467_v58 = vmul.f32 0.125, %v435_v57  ;;  %v468_v60 = vmul.f32 0.125, %v436_v59  ;;  %v469_v62 = vmul.f32 0.125, %v437_v61  ;;  %v438_v63 = vld [vmem:[%s5110_s29 + $0x30] sm:$0xff]  ;;  %v439_v1 = vld [vmem:[%s5110_s29 + $0x38] sm:$0xff]  ;;  %v440_v3 = vld [vmem:[%s5110_s29 + $0x40] sm:$0xff] }
  0x66   : > { %v470_v0 = vmul.f32 0.125, %v438_v63  ;;  %v471_v2 = vmul.f32 0.125, %v439_v1  ;;  %v472_v4 = vmul.f32 0.125, %v440_v3  ;;  %v441_v5 = vld [vmem:[%s5110_s29 + $0x48] sm:$0xff]  ;;  %v442_v7 = vld [vmem:[%s5110_s29 + $0x50] sm:$0xff]  ;;  %v443_v9 = vld [vmem:[%s5110_s29 + $0x58] sm:$0xff] }
  0x67   : > { %v473_v6 = vmul.f32 0.125, %v441_v5  ;;  %v474_v8 = vmul.f32 0.125, %v442_v7  ;;  %v475_v10 = vmul.f32 0.125, %v443_v9  ;;  %v444_v11 = vld [vmem:[%s5110_s29 + $0x60] sm:$0xff]  ;;  %v445_v13 = vld [vmem:[%s5110_s29 + $0x68] sm:$0xff]  ;;  %v446_v15 = vld [vmem:[%s5110_s29 + $0x70] sm:$0xff] }
  0x68   : > { %v476_v12 = vmul.f32 0.125, %v444_v11  ;;  %v477_v14 = vmul.f32 0.125, %v445_v13  ;;  %v478_v16 = vmul.f32 0.125, %v446_v15  ;;  %v447_v17 = vld [vmem:[%s5110_s29 + $0x78] sm:$0xff]  ;;  %v449_v21 = vld [vmem:[%s5110_s29 + $0x88] sm:$0xff]  ;;  %v450_v23 = vld [vmem:[%s5110_s29 + $0x90] sm:$0xff] }
  0x69   : > { %v479_v18 = vmul.f32 0.125, %v447_v17  ;;  %v481_v22 = vmul.f32 0.125, %v449_v21  ;;  %v452_v27 = vld [vmem:[%s5110_s29 + $0xa0] sm:$0xff]  ;;  %v453_v29 = vld [vmem:[%s5110_s29 + $0xa8] sm:$0xff]  ;;  %v455_v33 = vld [vmem:[%s5110_s29 + $0xb8] sm:$0xff] }
  0x6a   : > { %v484_v28 = vmul.f32 0.125, %v452_v27  ;;  %v487_v34 = vmul.f32 0.125, %v455_v33  ;;  %v456_v35 = vld [vmem:[%s5110_s29 + $0xc0] sm:$0xff]  ;;  %v458_v39 = vld [vmem:[%s5110_s29 + $0xd0] sm:$0xff]  ;;  %v459_v41 = vld [vmem:[%s5110_s29 + $0xd8] sm:$0xff] }
  0x6b   : > { %v490_v40 = vmul.f32 0.125, %v458_v39  ;;  %v461_v45 = vld [vmem:[%s5110_s29 + $0xe8] sm:$0xff]  ;;  %v462_v47 = vld [vmem:[%s5110_s29 + $0xf0] sm:$0xff] }
  0x6c   : > { %4141 = vmatpush3.bf16.xpose.msk.msra.mxu0 %vm5295_vm3, %v4139_v24  ;;  %v482_v24 = vmul.f32 0.125, %v450_v23  ;;  %v493_v46 = vmul.f32 0.125, %v461_v45 }
  0x6d   : > { %4144 = vmatprep.subr.msk.bf16.mxu0 %vm5295_vm3, %v4142_v25  ;;  %v451_v25 = vld [vmem:[%s5110_s29 + $0x98] sm:$0xff] }
  0x6e   : > { %v483_v26 = vmul.f32 0.125, %v451_v25 }
  0x74   : > { %4147 = vmatpush3.bf16.xpose.msk.msra.mxu0 %vm5295_vm3, %v4145_v30  ;;  %v485_v30 = vmul.f32 0.125, %v453_v29 }
  0x75   : > { %4150 = vmatprep.subr.msk.bf16.mxu0 %vm5295_vm3, %v4148_v31  ;;  %v454_v31 = vld [vmem:[%s5110_s29 + $0xb0] sm:$0xff] }
  0x76   : > { %v486_v32 = vmul.f32 0.125, %v454_v31 }
  0x7c   : > { %4153 = vmatpush3.bf16.xpose.msk.msra.mxu0 %vm5295_vm3, %v4151_v36  ;;  %v488_v36 = vmul.f32 0.125, %v456_v35 }
  0x7d   : > { %4156 = vmatprep.subr.msk.bf16.mxu0 %vm5295_vm3, %v4154_v37  ;;  %v457_v37 = vld [vmem:[%s5110_s29 + $0xc8] sm:$0xff] }
  0x7e   : > { %v489_v38 = vmul.f32 0.125, %v457_v37 }
  0x84   : > { %4159 = vmatpush3.bf16.xpose.msk.msra.mxu0 %vm5295_vm3, %v4157_v42  ;;  %v491_v42 = vmul.f32 0.125, %v459_v41 }
  0x85   : > { %4162 = vmatprep.subr.msk.bf16.mxu0 %vm5295_vm3, %v4160_v43  ;;  %v460_v43 = vld [vmem:[%s5110_s29 + $0xe0] sm:$0xff] }
  0x86   : > { %v492_v44 = vmul.f32 0.125, %v460_v43 }
  0x8c   : > { %4165 = vmatpush3.bf16.xpose.msk.msra.mxu0 %vm5295_vm3, %v4163_v48  ;;  %v494_v48 = vmul.f32 0.125, %v462_v47 }
  0x8d   : > { %4168 = vmatprep.subr.msk.bf16.mxu0 %vm5295_vm3, %v4166_v49  ;;  %v463_v49 = vld [vmem:[%s5110_s29 + $0xf8] sm:$0xff] }
  0x8e   : > { %v495_v50 = vmul.f32 0.125, %v463_v49 }
  0x94   : > { %4171 = vmatpush3.bf16.xpose.msk.msra.mxu0 %vm5295_vm3, %v4169_v52 }
  0x9b   : > { %4061 = vmatmul.mubr.msk.f32.vlgmr.msra.gmra.mrb[0].mxu0 %vm560_vm2, %v464_v19  ;;  %v448_v19 = vld [vmem:[%s5110_s29 + $0x80] sm:$0xff] }
  0x9c   : > { %4062 = vmatprep.mubr.msk.f32.mxu0 %vm560_vm2, %v465_v54  ;;  %v480_v20 = vmul.f32 0.125, %v448_v19 }
  0x9f   : > { %4063 = vmatmul.mubr.msk.f32.gmra.mrb[2].mxu0 %vm560_vm2, %v465_v54 }
  0xa0   : > { %4064 = vmatprep.mubr.msk.f32.mxu0 %vm560_vm2, %v466_v56 }
  0xa3   : > { %4065 = vmatmul.mubr.msk.f32.gmra.mrb[4].mxu0 %vm560_vm2, %v466_v56 }
  0xa4   : > { %4066 = vmatprep.mubr.msk.f32.mxu0 %vm560_vm2, %v467_v58 }
  0xa7   : > { %4067 = vmatmul.mubr.msk.f32.gmra.mrb[6].mxu0 %vm560_vm2, %v467_v58 }
  0xa8   : > { %4068 = vmatprep.mubr.msk.f32.mxu0 %vm560_vm2, %v468_v60 }
  0xab   : > { %4069 = vmatmul.mubr.msk.f32.gmra.mrb[8].mxu0 %vm560_vm2, %v468_v60 }
  0xac   : > { %4070 = vmatprep.mubr.msk.f32.mxu0 %vm560_vm2, %v469_v62 }
  0xaf   : > { %4071 = vmatmul.mubr.msk.f32.gmra.mrb[10].mxu0 %vm560_vm2, %v469_v62 }
  0xb0   : > { %4072 = vmatprep.mubr.msk.f32.mxu0 %vm560_vm2, %v470_v0 }
  0xb3   : > { %4073 = vmatmul.mubr.msk.f32.gmra.mrb[12].mxu0 %vm560_vm2, %v470_v0 }
  0xb4   : > { %4074 = vmatprep.mubr.msk.f32.mxu0 %vm560_vm2, %v471_v2 }
  0xb7   : > { %4075 = vmatmul.mubr.msk.f32.gmra.mrb[14].mxu0 %vm560_vm2, %v471_v2  ;;  %v4984_v2 = vmov 0  }
  0xb8   : > { %4076 = vmatprep.mubr.msk.f32.mxu0 %vm560_vm2, %v472_v4  ;;  %4314 = vset.pattern.permute.xlu1 %v4984_v2 }
  0xb9   : > { %4315 = vset.pattern.permute.xlu0 %v4984_v2 }
  0xbb   : > { %4077 = vmatmul.mubr.msk.f32.gmra.mrb[16].mxu0 %vm560_vm2, %v472_v4 }
  0xbc   : > { %4078 = vmatprep.mubr.msk.f32.mxu0 %vm560_vm2, %v473_v6 }
  0xbf   : > { %4079 = vmatmul.mubr.msk.f32.gmra.mrb[18].mxu0 %vm560_vm2, %v473_v6 }
  0xc0   : > { %4080 = vmatprep.mubr.msk.f32.mxu0 %vm560_vm2, %v474_v8 }
  0xc3   : > { %4081 = vmatmul.mubr.msk.f32.gmra.mrb[20].mxu0 %vm560_vm2, %v474_v8 }
  0xc4   : > { %4082 = vmatprep.mubr.msk.f32.mxu0 %vm560_vm2, %v475_v10 }
  0xc7   : > { %4083 = vmatmul.mubr.msk.f32.gmra.mrb[22].mxu0 %vm560_vm2, %v475_v10 }
  0xc8   : > { %4084 = vmatprep.mubr.msk.f32.mxu0 %vm560_vm2, %v476_v12 }
  0xcb   : > { %4085 = vmatmul.mubr.msk.f32.gmra.mrb[24].mxu0 %vm560_vm2, %v476_v12 }
  0xcc   : > { %4086 = vmatprep.mubr.msk.f32.mxu0 %vm560_vm2, %v477_v14 }
  0xcf   : > { %4087 = vmatmul.mubr.msk.f32.gmra.mrb[26].mxu0 %vm560_vm2, %v477_v14 }
  0xd0   : > { %4088 = vmatprep.mubr.msk.f32.mxu0 %vm560_vm2, %v478_v16 }
  0xd3   : > { %4089 = vmatmul.mubr.msk.f32.gmra.mrb[28].mxu0 %vm560_vm2, %v478_v16 }
  0xd4   : > { %4090 = vmatprep.mubr.msk.f32.mxu0 %vm560_vm2, %v479_v18 }
  0xd7   : > { %4091 = vmatmul.mubr.msk.f32.gmra.mrb[30].mxu0 %vm560_vm2, %v479_v18 }
  0xd8   : > { %4092 = vmatprep.mubr.msk.f32.mxu0 %vm560_vm2, %v480_v20 }
  0xdb   : > { %4093 = vmatmul.mubr.msk.f32.gmra.mrb[32].mxu0 %vm560_vm2, %v480_v20 }
  0xdc   : > { %4094 = vmatprep.mubr.msk.f32.mxu0 %vm560_vm2, %v481_v22 }
  0xdf   : > { %4095 = vmatmul.mubr.msk.f32.gmra.mrb[34].mxu0 %vm560_vm2, %v481_v22 }
  0xe0   : > { %4096 = vmatprep.mubr.msk.f32.mxu0 %vm560_vm2, %v482_v24 }
  0xe3   : > { %4097 = vmatmul.mubr.msk.f32.gmra.mrb[36].mxu0 %vm560_vm2, %v482_v24 }
  0xe4   : > { %4098 = vmatprep.mubr.msk.f32.mxu0 %vm560_vm2, %v483_v26 }
  0xe7   : > { %4099 = vmatmul.mubr.msk.f32.gmra.mrb[38].mxu0 %vm560_vm2, %v483_v26 }
  0xe8   : > { %4100 = vmatprep.mubr.msk.f32.mxu0 %vm560_vm2, %v484_v28 }
  0xeb   : > { %4101 = vmatmul.mubr.msk.f32.gmra.mrb[40].mxu0 %vm560_vm2, %v484_v28 }
  0xec   : > { %4102 = vmatprep.mubr.msk.f32.mxu0 %vm560_vm2, %v485_v30 }
  0xef   : > { %4103 = vmatmul.mubr.msk.f32.gmra.mrb[42].mxu0 %vm560_vm2, %v485_v30 }
  0xf0   : > { %4104 = vmatprep.mubr.msk.f32.mxu0 %vm560_vm2, %v486_v32 }
  0xf3   : > { %4105 = vmatmul.mubr.msk.f32.gmra.mrb[44].mxu0 %vm560_vm2, %v486_v32 }
  0xf4   : > { %4106 = vmatprep.mubr.msk.f32.mxu0 %vm560_vm2, %v487_v34 }
  0xf7   : > { %4107 = vmatmul.mubr.msk.f32.gmra.mrb[46].mxu0 %vm560_vm2, %v487_v34 }
  0xf8   : > { %4108 = vmatprep.mubr.msk.f32.mxu0 %vm560_vm2, %v488_v36 }
  0xfb   : > { %4109 = vmatmul.mubr.msk.f32.gmra.mrb[48].mxu0 %vm560_vm2, %v488_v36 }
  0xfc   : > { %4110 = vmatprep.mubr.msk.f32.mxu0 %vm560_vm2, %v489_v38 }
  0xff   : > { %4111 = vmatmul.mubr.msk.f32.gmra.mrb[50].mxu0 %vm560_vm2, %v489_v38 }
 0x100   : > { %4112 = vmatprep.mubr.msk.f32.mxu0 %vm560_vm2, %v490_v40 }
 0x103   : > { %4113 = vmatmul.mubr.msk.f32.gmra.mrb[52].mxu0 %vm560_vm2, %v490_v40 }
 0x104   : > { %4114 = vmatprep.mubr.msk.f32.mxu0 %vm560_vm2, %v491_v42 }
 0x107   : > { %4115 = vmatmul.mubr.msk.f32.gmra.mrb[54].mxu0 %vm560_vm2, %v491_v42 }
 0x108   : > { %4116 = vmatprep.mubr.msk.f32.mxu0 %vm560_vm2, %v492_v44 }
 0x10b   : > { %4117 = vmatmul.mubr.msk.f32.gmra.mrb[56].mxu0 %vm560_vm2, %v492_v44 }
 0x10c   : > { %4118 = vmatprep.mubr.msk.f32.mxu0 %vm560_vm2, %v493_v46 }
 0x10f   : > { %4119 = vmatmul.mubr.msk.f32.gmra.mrb[58].mxu0 %vm560_vm2, %v493_v46 }
 0x110   : > { %4120 = vmatprep.mubr.msk.f32.mxu0 %vm560_vm2, %v494_v48 }
 0x113   : > { %4121 = vmatmul.mubr.msk.f32.gmra.mrb[60].mxu0 %vm560_vm2, %v494_v48 }
 0x114   : > { %4122 = vmatprep.mubr.msk.f32.mxu0 %vm560_vm2, %v495_v50 }
 0x117   : > { %4123 = vmatmul.mubr.msk.f32.gmra.mrb[62].mxu0 %vm560_vm2, %v495_v50 }
 0x16e   : > { %v5460_v51 = vpop.f32.mrb[0].mxu0 }
 0x16f   : > { %1015 = vst [vmem:[%s5458_s28] sm:$0xff] %v5460_v51  ;;  %v5464_v52 = vpop.f32.mrb[1].mxu0 }
 0x170   : > { %1016 = vst [vmem:[%s5458_s28 + $0x8] sm:$0xff] %v5464_v52  ;;  %v1111_v53 = vmax.f32 %v5460_v51, %v5464_v52 }
 0x172   : > { %1112 = vmax.xlane.f32.xlu0 %v1111_v53  ;;  %v5470_v54 = vpop.f32.mrb[2].mxu0 }
 0x173   : > { %1017 = vst [vmem:[%s5458_s28 + $0x20] sm:$0xff] %v5470_v54  ;;  %v5474_v55 = vpop.f32.mrb[3].mxu0 }
 0x174   : > { %1018 = vst [vmem:[%s5458_s28 + $0x28] sm:$0xff] %v5474_v55  ;;  %v1114_v56 = vmax.f32 %v5470_v54, %v5474_v55 }
 0x176   : > { %1115 = vmax.xlane.f32.xlu0 %v1114_v56  ;;  %v5480_v57 = vpop.f32.mrb[4].mxu0 }
 0x177   : > { %1019 = vst [vmem:[%s5458_s28 + $0x40] sm:$0xff] %v5480_v57  ;;  %v5484_v58 = vpop.f32.mrb[5].mxu0 }
 0x178   : > { %1020 = vst [vmem:[%s5458_s28 + $0x48] sm:$0xff] %v5484_v58  ;;  %v1117_v59 = vmax.f32 %v5480_v57, %v5484_v58 }
 0x17a   : > { %1118 = vmax.xlane.f32.xlu1 %v1117_v59  ;;  %v5490_v60 = vpop.f32.mrb[6].mxu0 }
 0x17b   : > { %1021 = vst [vmem:[%s5458_s28 + $0x60] sm:$0xff] %v5490_v60  ;;  %v5494_v61 = vpop.f32.mrb[7].mxu0 }
 0x17c   : > { %1022 = vst [vmem:[%s5458_s28 + $0x68] sm:$0xff] %v5494_v61  ;;  %v1120_v62 = vmax.f32 %v5490_v60, %v5494_v61 }
 0x17e   : > { %1121 = vmax.xlane.f32.xlu1 %v1120_v62  ;;  %v5500_v63 = vpop.f32.mrb[8].mxu0 }
 0x17f   : > { %1023 = vst [vmem:[%s5458_s28 + $0x80] sm:$0xff] %v5500_v63  ;;  %v5504_v0 = vpop.f32.mrb[9].mxu0 }
 0x180   : > { %1024 = vst [vmem:[%s5458_s28 + $0x88] sm:$0xff] %v5504_v0  ;;  %v1123_v1 = vmax.f32 %v5500_v63, %v5504_v0 }
 0x182   : > { %1124 = vmax.xlane.f32.xlu0 %v1123_v1  ;;  %v5510_v3 = vpop.f32.mrb[10].mxu0 }
 0x183   : > { %1025 = vst [vmem:[%s5458_s28 + $0xa0] sm:$0xff] %v5510_v3  ;;  %v5514_v4 = vpop.f32.mrb[11].mxu0 }
 0x184   : > { %1026 = vst [vmem:[%s5458_s28 + $0xa8] sm:$0xff] %v5514_v4  ;;  %v1126_v5 = vmax.f32 %v5510_v3, %v5514_v4 }
 0x186   : > { %1127 = vmax.xlane.f32.xlu1 %v1126_v5  ;;  %v5520_v6 = vpop.f32.mrb[12].mxu0 }
 0x187   : > { %1027 = vst [vmem:[%s5458_s28 + $0xc0] sm:$0xff] %v5520_v6  ;;  %v5524_v7 = vpop.f32.mrb[13].mxu0 }
 0x188   : > { %1028 = vst [vmem:[%s5458_s28 + $0xc8] sm:$0xff] %v5524_v7  ;;  %v1129_v8 = vmax.f32 %v5520_v6, %v5524_v7 }
 0x18a   : > { %1130 = vmax.xlane.f32.xlu0 %v1129_v8  ;;  %v5530_v9 = vpop.f32.mrb[14].mxu0 }
 0x18b   : > { %1029 = vst [vmem:[%s5458_s28 + $0xe0] sm:$0xff] %v5530_v9  ;;  %v5534_v10 = vpop.f32.mrb[15].mxu0 }
 0x18c   : > { %1030 = vst [vmem:[%s5458_s28 + $0xe8] sm:$0xff] %v5534_v10  ;;  %v1132_v11 = vmax.f32 %v5530_v9, %v5534_v10 }
 0x18e   : > { %1133 = vmax.xlane.f32.xlu1 %v1132_v11  ;;  %v5540_v12 = vpop.f32.mrb[16].mxu0 }
 0x18f   : > { %1031 = vst [vmem:[%s5458_s28 + $0x100] sm:$0xff] %v5540_v12  ;;  %v5544_v13 = vpop.f32.mrb[17].mxu0 }
 0x190   : > { %1032 = vst [vmem:[%s5458_s28 + $0x108] sm:$0xff] %v5544_v13  ;;  %v1135_v14 = vmax.f32 %v5540_v12, %v5544_v13 }
 0x192   : > { %1136 = vmax.xlane.f32.xlu0 %v1135_v14  ;;  %v5550_v15 = vpop.f32.mrb[18].mxu0 }
 0x193   : > { %1033 = vst [vmem:[%s5458_s28 + $0x120] sm:$0xff] %v5550_v15  ;;  %v5554_v16 = vpop.f32.mrb[19].mxu0 }
 0x194   : > { %1034 = vst [vmem:[%s5458_s28 + $0x128] sm:$0xff] %v5554_v16  ;;  %v1138_v17 = vmax.f32 %v5550_v15, %v5554_v16 }
 0x196   : > { %1139 = vmax.xlane.f32.xlu1 %v1138_v17  ;;  %v5560_v18 = vpop.f32.mrb[20].mxu0 }
 0x197   : > { %1035 = vst [vmem:[%s5458_s28 + $0x140] sm:$0xff] %v5560_v18  ;;  %v5564_v19 = vpop.f32.mrb[21].mxu0 }
 0x198   : > { %1036 = vst [vmem:[%s5458_s28 + $0x148] sm:$0xff] %v5564_v19  ;;  %v1141_v20 = vmax.f32 %v5560_v18, %v5564_v19 }
 0x19a   : > { %1142 = vmax.xlane.f32.xlu0 %v1141_v20  ;;  %v5570_v21 = vpop.f32.mrb[22].mxu0 }
 0x19b   : > { %1037 = vst [vmem:[%s5458_s28 + $0x160] sm:$0xff] %v5570_v21  ;;  %v5574_v22 = vpop.f32.mrb[23].mxu0 }
 0x19c   : > { %1038 = vst [vmem:[%s5458_s28 + $0x168] sm:$0xff] %v5574_v22  ;;  %v1144_v23 = vmax.f32 %v5570_v21, %v5574_v22 }
 0x19e   : > { %1145 = vmax.xlane.f32.xlu1 %v1144_v23  ;;  %v891_v24 = vpop.f32.mrb[24].mxu0  ;;  %v528_v23 = vld [vmem:[%s5125_s17] sm:$0xff] }
 0x19f   : > { %1039 = vst [vmem:[%s5458_s28 + $0x180] sm:$0xff] %v891_v24  ;;  %v893_v25 = vpop.f32.mrb[25].mxu0 }
 0x1a0   : > { %1040 = vst [vmem:[%s5458_s28 + $0x188] sm:$0xff] %v893_v25  ;;  %v1147_v26 = vmax.f32 %v891_v24, %v893_v25  ;;  %v529_v24 = vld [vmem:[%s5125_s17 + $0x8] sm:$0xff] }
 0x1a1   : > { %v4173_v25 = vpack.c.bf16 %v529_v24, %v528_v23 }
 0x1a2   : > { %1148 = vmax.xlane.f32.xlu0 %v1147_v26  ;;  %v897_v27 = vpop.f32.mrb[26].mxu0 }
 0x1a3   : > { %1041 = vst [vmem:[%s5458_s28 + $0x1a0] sm:$0xff] %v897_v27  ;;  %v899_v28 = vpop.f32.mrb[27].mxu0 }
 0x1a4   : > { %1042 = vst [vmem:[%s5458_s28 + $0x1a8] sm:$0xff] %v899_v28  ;;  %v1150_v29 = vmax.f32 %v897_v27, %v899_v28  ;;  %v4985_v27 = vmov 0.0|0.0  }
 0x1a5   : > { %4172 = vmatprep.subr.bf16.mxu1 %v4985_v27 }
 0x1a6   : > { %1151 = vmax.xlane.f32.xlu1 %v1150_v29  ;;  %v903_v30 = vpop.f32.mrb[28].mxu0  ;;  %4174 = vmatpush1.bf16.msra.mxu1 %v4173_v25 }
 0x1a7   : > { %1043 = vst [vmem:[%s5458_s28 + $0x1c0] sm:$0xff] %v903_v30  ;;  %v905_v31 = vpop.f32.mrb[29].mxu0  ;;  %4175 = vmatprep.subr.bf16.mxu1 %v4985_v27 }
 0x1a8   : > { %1044 = vst [vmem:[%s5458_s28 + $0x1c8] sm:$0xff] %v905_v31  ;;  %v1153_v32 = vmax.f32 %v903_v30, %v905_v31  ;;  %v530_v30 = vld [vmem:[%s5125_s17 + $0x10] sm:$0xff]  ;;  %v531_v31 = vld [vmem:[%s5125_s17 + $0x18] sm:$0xff] }
 0x1aa   : > { %v909_v33 = vpop.f32.mrb[30].mxu0  ;;  %1154 = vmax.xlane.f32.xlu0 %v1153_v32  ;;  %v4176_v32 = vpack.c.bf16 %v531_v31, %v530_v30  ;;  %v544_v30 = vld [vmem:[%s5125_s17 + $0x80] sm:$0xff]  ;;  %v545_v31 = vld [vmem:[%s5125_s17 + $0x88] sm:$0xff] }
 0x1ab   : > { %1045 = vst [vmem:[%s5458_s28 + $0x1e0] sm:$0xff] %v909_v33  ;;  %v911_v34 = vpop.f32.mrb[31].mxu0 }
 0x1ac   : > { %1046 = vst [vmem:[%s5458_s28 + $0x1e8] sm:$0xff] %v911_v34  ;;  %v1156_v35 = vmax.f32 %v909_v33, %v911_v34  ;;  %4177 = vmatpush1.bf16.msra.mxu1 %v4176_v32  ;;  %v4197_v32 = vpack.c.bf16 %v545_v31, %v544_v30 }
 0x1ad   : > { %4178 = vmatprep.subr.bf16.mxu1 %v4985_v27 }
 0x1ae   : > { %1157 = vmax.xlane.f32.xlu1 %v1156_v35  ;;  %v915_v36 = vpop.f32.mrb[32].mxu0 }
 0x1af   : > { %1047 = vst [vmem:[%s5458_s28 + $0x200] sm:$0xff] %v915_v36  ;;  %v917_v37 = vpop.f32.mrb[33].mxu0 }
 0x1b0   : > { %1048 = vst [vmem:[%s5458_s28 + $0x208] sm:$0xff] %v917_v37  ;;  %v1159_v38 = vmax.f32 %v915_v36, %v917_v37  ;;  %v532_v36 = vld [vmem:[%s5125_s17 + $0x20] sm:$0xff]  ;;  %v533_v37 = vld [vmem:[%s5125_s17 + $0x28] sm:$0xff] }
 0x1b2   : > { %1160 = vmax.xlane.f32.xlu0 %v1159_v38  ;;  %v921_v39 = vpop.f32.mrb[34].mxu0  ;;  %v4179_v38 = vpack.c.bf16 %v533_v37, %v532_v36  ;;  %v548_v36 = vld [vmem:[%s5125_s17 + $0xa0] sm:$0xff]  ;;  %v549_v37 = vld [vmem:[%s5125_s17 + $0xa8] sm:$0xff] }
 0x1b3   : > { %1049 = vst [vmem:[%s5458_s28 + $0x220] sm:$0xff] %v921_v39  ;;  %v923_v40 = vpop.f32.mrb[35].mxu0 }
 0x1b4   : > { %1050 = vst [vmem:[%s5458_s28 + $0x228] sm:$0xff] %v923_v40  ;;  %v1162_v41 = vmax.f32 %v921_v39, %v923_v40  ;;  %4180 = vmatpush1.bf16.msra.mxu1 %v4179_v38  ;;  %v4203_v38 = vpack.c.bf16 %v549_v37, %v548_v36 }
 0x1b5   : > { %4181 = vmatprep.subr.bf16.mxu1 %v4985_v27 }
 0x1b6   : > { %1163 = vmax.xlane.f32.xlu1 %v1162_v41  ;;  %v927_v42 = vpop.f32.mrb[36].mxu0 }
 0x1b7   : > { %1051 = vst [vmem:[%s5458_s28 + $0x240] sm:$0xff] %v927_v42  ;;  %v929_v43 = vpop.f32.mrb[37].mxu0 }
 0x1b8   : > { %1052 = vst [vmem:[%s5458_s28 + $0x248] sm:$0xff] %v929_v43  ;;  %v1165_v44 = vmax.f32 %v927_v42, %v929_v43  ;;  %v534_v42 = vld [vmem:[%s5125_s17 + $0x30] sm:$0xff]  ;;  %v535_v43 = vld [vmem:[%s5125_s17 + $0x38] sm:$0xff] }
 0x1ba   : > { %1166 = vmax.xlane.f32.xlu0 %v1165_v44  ;;  %v933_v45 = vpop.f32.mrb[38].mxu0  ;;  %v4182_v44 = vpack.c.bf16 %v535_v43, %v534_v42  ;;  %v5672_v42 = vld [vmem:[#allocation2] sm:$0xff] }
 0x1bb   : > { %1053 = vst [vmem:[%s5458_s28 + $0x260] sm:$0xff] %v933_v45  ;;  %v935_v46 = vpop.f32.mrb[39].mxu0 }
 0x1bc   : > { %1054 = vst [vmem:[%s5458_s28 + $0x268] sm:$0xff] %v935_v46  ;;  %v1168_v47 = vmax.f32 %v933_v45, %v935_v46  ;;  %4183 = vmatpush1.bf16.msra.mxu1 %v4182_v44 }
 0x1bd   : > { %4184 = vmatprep.subr.bf16.mxu1 %v4985_v27 }
 0x1be   : > { %1169 = vmax.xlane.f32.xlu0 %v1168_v47  ;;  %v939_v48 = vpop.f32.mrb[40].mxu0 }
 0x1bf   : > { %1055 = vst [vmem:[%s5458_s28 + $0x280] sm:$0xff] %v939_v48  ;;  %v941_v49 = vpop.f32.mrb[41].mxu0 }
 0x1c0   : > { %1056 = vst [vmem:[%s5458_s28 + $0x288] sm:$0xff] %v941_v49  ;;  %v1171_v50 = vmax.f32 %v939_v48, %v941_v49  ;;  %v536_v48 = vld [vmem:[%s5125_s17 + $0x40] sm:$0xff]  ;;  %v537_v49 = vld [vmem:[%s5125_s17 + $0x48] sm:$0xff] }
 0x1c2   : > { %1172 = vmax.xlane.f32.xlu1 %v1171_v50  ;;  %v945_v53 = vpop.f32.mrb[42].mxu0  ;;  %v4185_v50 = vpack.c.bf16 %v537_v49, %v536_v48  ;;  %v5865_v48 = vld [vmem:[#allocation2 + $0x90] sm:$0xff] }
 0x1c3   : > { %1057 = vst [vmem:[%s5458_s28 + $0x2a0] sm:$0xff] %v945_v53  ;;  %v947_v56 = vpop.f32.mrb[43].mxu0  ;;  %7349 = vst [vmem:[#allocation25_spill] sm:$0xff] %v5865_v48 }
 0x1c4   : > { %1058 = vst [vmem:[%s5458_s28 + $0x2a8] sm:$0xff] %v947_v56  ;;  %v1174_v59 = vmax.f32 %v945_v53, %v947_v56  ;;  %4186 = vmatpush1.bf16.msra.mxu1 %v4185_v50 }
 0x1c5   : > { %4187 = vmatprep.subr.bf16.mxu1 %v4985_v27 }
 0x1c6   : > { %1175 = vmax.xlane.f32.xlu1 %v1174_v59  ;;  %v951_v62 = vpop.f32.mrb[44].mxu0 }
 0x1c7   : > { %1059 = vst [vmem:[%s5458_s28 + $0x2c0] sm:$0xff] %v951_v62  ;;  %v953_v1 = vpop.f32.mrb[45].mxu0 }
 0x1c8   : > { %1060 = vst [vmem:[%s5458_s28 + $0x2c8] sm:$0xff] %v953_v1  ;;  %v1177_v2 = vmax.f32 %v951_v62, %v953_v1  ;;  %v538_v62 = vld [vmem:[%s5125_s17 + $0x50] sm:$0xff]  ;;  %v539_v1 = vld [vmem:[%s5125_s17 + $0x58] sm:$0xff] }
 0x1ca   : > { %1178 = vmax.xlane.f32.xlu1 %v1177_v2  ;;  %v957_v5 = vpop.f32.mrb[46].mxu0  ;;  %v4188_v2 = vpack.c.bf16 %v539_v1, %v538_v62  ;;  %v555_v62 = vld [vmem:[%s5125_s17 + $0xd8] sm:$0xff] }
 0x1cb   : > { %1061 = vst [vmem:[%s5458_s28 + $0x2e0] sm:$0xff] %v957_v5  ;;  %v959_v8 = vpop.f32.mrb[47].mxu0 }
 0x1cc   : > { %1062 = vst [vmem:[%s5458_s28 + $0x2e8] sm:$0xff] %v959_v8  ;;  %v1180_v11 = vmax.f32 %v957_v5, %v959_v8  ;;  %4189 = vmatpush1.bf16.msra.mxu1 %v4188_v2 }
 0x1cd   : > { %4190 = vmatprep.subr.bf16.mxu1 %v4985_v27 }
 0x1ce   : > { %1181 = vmax.xlane.f32.xlu1 %v1180_v11  ;;  %v963_v14 = vpop.f32.mrb[48].mxu0 }
 0x1cf   : > { %1063 = vst [vmem:[%s5458_s28 + $0x300] sm:$0xff] %v963_v14  ;;  %v965_v17 = vpop.f32.mrb[49].mxu0 }
 0x1d0   : > { %1064 = vst [vmem:[%s5458_s28 + $0x308] sm:$0xff] %v965_v17  ;;  %v1183_v20 = vmax.f32 %v963_v14, %v965_v17  ;;  %v540_v14 = vld [vmem:[%s5125_s17 + $0x60] sm:$0xff]  ;;  %v541_v17 = vld [vmem:[%s5125_s17 + $0x68] sm:$0xff] }
 0x1d2   : > { %1184 = vmax.xlane.f32.xlu1 %v1183_v20  ;;  %v969_v26 = vpop.f32.mrb[50].mxu0  ;;  %v4191_v20 = vpack.c.bf16 %v541_v17, %v540_v14 }
 0x1d3   : > { %1065 = vst [vmem:[%s5458_s28 + $0x320] sm:$0xff] %v969_v26  ;;  %v971_v28 = vpop.f32.mrb[51].mxu0 }
 0x1d4   : > { %1066 = vst [vmem:[%s5458_s28 + $0x328] sm:$0xff] %v971_v28  ;;  %v1186_v29 = vmax.f32 %v969_v26, %v971_v28  ;;  %4192 = vmatpush1.bf16.msra.mxu1 %v4191_v20  ;;  %v542_v26 = vld [vmem:[%s5125_s17 + $0x70] sm:$0xff]  ;;  %v543_v28 = vld [vmem:[%s5125_s17 + $0x78] sm:$0xff] }
 0x1d5   : > { %4193 = vmatprep.subr.bf16.mxu1 %v4985_v27  ;;  %v5703_v20 = vld [vmem:[#allocation2 + $0x18] sm:$0xff] }
 0x1d6   : > { %1187 = vmax.xlane.f32.xlu1 %v1186_v29  ;;  %v975_v33 = vpop.f32.mrb[52].mxu0  ;;  %v4194_v29 = vpack.c.bf16 %v543_v28, %v542_v26  ;;  %v556_v26 = vld [vmem:[%s5125_s17 + $0xe0] sm:$0xff]  ;;  %v557_v28 = vld [vmem:[%s5125_s17 + $0xe8] sm:$0xff] }
 0x1d7   : > { %1067 = vst [vmem:[%s5458_s28 + $0x340] sm:$0xff] %v975_v33  ;;  %v977_v34 = vpop.f32.mrb[53].mxu0  ;;  %v4215_v30 = vpack.c.bf16 %v557_v28, %v556_v26  ;;  %v5759_v26 = vld [vmem:[#allocation2 + $0x40] sm:$0xff] }
 0x1d8   : > { %1068 = vst [vmem:[%s5458_s28 + $0x348] sm:$0xff] %v977_v34  ;;  %v1189_v35 = vmax.f32 %v975_v33, %v977_v34  ;;  %4195 = vmatpush1.bf16.msra.mxu1 %v4194_v29  ;;  %v546_v33 = vld [vmem:[%s5125_s17 + $0x90] sm:$0xff]  ;;  %v547_v34 = vld [vmem:[%s5125_s17 + $0x98] sm:$0xff]  ;;  %v5855_v29 = vld [vmem:[#allocation2 + $0x88] sm:$0xff] }
 0x1d9   : > { %4196 = vmatprep.subr.bf16.mxu1 %v4985_v27  ;;  %7347 = vst [vmem:[#allocation23_spill] sm:$0xff] %v5855_v29 }
 0x1da   : > { %1190 = vmax.xlane.f32.xlu1 %v1189_v35  ;;  %v981_v39 = vpop.f32.mrb[54].mxu0  ;;  %v4200_v35 = vpack.c.bf16 %v547_v34, %v546_v33  ;;  %v5716_v33 = vld [vmem:[#allocation2 + $0x20] sm:$0xff]  ;;  %v558_v34 = vld [vmem:[%s5125_s17 + $0xf0] sm:$0xff] }
 0x1db   : > { %1069 = vst [vmem:[%s5458_s28 + $0x360] sm:$0xff] %v981_v39  ;;  %v983_v40 = vpop.f32.mrb[55].mxu0 }
 0x1dc   : > { %1070 = vst [vmem:[%s5458_s28 + $0x368] sm:$0xff] %v983_v40  ;;  %v1192_v41 = vmax.f32 %v981_v39, %v983_v40  ;;  %4198 = vmatpush1.bf16.msra.mxu1 %v4197_v32  ;;  %v550_v39 = vld [vmem:[%s5125_s17 + $0xb0] sm:$0xff]  ;;  %v551_v40 = vld [vmem:[%s5125_s17 + $0xb8] sm:$0xff] }
 0x1dd   : > { %4199 = vmatprep.subr.bf16.mxu1 %v4985_v27 }
 0x1de   : > { %1193 = vmax.xlane.f32.xlu1 %v1192_v41  ;;  %v987_v45 = vpop.f32.mrb[56].mxu0  ;;  %v4206_v41 = vpack.c.bf16 %v551_v40, %v550_v39  ;;  %v5729_v40 = vld [vmem:[#allocation2 + $0x28] sm:$0xff] }
 0x1df   : > { %1071 = vst [vmem:[%s5458_s28 + $0x380] sm:$0xff] %v987_v45  ;;  %v989_v46 = vpop.f32.mrb[57].mxu0 }
 0x1e0   : > { %1072 = vst [vmem:[%s5458_s28 + $0x388] sm:$0xff] %v989_v46  ;;  %v1195_v47 = vmax.f32 %v987_v45, %v989_v46  ;;  %4201 = vmatpush1.bf16.msra.mxu1 %v4200_v35  ;;  %v5678_v45 = vld [vmem:[#allocation2 + $0x8] sm:$0xff]  ;;  %v552_v46 = vld [vmem:[%s5125_s17 + $0xc0] sm:$0xff]  ;;  %v559_v35 = vld [vmem:[%s5125_s17 + $0xf8] sm:$0xff] }
 0x1e1   : > { %4202 = vmatprep.subr.bf16.mxu1 %v4985_v27  ;;  %v4218_v37 = vpack.c.bf16 %v559_v35, %v558_v34  ;;  %v5769_v34 = vld [vmem:[#allocation2 + $0x48] sm:$0xff] }
 0x1e2   : > { %1196 = vmax.xlane.f32.xlu1 %v1195_v47  ;;  %v993_v53 = vpop.f32.mrb[58].mxu0  ;;  %v553_v47 = vld [vmem:[%s5125_s17 + $0xc8] sm:$0xff] }
 0x1e3   : > { %1073 = vst [vmem:[%s5458_s28 + $0x3a0] sm:$0xff] %v993_v53  ;;  %v995_v56 = vpop.f32.mrb[59].mxu0  ;;  %v4209_v49 = vpack.c.bf16 %v553_v47, %v552_v46  ;;  %v5739_v46 = vld [vmem:[#allocation2 + $0x30] sm:$0xff]  ;;  %v5835_v47 = vld [vmem:[#allocation2 + $0x78] sm:$0xff] }
 0x1e4   : > { %1074 = vst [vmem:[%s5458_s28 + $0x3a8] sm:$0xff] %v995_v56  ;;  %v1198_v59 = vmax.f32 %v993_v53, %v995_v56  ;;  %4204 = vmatpush1.bf16.msra.mxu1 %v4203_v38  ;;  %v5690_v56 = vld [vmem:[#allocation2 + $0x10] sm:$0xff]  ;;  %7343 = vst [vmem:[#allocation19_spill] sm:$0xff] %v5835_v47 }
 0x1e5   : > { %4205 = vmatprep.subr.bf16.mxu1 %v4985_v27 }
 0x1e6   : > { %1199 = vmax.xlane.f32.xlu1 %v1198_v59  ;;  %v5634_v5 = vpop.f32.mrb[60].mxu0  ;;  %v554_v59 = vld [vmem:[%s5125_s17 + $0xd0] sm:$0xff] }
 0x1e7   : > { %1075 = vst [vmem:[%s5458_s28 + $0x3c0] sm:$0xff] %v5634_v5  ;;  %v5638_v8 = vpop.f32.mrb[61].mxu0  ;;  %v4212_v2 = vpack.c.bf16 %v555_v62, %v554_v59  ;;  %v5749_v59 = vld [vmem:[#allocation2 + $0x38] sm:$0xff]  ;;  %v5845_v62 = vld [vmem:[#allocation2 + $0x80] sm:$0xff] }
 0x1e8   : > { %1076 = vst [vmem:[%s5458_s28 + $0x3c8] sm:$0xff] %v5638_v8  ;;  %v1201_v11 = vmax.f32 %v5634_v5, %v5638_v8  ;;  %4207 = vmatpush1.bf16.msra.mxu1 %v4206_v41  ;;  %7345 = vst [vmem:[#allocation21_spill] sm:$0xff] %v5845_v62 }
 0x1e9   : > { %4208 = vmatprep.subr.bf16.mxu1 %v4985_v27 }
 0x1ea   : > { %v5647_v23 = vpop.f32.mrb[62].mxu0 }
 0x1eb   : > { %1077 = vst [vmem:[%s5458_s28 + $0x3e0] sm:$0xff] %v5647_v23  ;;  %v5651_v24 = vpop.f32.mrb[63].mxu0 }
 0x1ec   : > { %1078 = vst [vmem:[%s5458_s28 + $0x3e8] sm:$0xff] %v5651_v24  ;;  %v1204_v25 = vmax.f32 %v5647_v23, %v5651_v24  ;;  %4210 = vmatpush1.bf16.msra.mxu1 %v4209_v49  ;;  %v5815_v23 = vld [vmem:[#allocation2 + $0x68] sm:$0xff] }
 0x1ed   : > { %4211 = vmatprep.subr.bf16.mxu1 %v4985_v27  ;;  %7341 = vst [vmem:[#allocation17_spill] sm:$0xff] %v5815_v23 }
 0x1f0   : > { %4213 = vmatpush1.bf16.msra.mxu1 %v4212_v2 }
 0x1f1   : > { %4214 = vmatprep.subr.bf16.mxu1 %v4985_v27 }
 0x1f4   : > { %4216 = vmatpush1.bf16.msra.mxu1 %v4215_v30 }
 0x1f5   : > { %4217 = vmatprep.subr.bf16.mxu1 %v4985_v27 }
 0x1f8   : > { %4219 = vmatpush1.bf16.msra.mxu1 %v4218_v37 }
 0x1ff   : > { %v1113_v43 = vpop.xlane.xlu0 %1112 }
 0x200   : > { %v5675_v44 = vmax.f32 %v5672_v42, %v1113_v43 }
 0x202   : > { %2425 = vst.msk [vmem:[#allocation2] sm:$0xff] %vm1879_vm4, %v5675_v44  ;;  %1337 = vperm.xlu1 %4314, %v5675_v44  }
 0x203   : > { %v1116_v50 = vpop.xlane.xlu0 %1115 }
 0x204   : > { %v5688_v53 = vmax.f32 %v5678_v45, %v1116_v50 }
 0x206   : > { %2426 = vst.msk [vmem:[#allocation2 + $0x8] sm:$0xff] %vm1879_vm4, %v5688_v53  ;;  %1342 = vperm.xlu0 %4315, %v5688_v53  }
 0x207   : > { %v1119_v14 = vpop.xlane.xlu1 %1118 }
 0x208   : > { %v5701_v17 = vmax.f32 %v5690_v56, %v1119_v14 }
 0x20a   : > { %2427 = vst.msk [vmem:[#allocation2 + $0x10] sm:$0xff] %vm1879_vm4, %v5701_v17  ;;  %1347 = vperm.xlu0 %4315, %v5701_v17  }
 0x20b   : > { %v1122_v31 = vpop.xlane.xlu1 %1121 }
 0x20c   : > { %v5714_v32 = vmax.f32 %v5703_v20, %v1122_v31 }
 0x20e   : > { %2428 = vst.msk [vmem:[#allocation2 + $0x18] sm:$0xff] %vm1879_vm4, %v5714_v32  ;;  %1352 = vperm.xlu0 %4315, %v5714_v32  }
 0x20f   : > { %v1125_v38 = vpop.xlane.xlu0 %1124 }
 0x210   : > { %v5727_v39 = vmax.f32 %v5716_v33, %v1125_v38 }
 0x212   : > { %2429 = vst.msk [vmem:[#allocation2 + $0x20] sm:$0xff] %vm1879_vm4, %v5727_v39  ;;  %1357 = vperm.xlu0 %4315, %v5727_v39  }
 0x213   : > { %v1128_v41 = vpop.xlane.xlu1 %1127 }
 0x214   : > { %v5737_v43 = vmax.f32 %v5729_v40, %v1128_v41  ;;  %v5779_v41 = vld [vmem:[#allocation2 + $0x50] sm:$0xff] }
 0x216   : > { %2430 = vst.msk [vmem:[#allocation2 + $0x28] sm:$0xff] %vm1879_vm4, %v5737_v43  ;;  %1362 = vperm.xlu0 %4315, %v5737_v43  }
 0x217   : > { %v1131_v49 = vpop.xlane.xlu0 %1130 }
 0x218   : > { %v5747_v50 = vmax.f32 %v5739_v46, %v1131_v49 }
 0x21a   : > { %2431 = vst.msk [vmem:[#allocation2 + $0x30] sm:$0xff] %vm1879_vm4, %v5747_v50  ;;  %1367 = vperm.xlu0 %4315, %v5747_v50  }
 0x21b   : > { %v1134_v2 = vpop.xlane.xlu1 %1133 }
 0x21c   : > { %v5757_v14 = vmax.f32 %v5749_v59, %v1134_v2 }
 0x21e   : > { %2432 = vst.msk [vmem:[#allocation2 + $0x38] sm:$0xff] %vm1879_vm4, %v5757_v14  ;;  %1372 = vperm.xlu0 %4315, %v5757_v14  }
 0x21f   : > { %v1137_v30 = vpop.xlane.xlu0 %1136 }
 0x220   : > { %v5767_v31 = vmax.f32 %v5759_v26, %v1137_v30 }
 0x222   : > { %2433 = vst.msk [vmem:[#allocation2 + $0x40] sm:$0xff] %vm1879_vm4, %v5767_v31  ;;  %1377 = vperm.xlu0 %4315, %v5767_v31  }
 0x223   : > { %v1140_v37 = vpop.xlane.xlu1 %1139 }
 0x224   : > { %v5777_v38 = vmax.f32 %v5769_v34, %v1140_v37  ;;  %v5792_v37 = vld [vmem:[#allocation2 + $0x58] sm:$0xff] }
 0x226   : > { %2434 = vst.msk [vmem:[#allocation2 + $0x48] sm:$0xff] %vm1879_vm4, %v5777_v38  ;;  %1382 = vperm.xlu0 %4315, %v5777_v38   ;;  %1202 = vmax.xlane.f32.xlu1 %v1201_v11  ;;  %v5805_v11 = vld [vmem:[#allocation2 + $0x60] sm:$0xff] }
 0x227   : > { %v1143_v2 = vpop.xlane.xlu0 %1142 }
 0x228   : > { %v5790_v30 = vmax.f32 %v5779_v41, %v1143_v2  ;;  %v5825_v2 = vld [vmem:[#allocation2 + $0x70] sm:$0xff] }
 0x22a   : > { %2435 = vst.msk [vmem:[#allocation2 + $0x50] sm:$0xff] %vm1879_vm4, %v5790_v30  ;;  %1387 = vperm.xlu0 %4315, %v5790_v30   ;;  %1205 = vmax.xlane.f32.xlu1 %v1204_v25 }
 0x22b   : > { %v1146_v5 = vpop.xlane.xlu1 %1145 }
 0x22c   : > { %v5803_v8 = vmax.f32 %v5792_v37, %v1146_v5 }
 0x22e   : > { %7340 = vst [vmem:[#allocation16_spill] sm:$0xff] %v5803_v8  ;;  %2436 = vst.msk [vmem:[#allocation2 + $0x58] sm:$0xff] %vm1879_vm4, %v5803_v8  ;;  %1392 = vperm.xlu0 %4315, %v5803_v8  }
 0x22f   : > { %v1149_v49 = vpop.xlane.xlu0 %1148 }
 0x230   : > { %v5813_v28 = vmax.f32 %v5805_v11, %v1149_v49 }
 0x232   : > { %2437 = vst.msk [vmem:[#allocation2 + $0x60] sm:$0xff] %vm1879_vm4, %v5813_v28  ;;  %1397 = vperm.xlu0 %4315, %v5813_v28  }
 0x233   : > { %v1152_v25 = vpop.xlane.xlu1 %1151 }
 0x234   : > { %v5823_v5 = vmax.f32 %v5815_v23, %v1152_v25  ;;  %v5895_v23 = vld [vmem:[#allocation2 + $0xa8] sm:$0xff] }
 0x235   : > { %7355 = vst [vmem:[#allocation31_spill] sm:$0xff] %v5895_v23 }
 0x236   : > { %7342 = vst [vmem:[#allocation18_spill] sm:$0xff] %v5823_v5  ;;  %2438 = vst.msk [vmem:[#allocation2 + $0x68] sm:$0xff] %vm1879_vm4, %v5823_v5  ;;  %1402 = vperm.xlu0 %4315, %v5823_v5   ;;  %v5885_v5 = vld [vmem:[#allocation2 + $0xa0] sm:$0xff] }
 0x237   : > { %v1155_v24 = vpop.xlane.xlu0 %1154  ;;  %7353 = vst [vmem:[#allocation29_spill] sm:$0xff] %v5885_v5 }
 0x238   : > { %v5833_v35 = vmax.f32 %v5825_v2, %v1155_v24 }
 0x23a   : > { %2439 = vst.msk [vmem:[#allocation2 + $0x70] sm:$0xff] %vm1879_vm4, %v5833_v35 }
 0x23b   : > { %v1158_v36 = vpop.xlane.xlu1 %1157  ;;  %1407 = vperm.xlu1 %4314, %v5833_v35  }
 0x23c   : > { %v5843_v49 = vmax.f32 %v5835_v47, %v1158_v36  ;;  %v5875_v47 = vld [vmem:[#allocation2 + $0x98] sm:$0xff] }
 0x23d   : > { %7351 = vst [vmem:[#allocation27_spill] sm:$0xff] %v5875_v47 }
 0x23e   : > { %7344 = vst [vmem:[#allocation20_spill] sm:$0xff] %v5843_v49  ;;  %2440 = vst.msk [vmem:[#allocation2 + $0x78] sm:$0xff] %vm1879_vm4, %v5843_v49  ;;  %1412 = vperm.xlu0 %4315, %v5843_v49  }
 0x23f   : > { %v1161_v25 = vpop.xlane.xlu0 %1160 }
 0x240   : > { %v5853_v27 = vmax.f32 %v5845_v62, %v1161_v25 }
 0x242   : > { %7346 = vst [vmem:[#allocation22_spill] sm:$0xff] %v5853_v27  ;;  %2441 = vst.msk [vmem:[#allocation2 + $0x80] sm:$0xff] %vm1879_vm4, %v5853_v27  ;;  %1417 = vperm.xlu0 %4315, %v5853_v27  }
 0x243   : > { %v1164_v24 = vpop.xlane.xlu1 %1163 }
 0x244   : > { %v5863_v1 = vmax.f32 %v5855_v29, %v1164_v24 }
 0x246   : > { %7348 = vst [vmem:[#allocation24_spill] sm:$0xff] %v5863_v1  ;;  %2442 = vst.msk [vmem:[#allocation2 + $0x88] sm:$0xff] %vm1879_vm4, %v5863_v1  ;;  %1422 = vperm.xlu0 %4315, %v5863_v1  }
 0x247   : > { %v1167_v36 = vpop.xlane.xlu0 %1166 }
 0x248   : > { %v5873_v49 = vmax.f32 %v5865_v48, %v1167_v36 }
 0x24a   : > { %7350 = vst [vmem:[#allocation26_spill] sm:$0xff] %v5873_v49  ;;  %2443 = vst.msk [vmem:[#allocation2 + $0x90] sm:$0xff] %vm1879_vm4, %v5873_v49  ;;  %1427 = vperm.xlu0 %4315, %v5873_v49   ;;  %v5905_v49 = vld [vmem:[#allocation2 + $0xb0] sm:$0xff] }
 0x24b   : > { %v1170_v25 = vpop.xlane.xlu0 %1169  ;;  %7357 = vst [vmem:[#allocation33_spill] sm:$0xff] %v5905_v49 }
 0x24c   : > { %v5883_v29 = vmax.f32 %v5875_v47, %v1170_v25 }
 0x24e   : > { %7352 = vst [vmem:[#allocation28_spill] sm:$0xff] %v5883_v29  ;;  %2444 = vst.msk [vmem:[#allocation2 + $0x98] sm:$0xff] %vm1879_vm4, %v5883_v29  ;;  %1432 = vperm.xlu1 %4314, %v5883_v29  }
 0x24f   : > { %v1173_v24 = vpop.xlane.xlu1 %1172 }
 0x250   : > { %v5893_v1 = vmax.f32 %v5885_v5, %v1173_v24  ;;  %v5915_v5 = vld [vmem:[#allocation2 + $0xb8] sm:$0xff] }
 0x251   : > { %7359 = vst [vmem:[#allocation35_spill] sm:$0xff] %v5915_v5 }
 0x252   : > { %7354 = vst [vmem:[#allocation30_spill] sm:$0xff] %v5893_v1  ;;  %2445 = vst.msk [vmem:[#allocation2 + $0xa0] sm:$0xff] %vm1879_vm4, %v5893_v1  ;;  %1437 = vperm.xlu0 %4315, %v5893_v1   ;;  %v5925_v1 = vld [vmem:[#allocation2 + $0xc0] sm:$0xff] }
 0x253   : > { %v1176_v36 = vpop.xlane.xlu1 %1175  ;;  %7361 = vst [vmem:[#allocation37_spill] sm:$0xff] %v5925_v1 }
 0x254   : > { %v5903_v47 = vmax.f32 %v5895_v23, %v1176_v36 }
 0x256   : > { %7356 = vst [vmem:[#allocation32_spill] sm:$0xff] %v5903_v47  ;;  %2446 = vst.msk [vmem:[#allocation2 + $0xa8] sm:$0xff] %vm1879_vm4, %v5903_v47  ;;  %1442 = vperm.xlu1 %4314, %v5903_v47  }
 0x257   : > { %v1179_v25 = vpop.xlane.xlu1 %1178 }
 0x258   : > { %v5913_v29 = vmax.f32 %v5905_v49, %v1179_v25  ;;  %v5935_v49 = vld [vmem:[#allocation2 + $0xc8] sm:$0xff] }
 0x259   : > { %7363 = vst [vmem:[#allocation39_spill] sm:$0xff] %v5935_v49 }
 0x25a   : > { %7358 = vst [vmem:[#allocation34_spill] sm:$0xff] %v5913_v29  ;;  %2447 = vst.msk [vmem:[#allocation2 + $0xb0] sm:$0xff] %vm1879_vm4, %v5913_v29  ;;  %1447 = vperm.xlu0 %4315, %v5913_v29   ;;  %v5945_v29 = vld [vmem:[#allocation2 + $0xd0] sm:$0xff] }
 0x25b   : > { %v1182_v24 = vpop.xlane.xlu1 %1181  ;;  %7365 = vst [vmem:[#allocation41_spill] sm:$0xff] %v5945_v29 }
 0x25c   : > { %v5923_v23 = vmax.f32 %v5915_v5, %v1182_v24 }
 0x25e   : > { %7360 = vst [vmem:[#allocation36_spill] sm:$0xff] %v5923_v23  ;;  %2448 = vst.msk [vmem:[#allocation2 + $0xb8] sm:$0xff] %vm1879_vm4, %v5923_v23  ;;  %1452 = vperm.xlu1 %4314, %v5923_v23  }
 0x25f   : > { %v1185_v36 = vpop.xlane.xlu1 %1184 }
 0x260   : > { %v5933_v47 = vmax.f32 %v5925_v1, %v1185_v36  ;;  %v5955_v1 = vld [vmem:[#allocation2 + $0xd8] sm:$0xff] }
 0x261   : > { %7367 = vst [vmem:[#allocation43_spill] sm:$0xff] %v5955_v1 }
 0x262   : > { %7362 = vst [vmem:[#allocation38_spill] sm:$0xff] %v5933_v47  ;;  %2449 = vst.msk [vmem:[#allocation2 + $0xc0] sm:$0xff] %vm1879_vm4, %v5933_v47  ;;  %1457 = vperm.xlu0 %4315, %v5933_v47   ;;  %v5965_v47 = vld [vmem:[#allocation2 + $0xe0] sm:$0xff] }
 0x263   : > { %v1188_v25 = vpop.xlane.xlu1 %1187  ;;  %7369 = vst [vmem:[#allocation45_spill] sm:$0xff] %v5965_v47 }
 0x264   : > { %v5943_v5 = vmax.f32 %v5935_v49, %v1188_v25 }
 0x266   : > { %7364 = vst [vmem:[#allocation40_spill] sm:$0xff] %v5943_v5  ;;  %2450 = vst.msk [vmem:[#allocation2 + $0xc8] sm:$0xff] %vm1879_vm4, %v5943_v5  ;;  %1462 = vperm.xlu1 %4314, %v5943_v5  }
 0x267   : > { %v1191_v24 = vpop.xlane.xlu1 %1190 }
 0x268   : > { %v5953_v23 = vmax.f32 %v5945_v29, %v1191_v24  ;;  %v5975_v29 = vld [vmem:[#allocation2 + $0xe8] sm:$0xff] }
 0x269   : > { %7371 = vst [vmem:[#allocation47_spill] sm:$0xff] %v5975_v29 }
 0x26a   : > { %7366 = vst [vmem:[#allocation42_spill] sm:$0xff] %v5953_v23  ;;  %2451 = vst.msk [vmem:[#allocation2 + $0xd0] sm:$0xff] %vm1879_vm4, %v5953_v23  ;;  %1467 = vperm.xlu0 %4315, %v5953_v23  }
 0x26b   : > { %v1194_v36 = vpop.xlane.xlu1 %1193 }
 0x26c   : > { %v5963_v49 = vmax.f32 %v5955_v1, %v1194_v36 }
 0x26e   : > { %7368 = vst [vmem:[#allocation44_spill] sm:$0xff] %v5963_v49  ;;  %2452 = vst.msk [vmem:[#allocation2 + $0xd8] sm:$0xff] %vm1879_vm4, %v5963_v49  ;;  %1472 = vperm.xlu1 %4314, %v5963_v49  }
 0x26f   : > { %v1197_v25 = vpop.xlane.xlu1 %1196 }
 0x270   : > { %v5973_v5 = vmax.f32 %v5965_v47, %v1197_v25 }
 0x272   : > { %7370 = vst [vmem:[#allocation46_spill] sm:$0xff] %v5973_v5  ;;  %2453 = vst.msk [vmem:[#allocation2 + $0xe0] sm:$0xff] %vm1879_vm4, %v5973_v5  ;;  %1477 = vperm.xlu0 %4315, %v5973_v5  }
 0x273   : > { %v1200_v24 = vpop.xlane.xlu1 %1199 }
 0x274   : > { %v5983_v1 = vmax.f32 %v5975_v29, %v1200_v24 }
 0x276   : > { %7372 = vst [vmem:[#allocation48_spill] sm:$0xff] %v5983_v1  ;;  %2454 = vst.msk [vmem:[#allocation2 + $0xe8] sm:$0xff] %vm1879_vm4, %v5983_v1  ;;  %1482 = vperm.xlu1 %4314, %v5983_v1  }
 0x281   : > { %v1338_v25 = vpop.permute.xlu1 %1337 }
 0x282   : > { %v1495_v36 = vsub.f32 %v5460_v51, %v1338_v25  ;;  %v1496_v47 = vsub.f32 %v5464_v52, %v1338_v25 }
 0x284   : > { %v1559_v23 = vmul.f32 1.442695, %v1495_v36  ;;  %v1561_v48 = vmul.f32 1.442695, %v1496_v47 }
 0x285   : > { %v1343_v5 = vpop.permute.xlu0 %1342 }
 0x286   : > { %4316 = vpow2.f32 %v1559_v23  ;;  %v1497_v24 = vsub.f32 %v5470_v54, %v1343_v5  ;;  %v1498_v27 = vsub.f32 %v5474_v55, %v1343_v5 }
 0x287   : > { %4318 = vpow2.f32 %v1561_v48 }
 0x288   : > { %v1563_v49 = vmul.f32 1.442695, %v1497_v24  ;;  %v1565_v29 = vmul.f32 1.442695, %v1498_v27 }
 0x289   : > { %v1348_v62 = vpop.permute.xlu0 %1347 }
 0x28a   : > { %4320 = vpow2.f32 %v1563_v49  ;;  %v1499_v1 = vsub.f32 %v5480_v57, %v1348_v62  ;;  %v1500_v8 = vsub.f32 %v5484_v58, %v1348_v62 }
 0x28b   : > { %4322 = vpow2.f32 %v1565_v29 }
 0x28c   : > { %v1567_v51 = vmul.f32 1.442695, %v1499_v1  ;;  %v1569_v52 = vmul.f32 1.442695, %v1500_v8 }
 0x28d   : > { %v1353_v36 = vpop.permute.xlu0 %1352 }
 0x28e   : > { %4324 = vpow2.f32 %v1567_v51  ;;  %v1501_v47 = vsub.f32 %v5490_v60, %v1353_v36  ;;  %v1502_v54 = vsub.f32 %v5494_v61, %v1353_v36 }
 0x28f   : > { %4326 = vpow2.f32 %v1569_v52 }
 0x290   : > { %v4317_v55 = vpop.eup %4316  ;;  %v1571_v48 = vmul.f32 1.442695, %v1501_v47  ;;  %v1573_v23 = vmul.f32 1.442695, %v1502_v54 }
 0x291   : > { %v4319_v27 = vpop.eup %4318  ;;  %v1358_v5 = vpop.permute.xlu0 %1357 }
 0x292   : > { %4328 = vpow2.f32 %v1571_v48  ;;  %v1503_v57 = vsub.f32 %v5500_v63, %v1358_v5  ;;  %v1504_v58 = vsub.f32 %v5504_v0, %v1358_v5  ;;  %2200 = vmatprep.mubr.f32.mxu1 %v4319_v27  ;;  %v6000_v1 = vadd.f32 %v4319_v27, %v4317_v55 }
 0x293   : > { %4330 = vpow2.f32 %v1573_v23  ;;  %2201 = vmatmul.mubr.f32.vlgmr.msra.gmra.mrb[0].mxu1 %v4317_v55 }
 0x294   : > { %v4321_v29 = vpop.eup %4320  ;;  %v1575_v60 = vmul.f32 1.442695, %v1503_v57  ;;  %v1577_v62 = vmul.f32 1.442695, %v1504_v58 }
 0x295   : > { %v4323_v61 = vpop.eup %4322  ;;  %v1363_v8 = vpop.permute.xlu0 %1362 }
 0x296   : > { %4332 = vpow2.f32 %v1575_v60  ;;  %v1505_v49 = vsub.f32 %v5510_v3, %v1363_v8  ;;  %v1506_v25 = vsub.f32 %v5514_v4, %v1363_v8  ;;  %2205 = vmatprep.mubr.f32.mxu1 %v4323_v61  ;;  %v6004_v24 = vadd.f32 %v4323_v61, %v4321_v29 }
 0x297   : > { %4334 = vpow2.f32 %v1577_v62  ;;  %2206 = vmatmul.mubr.f32.gmra.mrb[2].mxu1 %v4321_v29 }
 0x298   : > { %v4325_v63 = vpop.eup %4324  ;;  %v1579_v0 = vmul.f32 1.442695, %v1505_v49  ;;  %v1581_v51 = vmul.f32 1.442695, %v1506_v25 }
 0x299   : > { %v4327_v52 = vpop.eup %4326  ;;  %v1368_v36 = vpop.permute.xlu0 %1367 }
 0x29a   : > { %4336 = vpow2.f32 %v1579_v0  ;;  %v1507_v47 = vsub.f32 %v5520_v6, %v1368_v36  ;;  %v1508_v54 = vsub.f32 %v5524_v7, %v1368_v36  ;;  %2210 = vmatprep.mubr.f32.mxu1 %v4327_v52  ;;  %v6008_v55 = vadd.f32 %v4327_v52, %v4325_v63 }
 0x29b   : > { %4338 = vpow2.f32 %v1581_v51  ;;  %2211 = vmatmul.mubr.f32.gmra.mrb[4].mxu1 %v4325_v63 }
 0x29c   : > { %v4329_v3 = vpop.eup %4328  ;;  %v1583_v4 = vmul.f32 1.442695, %v1507_v47  ;;  %v1585_v48 = vmul.f32 1.442695, %v1508_v54 }
 0x29d   : > { %v4331_v23 = vpop.eup %4330  ;;  %v1373_v27 = vpop.permute.xlu0 %1372 }
 0x29e   : > { %4340 = vpow2.f32 %v1583_v4  ;;  %v1509_v5 = vsub.f32 %v5530_v9, %v1373_v27  ;;  %v1510_v57 = vsub.f32 %v5534_v10, %v1373_v27  ;;  %2215 = vmatprep.mubr.f32.mxu1 %v4331_v23  ;;  %v6012_v58 = vadd.f32 %v4331_v23, %v4329_v3 }
 0x29f   : > { %4342 = vpow2.f32 %v1585_v48  ;;  %2216 = vmatmul.mubr.f32.gmra.mrb[6].mxu1 %v4329_v3  ;;  %v7374_v48 = vsub.f32 %v5678_v45, %v5688_v53 }
 0x2a0   : > { %v4333_v6 = vpop.eup %4332  ;;  %v1587_v7 = vmul.f32 1.442695, %v1509_v5  ;;  %v1589_v29 = vmul.f32 1.442695, %v1510_v57 }
 0x2a1   : > { %v4335_v60 = vpop.eup %4334  ;;  %v1378_v62 = vpop.permute.xlu0 %1377  ;;  %v1273_v23 = vmul.f32 1.442695, %v7374_v48  ;;  %v7380_v48 = vsub.f32 %v5759_v26, %v5767_v31 }
 0x2a2   : > { %4344 = vpow2.f32 %v1587_v7  ;;  %v1511_v61 = vsub.f32 %v5540_v12, %v1378_v62  ;;  %v1512_v8 = vsub.f32 %v5544_v13, %v1378_v62  ;;  %2220 = vmatprep.mubr.f32.mxu1 %v4335_v60  ;;  %v6016_v49 = vadd.f32 %v4335_v60, %v4333_v6 }
 0x2a3   : > { %4346 = vpow2.f32 %v1589_v29  ;;  %2221 = vmatmul.mubr.f32.gmra.mrb[8].mxu1 %v4333_v6  ;;  %v7373_v13 = vsub.f32 %v5672_v42, %v5675_v44  ;;  %v7375_v44 = vsub.f32 %v5690_v56, %v5701_v17 }
 0x2a4   : > { %v4337_v9 = vpop.eup %4336  ;;  %v1591_v10 = vmul.f32 1.442695, %v1511_v61  ;;  %v1593_v25 = vmul.f32 1.442695, %v1512_v8 }
 0x2a5   : > { %v4339_v63 = vpop.eup %4338  ;;  %v1383_v0 = vpop.permute.xlu0 %1382  ;;  %v1271_v47 = vmul.f32 1.442695, %v7373_v13  ;;  %v1275_v57 = vmul.f32 1.442695, %v7375_v44 }
 0x2a6   : > { %4348 = vpow2.f32 %v1591_v10  ;;  %v1513_v51 = vsub.f32 %v5550_v15, %v1383_v0  ;;  %v1514_v52 = vsub.f32 %v5554_v16, %v1383_v0  ;;  %2225 = vmatprep.mubr.f32.mxu1 %v4339_v63  ;;  %v6020_v36 = vadd.f32 %v4339_v63, %v4337_v9 }
 0x2a7   : > { %4350 = vpow2.f32 %v1593_v25  ;;  %2226 = vmatmul.mubr.f32.gmra.mrb[10].mxu1 %v4337_v9  ;;  %v6045_v9 = vld [vmem:[#allocation2 + $0xf0] sm:$0xff]  ;;  %v4509_v25 = vld [vmem:[%s5458_s28 + $0x188] sm:$0xff] }
 0x2a8   : > { %v4341_v12 = vpop.eup %4340  ;;  %v1595_v54 = vmul.f32 1.442695, %v1513_v51  ;;  %v1597_v3 = vmul.f32 1.442695, %v1514_v52 }
 0x2a9   : > { %v4343_v4 = vpop.eup %4342  ;;  %v1388_v15 = vpop.permute.xlu0 %1387 }
 0x2aa   : > { %4352 = vpow2.f32 %v1595_v54  ;;  %v1515_v16 = vsub.f32 %v5560_v18, %v1388_v15  ;;  %v1516_v27 = vsub.f32 %v5564_v19, %v1388_v15  ;;  %2230 = vmatprep.mubr.f32.mxu1 %v4343_v4  ;;  %v6030_v5 = vadd.f32 %v4343_v4, %v4341_v12 }
 0x2ab   : > { %4354 = vpow2.f32 %v1597_v3  ;;  %2231 = vmatmul.mubr.f32.gmra.mrb[12].mxu1 %v4341_v12  ;;  %v7376_v18 = vsub.f32 %v5716_v33, %v5727_v39  ;;  %v7377_v33 = vsub.f32 %v5739_v46, %v5747_v50  ;;  %v7378_v46 = vsub.f32 %v5703_v20, %v5714_v32 }
 0x2ac   : > { %v4345_v42 = vpop.eup %4344  ;;  %4356 = vpow2.f32 %v1271_v47  ;;  %v1599_v6 = vmul.f32 1.442695, %v1515_v16  ;;  %v1601_v45 = vmul.f32 1.442695, %v1516_v27  ;;  %v7379_v3 = vsub.f32 %v5729_v40, %v5737_v43  ;;  %v6063_v16 = vld [vmem:[#allocation2 + $0xf8] sm:$0xff]  ;;  %v4510_v27 = vld [vmem:[%s5458_s28 + $0x1a0] sm:$0xff] }
 0x2ad   : > { %v4347_v53 = vpop.eup %4346  ;;  %4358 = vpow2.f32 %v1273_v23  ;;  %v1279_v7 = vmul.f32 1.442695, %v7376_v18  ;;  %v1393_v19 = vpop.permute.xlu0 %1392  ;;  %v1283_v39 = vmul.f32 1.442695, %v7377_v33  ;;  %v1277_v50 = vmul.f32 1.442695, %v7378_v46 }
 0x2ae   : > { %4360 = vpow2.f32 %v1599_v6  ;;  %v1517_v29 = vsub.f32 %v5570_v21, %v1393_v19  ;;  %v1518_v60 = vsub.f32 %v5574_v22, %v1393_v19  ;;  %2235 = vmatprep.mubr.f32.mxu1 %v4347_v53  ;;  %v6040_v62 = vadd.f32 %v4347_v53, %v4345_v42  ;;  %v4508_v22 = vld [vmem:[%s5458_s28 + $0x180] sm:$0xff]  ;;  %v4511_v43 = vld [vmem:[%s5458_s28 + $0x1a8] sm:$0xff] }
 0x2af   : > { %4362 = vpow2.f32 %v1601_v45  ;;  %2236 = vmatmul.mubr.f32.gmra.mrb[14].mxu1 %v4345_v42  ;;  %v1281_v4 = vmul.f32 1.442695, %v7379_v3  ;;  %v1287_v23 = vmul.f32 1.442695, %v7380_v48  ;;  %v4512_v33 = vld [vmem:[%s5458_s28 + $0x1c0] sm:$0xff]  ;;  %v4515_v46 = vld [vmem:[%s5458_s28 + $0x1e8] sm:$0xff] }
 0x2b0   : > { %v4349_v56 = vpop.eup %4348  ;;  %4364 = vpow2.f32 %v1275_v57  ;;  %v1603_v17 = vmul.f32 1.442695, %v1517_v29  ;;  %v1605_v61 = vmul.f32 1.442695, %v1518_v60  ;;  %v7382_v60 = vsub.f32 %v5779_v41, %v5790_v30 }
 0x2b1   : > { %v4351_v8 = vpop.eup %4350  ;;  %4366 = vpow2.f32 %v1279_v7  ;;  %v1398_v21 = vpop.permute.xlu0 %1397  ;;  %v7381_v7 = vsub.f32 %v5749_v59, %v5757_v14 }
 0x2b2   : > { %4368 = vpow2.f32 %v1603_v17  ;;  %v1519_v10 = vsub.f32 %v4508_v22, %v1398_v21  ;;  %v1520_v63 = vsub.f32 %v4509_v25, %v1398_v21  ;;  %2240 = vmatprep.mubr.f32.mxu1 %v4351_v8  ;;  %v6049_v0 = vadd.f32 %v4351_v8, %v4349_v56  ;;  %v4513_v21 = vld [vmem:[%s5458_s28 + $0x1c8] sm:$0xff] }
 0x2b3   : > { %4370 = vpow2.f32 %v1605_v61  ;;  %2241 = vmatmul.mubr.f32.gmra.mrb[16].mxu1 %v4349_v56  ;;  %v1203_v51 = vpop.xlane.xlu1 %1202  ;;  %v1285_v19 = vmul.f32 1.442695, %v7381_v7  ;;  %v1291_v56 = vmul.f32 1.442695, %v7382_v60  ;;  %v7383_v61 = vsub.f32 %v5805_v11, %v5813_v28  ;;  %v4514_v11 = vld [vmem:[%s5458_s28 + $0x1e0] sm:$0xff] }
 0x2b4   : > { %v4353_v52 = vpop.eup %4352  ;;  %v1607_v12 = vmul.f32 1.442695, %v1519_v10  ;;  %v1609_v13 = vmul.f32 1.442695, %v1520_v63  ;;  %v6055_v47 = vmax.f32 %v6045_v9, %v1203_v51  ;;  %4372 = vpow2.f32 %v1283_v39 }
 0x2b5   : > { %v4355_v54 = vpop.eup %4354  ;;  %v1403_v15 = vpop.permute.xlu0 %1402  ;;  %v1295_v8 = vmul.f32 1.442695, %v7383_v61  ;;  %v7389_v61 = vld [vmem:[#allocation22_spill] sm:$0xff] }
 0x2b6   : > { %v6065_v20 = vpop.eup %4356  ;;  %4374 = vpow2.f32 %v1607_v12  ;;  %2455 = vst.msk [vmem:[#allocation2 + $0xf0] sm:$0xff] %vm1879_vm4, %v6055_v47  ;;  %v1521_v40 = vsub.f32 %v4510_v27, %v1403_v15  ;;  %v1522_v42 = vsub.f32 %v4511_v43, %v1403_v15  ;;  %2245 = vmatprep.mubr.f32.mxu1 %v4355_v54  ;;  %1487 = vperm.xlu0 %4315, %v6055_v47  }
 0x2b7   : > { %v6074_v26 = vpop.eup %4358  ;;  %4376 = vpow2.f32 %v1609_v13  ;;  %2246 = vmatmul.mubr.f32.gmra.mrb[18].mxu1 %v4353_v52  ;;  %v1206_v31 = vpop.xlane.xlu1 %1205  ;;  %v6076_v44 = vadd.f32 %v4355_v54, %v4353_v52  ;;  %v7384_v54 = vsub.f32 %v5769_v34, %v5777_v38 }
 0x2b8   : > { %v4361_v57 = vpop.eup %4360  ;;  %4378 = vpow2.f32 %v1277_v50  ;;  %v1611_v6 = vmul.f32 1.442695, %v1521_v40  ;;  %v1613_v45 = vmul.f32 1.442695, %v1522_v42  ;;  %v6079_v53 = vmax.f32 %v6063_v16, %v1206_v31  ;;  %v4516_v42 = vld [vmem:[%s5458_s28 + $0x200] sm:$0xff] }
 0x2b9   : > { %v4363_v18 = vpop.eup %4362  ;;  %4380 = vpow2.f32 %v1281_v4  ;;  %v1289_v3 = vmul.f32 1.442695, %v7384_v54 }
 0x2ba   : > { %v6084_v29 = vpop.eup %4364  ;;  %4382 = vpow2.f32 %v1287_v23  ;;  %2456 = vst.msk [vmem:[#allocation2 + $0xf8] sm:$0xff] %vm1879_vm4, %v6079_v53  ;;  %2250 = vmatprep.mubr.f32.mxu1 %v4363_v18  ;;  %1951 = vperm.xlu0 %4315, %v6074_v26   ;;  %v6094_v59 = vadd.f32 %v4363_v18, %v4361_v57  ;;  %v7385_v23 = vsub.f32 %v5825_v2, %v5833_v35  ;;  %v7386_v2 = vld [vmem:[#allocation16_spill] sm:$0xff] }
 0x2bb   : > { %v6096_v14 = vpop.eup %4366  ;;  %4384 = vpow2.f32 %v1611_v6  ;;  %2251 = vmatmul.mubr.f32.gmra.mrb[20].mxu1 %v4361_v57  ;;  %1492 = vperm.xlu1 %4314, %v6079_v53   ;;  %v1408_v41 = vpop.permute.xlu1 %1407  ;;  %v4517_v57 = vld [vmem:[%s5458_s28 + $0x208] sm:$0xff] }
 0x2bc   : > { %v4369_v30 = vpop.eup %4368  ;;  %4386 = vpow2.f32 %v1613_v45  ;;  %v1523_v39 = vsub.f32 %v4512_v33, %v1408_v41  ;;  %v1524_v22 = vsub.f32 %v4513_v21, %v1408_v41  ;;  %v1299_v15 = vmul.f32 1.442695, %v7385_v23 }
 0x2bd   : > { %v4371_v10 = vpop.eup %4370  ;;  %4388 = vpow2.f32 %v1285_v19  ;;  %v1413_v25 = vpop.permute.xlu0 %1412  ;;  %v7387_v45 = vsub.f32 %v5792_v37, %v7386_v2 }
 0x2be   : > { %4390 = vpow2.f32 %v1291_v56  ;;  %v1615_v63 = vmul.f32 1.442695, %v1523_v39  ;;  %v1617_v28 = vmul.f32 1.442695, %v1524_v22  ;;  %v1525_v51 = vsub.f32 %v4514_v11, %v1413_v25  ;;  %2255 = vmatprep.mubr.f32.mxu1 %v4371_v10  ;;  %1966 = vperm.xlu0 %4315, %v6096_v14   ;;  %v6106_v52 = vpop.eup %4372  ;;  %v7388_v56 = vld [vmem:[#allocation21_spill] sm:$0xff]  ;;  %v4518_v39 = vld [vmem:[%s5458_s28 + $0x220] sm:$0xff] }
 0x2bf   : > { %4392 = vpow2.f32 %v1295_v8  ;;  %v1526_v50 = vsub.f32 %v4515_v46, %v1413_v25  ;;  %2256 = vmatmul.mubr.f32.gmra.mrb[22].mxu1 %v4369_v30  ;;  %1946 = vperm.xlu1 %4314, %v6065_v20   ;;  %v6110_v12 = vadd.f32 %v4371_v10, %v4369_v30  ;;  %v1293_v18 = vmul.f32 1.442695, %v7387_v45  ;;  %v4519_v22 = vld [vmem:[%s5458_s28 + $0x228] sm:$0xff] }
 0x2c0   : > { %v4375_v13 = vpop.eup %4374  ;;  %4394 = vpow2.f32 %v1615_v63  ;;  %v1619_v4 = vmul.f32 1.442695, %v1525_v51  ;;  %v7390_v8 = vsub.f32 %v7388_v56, %v7389_v61  ;;  %v7391_v46 = vld [vmem:[#allocation25_spill] sm:$0xff]  ;;  %v7398_v56 = vld [vmem:[#allocation30_spill] sm:$0xff] }
 0x2c1   : > { %v4377_v48 = vpop.eup %4376  ;;  %4396 = vpow2.f32 %v1617_v28  ;;  %v1621_v27 = vmul.f32 1.442695, %v1526_v50  ;;  %v1418_v40 = vpop.permute.xlu0 %1417  ;;  %v7392_v50 = vld [vmem:[#allocation26_spill] sm:$0xff] }
 0x2c2   : > { %v6118_v43 = vpop.eup %4378  ;;  %4398 = vpow2.f32 %v1619_v4  ;;  %v1527_v31 = vsub.f32 %v4516_v42, %v1418_v40  ;;  %v1528_v6 = vsub.f32 %v4517_v57, %v1418_v40  ;;  %2260 = vmatprep.mubr.f32.mxu1 %v4377_v48  ;;  %1976 = vperm.xlu0 %4315, %v6106_v52   ;;  %v6123_v34 = vadd.f32 %v4377_v48, %v4375_v13  ;;  %v4520_v48 = vld [vmem:[%s5458_s28 + $0x240] sm:$0xff]  ;;  %v7395_v57 = vld [vmem:[#allocation18_spill] sm:$0xff] }
 0x2c3   : > { %v6125_v38 = vpop.eup %4380  ;;  %4400 = vpow2.f32 %v1621_v27  ;;  %2261 = vmatmul.mubr.f32.gmra.mrb[24].mxu1 %v4375_v13  ;;  %1956 = vperm.xlu1 %4314, %v6084_v29   ;;  %v1303_v41 = vmul.f32 1.442695, %v7390_v8  ;;  %v7393_v13 = vsub.f32 %v7391_v46, %v7392_v50  ;;  %v7400_v46 = vld [vmem:[#allocation19_spill] sm:$0xff]  ;;  %v7401_v50 = vld [vmem:[#allocation20_spill] sm:$0xff] }
 0x2c4   : > { %v6128_v35 = vpop.eup %4382  ;;  %4402 = vpow2.f32 %v1289_v3  ;;  %v1623_v7 = vmul.f32 1.442695, %v1527_v31  ;;  %v1625_v19 = vmul.f32 1.442695, %v1528_v6  ;;  %v7394_v31 = vld [vmem:[#allocation17_spill] sm:$0xff] }
 0x2c5   : > { %v4385_v60 = vpop.eup %4384  ;;  %4404 = vpow2.f32 %v1299_v15  ;;  %v1423_v30 = vpop.permute.xlu0 %1422  ;;  %v1307_v54 = vmul.f32 1.442695, %v7393_v13  ;;  %v4521_v15 = vld [vmem:[%s5458_s28 + $0x248] sm:$0xff]  ;;  %v7396_v6 = vsub.f32 %v7394_v31, %v7395_v57  ;;  %v7402_v13 = vsub.f32 %v7400_v46, %v7401_v50  ;;  %v7411_v46 = vld [vmem:[#allocation38_spill] sm:$0xff] }
 0x2c6   : > { %v4387_v33 = vpop.eup %4386  ;;  %4406 = vpow2.f32 %v1623_v7  ;;  %v1529_v21 = vsub.f32 %v4518_v39, %v1423_v30  ;;  %v1530_v10 = vsub.f32 %v4519_v22, %v1423_v30  ;;  %1986 = vperm.xlu0 %4315, %v6128_v35  }
 0x2c7   : > { %v6139_v25 = vpop.eup %4388  ;;  %4408 = vpow2.f32 %v1625_v19  ;;  %2265 = vmatprep.mubr.f32.mxu1 %v4387_v33  ;;  %1961 = vperm.xlu1 %4314, %v6118_v43   ;;  %v6142_v37 = vadd.f32 %v4387_v33, %v4385_v60  ;;  %v1297_v2 = vmul.f32 1.442695, %v7396_v6  ;;  %v4522_v33 = vld [vmem:[%s5458_s28 + $0x260] sm:$0xff] }
 0x2c8   : > { %v6144_v63 = vpop.eup %4390  ;;  %4410 = vpow2.f32 %v1293_v18  ;;  %v1627_v28 = vmul.f32 1.442695, %v1529_v21  ;;  %v1629_v11 = vmul.f32 1.442695, %v1530_v10  ;;  %2266 = vmatmul.mubr.f32.gmra.mrb[26].mxu1 %v4385_v60  ;;  %v7397_v60 = vld [vmem:[#allocation29_spill] sm:$0xff]  ;;  %v4524_v6 = vld [vmem:[%s5458_s28 + $0x280] sm:$0xff] }
 0x2c9   : > { %v6146_v51 = vpop.eup %4392  ;;  %4412 = vpow2.f32 %v1303_v41  ;;  %v1428_v3 = vpop.permute.xlu0 %1427  ;;  %v7399_v61 = vsub.f32 %v7397_v60, %v7398_v56  ;;  %v4523_v21 = vld [vmem:[%s5458_s28 + $0x268] sm:$0xff]  ;;  %v7407_v56 = vld [vmem:[#allocation23_spill] sm:$0xff] }
 0x2ca   : > { %v4395_v4 = vpop.eup %4394  ;;  %4414 = vpow2.f32 %v1627_v28  ;;  %v1531_v23 = vsub.f32 %v4520_v48, %v1428_v3  ;;  %v1532_v27 = vsub.f32 %v4521_v15, %v1428_v3  ;;  %1996 = vperm.xlu0 %4315, %v6144_v63   ;;  %v7404_v15 = vld [vmem:[#allocation34_spill] sm:$0xff] }
 0x2cb   : > { %v4397_v40 = vpop.eup %4396  ;;  %4416 = vpow2.f32 %v1629_v11  ;;  %1971 = vperm.xlu1 %4314, %v6125_v38   ;;  %v1311_v8 = vmul.f32 1.442695, %v7399_v61  ;;  %v7408_v61 = vld [vmem:[#allocation24_spill] sm:$0xff] }
 0x2cc   : > { %v4399_v42 = vpop.eup %4398  ;;  %v1631_v45 = vmul.f32 1.442695, %v1531_v23  ;;  %v1633_v18 = vmul.f32 1.442695, %v1532_v27  ;;  %2270 = vmatprep.mubr.f32.mxu1 %v4397_v40  ;;  %v6158_v7 = vadd.f32 %v4397_v40, %v4395_v4  ;;  %4418 = vpow2.f32 %v1307_v54  ;;  %v7403_v23 = vld [vmem:[#allocation33_spill] sm:$0xff] }
 0x2cd   : > { %v4401_v19 = vpop.eup %4400  ;;  %2271 = vmatmul.mubr.f32.gmra.mrb[28].mxu1 %v4395_v4  ;;  %v1433_v41 = vpop.permute.xlu1 %1432  ;;  %v1301_v54 = vmul.f32 1.442695, %v7402_v13  ;;  %v7405_v27 = vsub.f32 %v7403_v23, %v7404_v15  ;;  %v4527_v23 = vld [vmem:[%s5458_s28 + $0x2a8] sm:$0xff] }
 0x2ce   : > { %v6163_v30 = vpop.eup %4402  ;;  %4420 = vpow2.f32 %v1631_v45  ;;  %2275 = vmatprep.mubr.f32.mxu1 %v4401_v19  ;;  %v1533_v39 = vsub.f32 %v4522_v33, %v1433_v41  ;;  %v1534_v22 = vsub.f32 %v4523_v21, %v1433_v41  ;;  %2006 = vperm.xlu0 %4315, %v6146_v51   ;;  %v6168_v10 = vadd.f32 %v4401_v19, %v4399_v42 }
 0x2cf   : > { %v6170_v28 = vpop.eup %4404  ;;  %4422 = vpow2.f32 %v1633_v18  ;;  %1981 = vperm.xlu1 %4314, %v6139_v25   ;;  %v1315_v40 = vmul.f32 1.442695, %v7405_v27 }
 0x2d0   : > { %v4407_v11 = vpop.eup %4406  ;;  %4424 = vpow2.f32 %v1297_v2  ;;  %v1635_v3 = vmul.f32 1.442695, %v1533_v39  ;;  %v1637_v4 = vmul.f32 1.442695, %v1534_v22  ;;  %v4525_v2 = vld [vmem:[%s5458_s28 + $0x288] sm:$0xff] }
 0x2d1   : > { %v4409_v48 = vpop.eup %4408  ;;  %4426 = vpow2.f32 %v1311_v8  ;;  %2276 = vmatmul.mubr.f32.gmra.mrb[30].mxu1 %v4399_v42  ;;  %v1438_v31 = vpop.permute.xlu0 %1437  ;;  %v7409_v8 = vsub.f32 %v7407_v56, %v7408_v61  ;;  %v7410_v22 = vld [vmem:[#allocation37_spill] sm:$0xff] }
 0x2d2   : > { %v6179_v57 = vpop.eup %4410  ;;  %4428 = vpow2.f32 %v1635_v3  ;;  %v1535_v45 = vsub.f32 %v4524_v6, %v1438_v31  ;;  %v1536_v18 = vsub.f32 %v4525_v2, %v1438_v31  ;;  %2280 = vmatprep.mubr.f32.mxu1 %v4409_v48  ;;  %2016 = vperm.xlu0 %4315, %v6170_v28   ;;  %v6184_v19 = vadd.f32 %v4409_v48, %v4407_v11  ;;  %v7415_v31 = vld [vmem:[#allocation28_spill] sm:$0xff]  ;;  %v7417_v61 = vld [vmem:[#allocation41_spill] sm:$0xff] }
 0x2d3   : > { %v6186_v60 = vpop.eup %4412  ;;  %4430 = vpow2.f32 %v1637_v4  ;;  %1991 = vperm.xlu1 %4314, %v6163_v30   ;;  %v1305_v41 = vmul.f32 1.442695, %v7409_v8  ;;  %v7412_v50 = vsub.f32 %v7410_v22, %v7411_v46  ;;  %v4526_v4 = vld [vmem:[%s5458_s28 + $0x2a0] sm:$0xff]  ;;  %v7418_v8 = vld [vmem:[#allocation42_spill] sm:$0xff] }
 0x2d4   : > { %7406 = vst [vmem:[#allocation16_spill] sm:$0xff] %v6186_v60  ;;  %v4415_v42 = vpop.eup %4414  ;;  %4432 = vpow2.f32 %v1301_v54  ;;  %v1639_v33 = vmul.f32 1.442695, %v1535_v45  ;;  %v1641_v39 = vmul.f32 1.442695, %v1536_v18  ;;  %v4528_v46 = vld [vmem:[%s5458_s28 + $0x2c0] sm:$0xff] }
 0x2d5   : > { %v4417_v21 = vpop.eup %4416  ;;  %4434 = vpow2.f32 %v1315_v40  ;;  %v1319_v13 = vmul.f32 1.442695, %v7412_v50  ;;  %2281 = vmatmul.mubr.f32.gmra.mrb[32].mxu1 %v4407_v11  ;;  %v1443_v3 = vpop.permute.xlu1 %1442  ;;  %v7414_v11 = vld [vmem:[#allocation27_spill] sm:$0xff] }
 0x2d6   : > { %4436 = vpow2.f32 %v1639_v33  ;;  %2285 = vmatprep.mubr.f32.mxu1 %v4417_v21  ;;  %v1537_v48 = vsub.f32 %v4526_v4, %v1443_v3  ;;  %v1538_v54 = vsub.f32 %v4527_v23, %v1443_v3  ;;  %2026 = vperm.xlu0 %4315, %v6186_v60   ;;  %v6198_v15 = vadd.f32 %v4417_v21, %v4415_v42  ;;  %v6200_v27 = vpop.eup %4418  ;;  %v7422_v23 = vld [vmem:[#allocation32_spill] sm:$0xff] }
 0x2d7   : > { %7413 = vst [vmem:[#allocation21_spill] sm:$0xff] %v6200_v27  ;;  %4438 = vpow2.f32 %v1641_v39  ;;  %2001 = vperm.xlu1 %4314, %v6179_v57   ;;  %v7416_v6 = vsub.f32 %v7414_v11, %v7415_v31  ;;  %v7419_v33 = vsub.f32 %v7417_v61, %v7418_v8  ;;  %v7424_v61 = vld [vmem:[#allocation45_spill] sm:$0xff] }
 0x2d8   : > { %v4421_v40 = vpop.eup %4420  ;;  %4440 = vpow2.f32 %v1305_v41  ;;  %v1643_v2 = vmul.f32 1.442695, %v1537_v48  ;;  %v1645_v18 = vmul.f32 1.442695, %v1538_v54  ;;  %v4529_v41 = vld [vmem:[%s5458_s28 + $0x2c8] sm:$0xff] }
 0x2d9   : > { %v1309_v45 = vmul.f32 1.442695, %v7416_v6  ;;  %v4423_v56 = vpop.eup %4422  ;;  %4442 = vpow2.f32 %v1319_v13  ;;  %v1323_v21 = vmul.f32 1.442695, %v7419_v33  ;;  %2286 = vmatmul.mubr.f32.gmra.mrb[34].mxu1 %v4415_v42  ;;  %v1448_v22 = vpop.permute.xlu0 %1447  ;;  %v7421_v13 = vld [vmem:[#allocation31_spill] sm:$0xff] }
 0x2da   : > { %v6209_v39 = vpop.eup %4424  ;;  %4444 = vpow2.f32 %v1643_v2  ;;  %v1539_v50 = vsub.f32 %v4528_v46, %v1448_v22  ;;  %v1540_v3 = vsub.f32 %v4529_v41, %v1448_v22  ;;  %2290 = vmatprep.mubr.f32.mxu1 %v4423_v56  ;;  %2036 = vperm.xlu0 %4315, %v6200_v27   ;;  %v6214_v4 = vadd.f32 %v4423_v56, %v4421_v40  ;;  %v7425_v56 = vld [vmem:[#allocation46_spill] sm:$0xff]  ;;  %v4530_v46 = vld [vmem:[%s5458_s28 + $0x2e0] sm:$0xff]  ;;  %v4531_v41 = vld [vmem:[%s5458_s28 + $0x2e8] sm:$0xff] }
 0x2db   : > { %v6216_v48 = vpop.eup %4426  ;;  %4446 = vpow2.f32 %v1645_v18  ;;  %2011 = vperm.xlu1 %4314, %v6209_v39   ;;  %v7423_v54 = vsub.f32 %v7421_v13, %v7422_v23  ;;  %v7426_v8 = vsub.f32 %v7424_v61, %v7425_v56  ;;  %v7429_v13 = vld [vmem:[#allocation36_spill] sm:$0xff]  ;;  %v4537_v27 = vld [vmem:[%s5458_s28 + $0x348] sm:$0xff] }
 0x2dc   : > { %7420 = vst [vmem:[#allocation22_spill] sm:$0xff] %v6216_v48  ;;  %v4429_v42 = vpop.eup %4428  ;;  %4448 = vpow2.f32 %v1309_v45  ;;  %v1647_v31 = vmul.f32 1.442695, %v1539_v50  ;;  %v1649_v6 = vmul.f32 1.442695, %v1540_v3  ;;  %v7428_v3 = vld [vmem:[#allocation35_spill] sm:$0xff] }
 0x2dd   : > { %v1313_v11 = vmul.f32 1.442695, %v7423_v54  ;;  %v4431_v2 = vpop.eup %4430  ;;  %4450 = vpow2.f32 %v1323_v21  ;;  %v1327_v33 = vmul.f32 1.442695, %v7426_v8  ;;  %2291 = vmatmul.mubr.f32.gmra.mrb[36].mxu1 %v4421_v40  ;;  %v1453_v22 = vpop.permute.xlu1 %1452  ;;  %v7430_v23 = vsub.f32 %v7428_v3, %v7429_v13 }
 0x2de   : > { %v6225_v18 = vpop.eup %4432  ;;  %4452 = vpow2.f32 %v1647_v31  ;;  %2295 = vmatprep.mubr.f32.mxu1 %v4431_v2  ;;  %v1541_v45 = vsub.f32 %v4530_v46, %v1453_v22  ;;  %v1542_v17 = vsub.f32 %v4531_v41, %v1453_v22  ;;  %2046 = vperm.xlu0 %4315, %v6216_v48   ;;  %v6230_v50 = vadd.f32 %v4431_v2, %v4429_v42  ;;  %v4532_v22 = vld [vmem:[%s5458_s28 + $0x300] sm:$0xff] }
 0x2df   : > { %v6232_v21 = vpop.eup %4434  ;;  %4454 = vpow2.f32 %v1649_v6  ;;  %2021 = vperm.xlu1 %4314, %v6225_v18   ;;  %v1317_v54 = vmul.f32 1.442695, %v7430_v23  ;;  %v4533_v6 = vld [vmem:[%s5458_s28 + $0x308] sm:$0xff] }
 0x2e0   : > { %7427 = vst [vmem:[#allocation25_spill] sm:$0xff] %v6232_v21  ;;  %v4437_v40 = vpop.eup %4436  ;;  %4456 = vpow2.f32 %v1313_v11  ;;  %v1651_v31 = vmul.f32 1.442695, %v1541_v45  ;;  %v1653_v61 = vmul.f32 1.442695, %v1542_v17 }
 0x2e1   : > { %v4439_v56 = vpop.eup %4438  ;;  %4458 = vpow2.f32 %v1327_v33  ;;  %2296 = vmatmul.mubr.f32.gmra.mrb[38].mxu1 %v4429_v42  ;;  %v1458_v8 = vpop.permute.xlu0 %1457  ;;  %v7432_v42 = vld [vmem:[#allocation39_spill] sm:$0xff]  ;;  %v7433_v33 = vld [vmem:[#allocation40_spill] sm:$0xff] }
 0x2e2   : > { %v6238_v2 = vpop.eup %4440  ;;  %4460 = vpow2.f32 %v1651_v31  ;;  %v1543_v46 = vsub.f32 %v4532_v22, %v1458_v8  ;;  %v1544_v41 = vsub.f32 %v4533_v6, %v1458_v8  ;;  %2300 = vmatprep.mubr.f32.mxu1 %v4439_v56  ;;  %2056 = vperm.xlu0 %4315, %v6232_v21   ;;  %v6243_v11 = vadd.f32 %v4439_v56, %v4437_v40  ;;  %v4534_v56 = vld [vmem:[%s5458_s28 + $0x320] sm:$0xff] }
 0x2e3   : > { %v6245_v3 = vpop.eup %4442  ;;  %4462 = vpow2.f32 %v1653_v61  ;;  %2031 = vperm.xlu1 %4314, %v6238_v2   ;;  %v7434_v45 = vsub.f32 %v7432_v42, %v7433_v33  ;;  %v4535_v61 = vld [vmem:[%s5458_s28 + $0x328] sm:$0xff] }
 0x2e4   : > { %7431 = vst [vmem:[#allocation26_spill] sm:$0xff] %v6245_v3  ;;  %v4445_v17 = vpop.eup %4444  ;;  %4464 = vpow2.f32 %v1317_v54  ;;  %v1655_v23 = vmul.f32 1.442695, %v1543_v46  ;;  %v1657_v31 = vmul.f32 1.442695, %v1544_v41  ;;  %v7436_v46 = vld [vmem:[#allocation43_spill] sm:$0xff] }
 0x2e5   : > { %v1321_v13 = vmul.f32 1.442695, %v7434_v45  ;;  %v4447_v8 = vpop.eup %4446  ;;  %2301 = vmatmul.mubr.f32.gmra.mrb[40].mxu1 %v4437_v40  ;;  %v1463_v22 = vpop.permute.xlu1 %1462  ;;  %v7437_v41 = vld [vmem:[#allocation44_spill] sm:$0xff] }
 0x2e6   : > { %v6251_v6 = vpop.eup %4448  ;;  %4466 = vpow2.f32 %v1655_v23  ;;  %2305 = vmatprep.mubr.f32.mxu1 %v4447_v8  ;;  %v1545_v32 = vsub.f32 %v4534_v56, %v1463_v22  ;;  %v1546_v21 = vsub.f32 %v4535_v61, %v1463_v22  ;;  %2066 = vperm.xlu0 %4315, %v6245_v3   ;;  %v6256_v54 = vadd.f32 %v4447_v8, %v4445_v17  ;;  %v4536_v8 = vld [vmem:[%s5458_s28 + $0x340] sm:$0xff] }
 0x2e7   : > { %v6258_v42 = vpop.eup %4450  ;;  %4468 = vpow2.f32 %v1657_v31  ;;  %2041 = vperm.xlu1 %4314, %v6251_v6   ;;  %v7438_v33 = vsub.f32 %v7436_v46, %v7437_v41 }
 0x2e8   : > { %7435 = vst [vmem:[#allocation17_spill] sm:$0xff] %v6258_v42  ;;  %v4453_v40 = vpop.eup %4452  ;;  %4470 = vpow2.f32 %v1321_v13  ;;  %v1659_v23 = vmul.f32 1.442695, %v1545_v32  ;;  %v1661_v56 = vmul.f32 1.442695, %v1546_v21  ;;  %v7441_v21 = vld [vmem:[#allocation47_spill] sm:$0xff] }
 0x2e9   : > { %v1325_v45 = vmul.f32 1.442695, %v7438_v33  ;;  %v4455_v22 = vpop.eup %4454  ;;  %2306 = vmatmul.mubr.f32.gmra.mrb[42].mxu1 %v4445_v17  ;;  %v1468_v61 = vpop.permute.xlu0 %1467  ;;  %v7442_v17 = vld [vmem:[#allocation48_spill] sm:$0xff] }
 0x2ea   : > { %v6264_v3 = vpop.eup %4456  ;;  %4472 = vpow2.f32 %v1659_v23  ;;  %v1547_v48 = vsub.f32 %v4536_v8, %v1468_v61  ;;  %v1548_v31 = vsub.f32 %v4537_v27, %v1468_v61  ;;  %2310 = vmatprep.mubr.f32.mxu1 %v4455_v22  ;;  %2076 = vperm.xlu0 %4315, %v6258_v42   ;;  %v6269_v13 = vadd.f32 %v4455_v22, %v4453_v40  ;;  %v4538_v22 = vld [vmem:[%s5458_s28 + $0x360] sm:$0xff] }
 0x2eb   : > { %7439 = vst [vmem:[#allocation18_spill] sm:$0xff] %v6264_v3  ;;  %v6271_v46 = vpop.eup %4458  ;;  %4474 = vpow2.f32 %v1661_v56  ;;  %2051 = vperm.xlu1 %4314, %v6264_v3   ;;  %v7443_v41 = vsub.f32 %v7441_v21, %v7442_v17  ;;  %v4539_v56 = vld [vmem:[%s5458_s28 + $0x368] sm:$0xff] }
 0x2ec   : > { %7440 = vst [vmem:[#allocation29_spill] sm:$0xff] %v6271_v46  ;;  %v4461_v32 = vpop.eup %4460  ;;  %4476 = vpow2.f32 %v1325_v45  ;;  %v1663_v23 = vmul.f32 1.442695, %v1547_v48  ;;  %v1665_v27 = vmul.f32 1.442695, %v1548_v31 }
 0x2ed   : > { %v1329_v33 = vmul.f32 1.442695, %v7443_v41  ;;  %v4463_v61 = vpop.eup %4462  ;;  %2311 = vmatmul.mubr.f32.gmra.mrb[44].mxu1 %v4453_v40  ;;  %v1473_v8 = vpop.permute.xlu1 %1472 }
 0x2ee   : > { %v6277_v42 = vpop.eup %4464  ;;  %4478 = vpow2.f32 %v1663_v23  ;;  %2315 = vmatprep.mubr.f32.mxu1 %v4463_v61  ;;  %v1549_v60 = vsub.f32 %v4538_v22, %v1473_v8  ;;  %v1550_v3 = vsub.f32 %v4539_v56, %v1473_v8  ;;  %2086 = vperm.xlu0 %4315, %v6271_v46   ;;  %v6282_v45 = vadd.f32 %v4463_v61, %v4461_v32  ;;  %v4540_v23 = vld [vmem:[%s5458_s28 + $0x380] sm:$0xff]  ;;  %v4541_v22 = vld [vmem:[%s5458_s28 + $0x388] sm:$0xff] }
 0x2ef   : > { %7444 = vst [vmem:[#allocation30_spill] sm:$0xff] %v6277_v42  ;;  %4480 = vpow2.f32 %v1665_v27  ;;  %2061 = vperm.xlu1 %4314, %v6277_v42  }
 0x2f0   : > { %v4467_v48 = vpop.eup %4466  ;;  %4482 = vpow2.f32 %v1329_v33  ;;  %v1667_v40 = vmul.f32 1.442695, %v1549_v60  ;;  %v1669_v31 = vmul.f32 1.442695, %v1550_v3 }
 0x2f1   : > { %v4469_v21 = vpop.eup %4468  ;;  %2316 = vmatmul.mubr.f32.gmra.mrb[46].mxu1 %v4461_v32  ;;  %v1478_v17 = vpop.permute.xlu0 %1477 }
 0x2f2   : > { %v6285_v41 = vpop.eup %4470  ;;  %4484 = vpow2.f32 %v1667_v40  ;;  %v1551_v8 = vsub.f32 %v4540_v23, %v1478_v17  ;;  %v1552_v56 = vsub.f32 %v4541_v22, %v1478_v17  ;;  %2320 = vmatprep.mubr.f32.mxu1 %v4469_v21  ;;  %v6289_v27 = vadd.f32 %v4469_v21, %v4467_v48  ;;  %v4542_v40 = vld [vmem:[%s5458_s28 + $0x3a0] sm:$0xff]  ;;  %v4543_v17 = vld [vmem:[%s5458_s28 + $0x3a8] sm:$0xff] }
 0x2f3   : > { %4486 = vpow2.f32 %v1669_v31  ;;  %2071 = vperm.xlu1 %4314, %v6285_v41  }
 0x2f4   : > { %v4473_v60 = vpop.eup %4472  ;;  %v1671_v3 = vmul.f32 1.442695, %v1551_v8  ;;  %v1673_v33 = vmul.f32 1.442695, %v1552_v56 }
 0x2f5   : > { %v4475_v32 = vpop.eup %4474  ;;  %2321 = vmatmul.mubr.f32.gmra.mrb[48].mxu1 %v4467_v48  ;;  %v1483_v61 = vpop.permute.xlu1 %1482 }
 0x2f6   : > { %v6292_v46 = vpop.eup %4476  ;;  %4488 = vpow2.f32 %v1671_v3  ;;  %2325 = vmatprep.mubr.f32.mxu1 %v4475_v32  ;;  %v1553_v23 = vsub.f32 %v4542_v40, %v1483_v61  ;;  %v1554_v22 = vsub.f32 %v4543_v17, %v1483_v61  ;;  %v6296_v42 = vadd.f32 %v4475_v32, %v4473_v60 }
 0x2f7   : > { %4490 = vpow2.f32 %v1673_v33  ;;  %2081 = vperm.xlu1 %4314, %v6292_v46  }
 0x2f8   : > { %v4479_v31 = vpop.eup %4478  ;;  %v1675_v21 = vmul.f32 1.442695, %v1553_v23  ;;  %v1677_v8 = vmul.f32 1.442695, %v1554_v22 }
 0x2f9   : > { %v4481_v56 = vpop.eup %4480  ;;  %2326 = vmatmul.mubr.f32.gmra.mrb[50].mxu1 %v4473_v60 }
 0x2fa   : > { %v6299_v48 = vpop.eup %4482  ;;  %4492 = vpow2.f32 %v1675_v21  ;;  %2330 = vmatprep.mubr.f32.mxu1 %v4481_v56  ;;  %v6301_v3 = vadd.f32 %v4481_v56, %v4479_v31 }
 0x2fb   : > { %4494 = vpow2.f32 %v1677_v8  ;;  %2091 = vperm.xlu1 %4314, %v6299_v48  }
 0x2fc   : > { %v4485_v61 = vpop.eup %4484 }
 0x2fd   : > { %v4487_v32 = vpop.eup %4486  ;;  %2331 = vmatmul.mubr.f32.gmra.mrb[52].mxu1 %v4479_v31 }
 0x2fe   : > { %2335 = vmatprep.mubr.f32.mxu1 %v4487_v32  ;;  %v1832_v33 = vadd.f32 %v4487_v32, %v4485_v61 }
 0x300   : > { %v4489_v40 = vpop.eup %4488 }
 0x301   : > { %v4491_v17 = vpop.eup %4490  ;;  %2336 = vmatmul.mubr.f32.gmra.mrb[54].mxu1 %v4485_v61 }
 0x302   : > { %2340 = vmatprep.mubr.f32.mxu1 %v4491_v17  ;;  %v6304_v23 = vadd.f32 %v4491_v17, %v4489_v40  ;;  %v1912_v17 = vld [vmem:[#allocation4] sm:$0xff] }
 0x304   : > { %v4493_v60 = vpop.eup %4492 }
 0x305   : > { %v4495_v22 = vpop.eup %4494  ;;  %2341 = vmatmul.mubr.f32.gmra.mrb[56].mxu1 %v4489_v40 }
 0x306   : > { %2345 = vmatprep.mubr.f32.mxu1 %v4495_v22  ;;  %v1838_v21 = vadd.f32 %v4495_v22, %v4493_v60 }
 0x309   : > { %2346 = vmatmul.mubr.f32.gmra.mrb[58].mxu1 %v4493_v60 }
 0x30d   : > { %1752 = vadd.xlane.f32.xlu0 %v6000_v1 }
 0x311   : > { %1758 = vadd.xlane.f32.xlu0 %v6008_v55 }
 0x315   : > { %1761 = vadd.xlane.f32.xlu0 %v6012_v58  ;;  %v4545_v58 = vld [vmem:[%s5458_s28 + $0x3c8] sm:$0xff] }
 0x319   : > { %1767 = vadd.xlane.f32.xlu0 %v6020_v36 }
 0x31d   : > { %1773 = vadd.xlane.f32.xlu0 %v6040_v62 }
 0x31f   : > { %1755 = vadd.xlane.f32.xlu1 %v6004_v24  ;;  %v4544_v24 = vld [vmem:[%s5458_s28 + $0x3c0] sm:$0xff] }
 0x321   : > { %1779 = vadd.xlane.f32.xlu0 %v6076_v44 }
 0x323   : > { %1764 = vadd.xlane.f32.xlu1 %v6016_v49 }
 0x325   : > { %1785 = vadd.xlane.f32.xlu0 %v6110_v12 }
 0x327   : > { %1770 = vadd.xlane.f32.xlu1 %v6030_v5 }
 0x329   : > { %1791 = vadd.xlane.f32.xlu0 %v6142_v37 }
 0x32b   : > { %1776 = vadd.xlane.f32.xlu1 %v6049_v0  ;;  %v4546_v0 = vld [vmem:[%s5458_s28 + $0x3e0] sm:$0xff] }
 0x32d   : > { %1797 = vadd.xlane.f32.xlu0 %v6168_v10 }
 0x32f   : > { %1782 = vadd.xlane.f32.xlu1 %v6094_v59  ;;  %v4547_v59 = vld [vmem:[%s5458_s28 + $0x3e8] sm:$0xff] }
 0x331   : > { %1803 = vadd.xlane.f32.xlu0 %v6198_v15 }
 0x333   : > { %1788 = vadd.xlane.f32.xlu1 %v6123_v34 }
 0x335   : > { %v1488_v1 = vpop.permute.xlu0 %1487  ;;  %1809 = vadd.xlane.f32.xlu0 %v6230_v50 }
 0x336   : > { %v1555_v55 = vsub.f32 %v4544_v24, %v1488_v1  ;;  %v1556_v49 = vsub.f32 %v4545_v58, %v1488_v1  ;;  %v1914_v24 = vld [vmem:[#allocation4 + $0x10] sm:$0xff] }
 0x337   : > { %1794 = vadd.xlane.f32.xlu1 %v6158_v7 }
 0x338   : > { %v1679_v36 = vmul.f32 1.442695, %v1555_v55  ;;  %v1681_v5 = vmul.f32 1.442695, %v1556_v49 }
 0x339   : > { %1815 = vadd.xlane.f32.xlu0 %v6256_v54  ;;  %v1952_v50 = vpop.permute.xlu0 %1951 }
 0x33a   : > { %4496 = vpow2.f32 %v1679_v36  ;;  %v1493_v62 = vpop.permute.xlu1 %1492 }
 0x33b   : > { %4498 = vpow2.f32 %v1681_v5  ;;  %v1557_v44 = vsub.f32 %v4546_v0, %v1493_v62  ;;  %v1558_v12 = vsub.f32 %v4547_v59, %v1493_v62  ;;  %1800 = vadd.xlane.f32.xlu1 %v6184_v19  ;;  %v1915_v0 = vld [vmem:[#allocation4 + $0x18] sm:$0xff] }
 0x33d   : > { %v1683_v34 = vmul.f32 1.442695, %v1557_v44  ;;  %v1685_v37 = vmul.f32 1.442695, %v1558_v12  ;;  %1821 = vadd.xlane.f32.xlu0 %v6282_v45 }
 0x33f   : > { %4500 = vpow2.f32 %v1683_v34  ;;  %1806 = vadd.xlane.f32.xlu1 %v6214_v4 }
 0x340   : > { %4502 = vpow2.f32 %v1685_v37 }
 0x341   : > { %1827 = vadd.xlane.f32.xlu0 %v6296_v42  ;;  %v1967_v42 = vpop.permute.xlu0 %1966 }
 0x343   : > { %1812 = vadd.xlane.f32.xlu1 %v6243_v11  ;;  %v1947_v11 = vpop.permute.xlu1 %1946 }
 0x344   : > { %v4497_v7 = vpop.eup %4496 }
 0x345   : > { %v4499_v10 = vpop.eup %4498  ;;  %1833 = vadd.xlane.f32.xlu0 %v1832_v33  ;;  %v1977_v45 = vpop.permute.xlu0 %1976 }
 0x346   : > { %2350 = vmatprep.mubr.f32.mxu1 %v4499_v10  ;;  %v1841_v15 = vadd.f32 %v4499_v10, %v4497_v7 }
 0x347   : > { %1818 = vadd.xlane.f32.xlu1 %v6269_v13  ;;  %2351 = vmatmul.mubr.f32.gmra.mrb[60].mxu1 %v4497_v7  ;;  %v7445_v13 = vsub.f32 %v6045_v9, %v6055_v47  ;;  %v1957_v8 = vpop.permute.xlu1 %1956  ;;  %v2104_v9 = vmul.f32 %v1947_v11, %v1912_v17  ;;  %v1916_v7 = vld [vmem:[#allocation4 + $0x20] sm:$0xff] }
 0x348   : > { %v2106_v62 = vmul.f32 %v1957_v8, %v1914_v24 }
 0x349   : > { %v4501_v19 = vpop.eup %4500  ;;  %1839 = vadd.xlane.f32.xlu0 %v1838_v21  ;;  %v1331_v31 = vmul.f32 1.442695, %v7445_v13  ;;  %v6344_v61 = vpop.permute.xlu0 %1986 }
 0x34a   : > { %v4503_v54 = vpop.eup %4502 }
 0x34b   : > { %2355 = vmatprep.mubr.f32.mxu1 %v4503_v54  ;;  %1824 = vadd.xlane.f32.xlu1 %v6289_v27  ;;  %v1844_v4 = vadd.f32 %v4503_v54, %v4501_v19  ;;  %4504 = vpow2.f32 %v1331_v31  ;;  %v7446_v27 = vsub.f32 %v6063_v16, %v6079_v53  ;;  %v1962_v32 = vpop.permute.xlu1 %1961  ;;  %v2108_v54 = vmul.f32 %v1967_v42, %v1916_v7  ;;  %v1919_v42 = vld [vmem:[#allocation4 + $0x38] sm:$0xff] }
 0x34c   : > { %2356 = vmatmul.mubr.f32.gmra.mrb[62].mxu1 %v4501_v19  ;;  %v2107_v34 = vmul.f32 %v1962_v32, %v1915_v0  ;;  %v1918_v32 = vld [vmem:[#allocation4 + $0x30] sm:$0xff] }
 0x34d   : > { %1845 = vadd.xlane.f32.xlu0 %v1844_v4  ;;  %v1333_v56 = vmul.f32 1.442695, %v7446_v27  ;;  %v6346_v33 = vpop.permute.xlu0 %1996  ;;  %v1917_v4 = vld [vmem:[#allocation4 + $0x28] sm:$0xff] }
 0x34f   : > { %1830 = vadd.xlane.f32.xlu1 %v6301_v3  ;;  %4506 = vpow2.f32 %v1333_v56  ;;  %v1972_v3 = vpop.permute.xlu1 %1971 }
 0x350   : > { %v2109_v56 = vmul.f32 %v1972_v3, %v1917_v4  ;;  %v1920_v3 = vld [vmem:[#allocation4 + $0x40] sm:$0xff] }
 0x351   : > { %v6351_v47 = vpop.permute.xlu0 %2006 }
 0x353   : > { %1836 = vadd.xlane.f32.xlu1 %v6304_v23  ;;  %v1913_v23 = vld [vmem:[#allocation4 + $0x8] sm:$0xff]  ;;  %v1982_v60 = vpop.permute.xlu1 %1981 }
 0x354   : > { %v2105_v1 = vmul.f32 %v1952_v50, %v1913_v23 }
 0x355   : > { %v6348_v40 = vpop.eup %4504  ;;  %v6357_v58 = vpop.permute.xlu0 %2016 }
 0x357   : > { %1842 = vadd.xlane.f32.xlu1 %v1841_v15  ;;  %v1992_v5 = vpop.permute.xlu1 %1991 }
 0x359   : > { %v6353_v16 = vpop.eup %4506  ;;  %v6360_v37 = vpop.permute.xlu0 %2026 }
 0x35b   : > { %v2002_v10 = vpop.permute.xlu1 %2001 }
 0x35d   : > { %v6364_v13 = vpop.permute.xlu0 %2036 }
 0x35f   : > { %v2012_v27 = vpop.permute.xlu1 %2011 }
 0x363   : > { %2096 = vperm.xlu0 %4315, %v6348_v40  }
 0x366   : > { %v2202_v22 = vpop.f32.mrb[0].mxu1 }
 0x367   : > { %v2361_v53 = vadd.f32 %v2202_v22, %v2104_v9  ;;  %v2204_v21 = vpop.f32.mrb[1].mxu1  ;;  %v2110_v22 = vmul.f32 %v1977_v45, %v1918_v32 }
 0x368   : > { %2101 = vperm.xlu1 %4314, %v6353_v16   ;;  %v6370_v21 = vpop.permute.xlu1 %2021 }
 0x369   : > { %2393 = vst.msk [vmem:[#allocation4] sm:$0xff] %vm560_vm2, %v2361_v53  ;;  %v6367_v53 = vpop.permute.xlu0 %2046 }
 0x36a   : > { %v2207_v55 = vpop.f32.mrb[2].mxu1 }
 0x36b   : > { %v2362_v49 = vadd.f32 %v2207_v55, %v2105_v1  ;;  %v2209_v36 = vpop.f32.mrb[3].mxu1 }
 0x36c   : > { %v6375_v45 = vpop.permute.xlu1 %2031 }
 0x36d   : > { %2394 = vst.msk [vmem:[#allocation4 + $0x8] sm:$0xff] %vm560_vm2, %v2362_v49  ;;  %v2111_v49 = vmul.f32 %v1982_v60, %v1919_v42 }
 0x36e   : > { %v2212_v44 = vpop.f32.mrb[4].mxu1 }
 0x36f   : > { %v2363_v59 = vadd.f32 %v2212_v44, %v2106_v62  ;;  %v2214_v12 = vpop.f32.mrb[5].mxu1  ;;  %v6373_v62 = vpop.permute.xlu0 %2056 }
 0x370   : > { %v1921_v12 = vld [vmem:[#allocation4 + $0x48] sm:$0xff] }
 0x371   : > { %2395 = vst.msk [vmem:[#allocation4 + $0x10] sm:$0xff] %vm560_vm2, %v2363_v59  ;;  %v2112_v59 = vmul.f32 %v6344_v61, %v1920_v3  ;;  %v1923_v61 = vld [vmem:[#allocation4 + $0x58] sm:$0xff] }
 0x372   : > { %v2217_v15 = vpop.f32.mrb[6].mxu1 }
 0x373   : > { %v2364_v50 = vadd.f32 %v2217_v15, %v2107_v34  ;;  %v2219_v19 = vpop.f32.mrb[7].mxu1  ;;  %v6379_v60 = vpop.permute.xlu0 %2066 }
 0x374   : > { %v1922_v19 = vld [vmem:[#allocation4 + $0x50] sm:$0xff] }
 0x375   : > { %2396 = vst.msk [vmem:[#allocation4 + $0x18] sm:$0xff] %vm560_vm2, %v2364_v50  ;;  %v2113_v50 = vmul.f32 %v1992_v5, %v1921_v12 }
 0x376   : > { %v2222_v11 = vpop.f32.mrb[8].mxu1 }
 0x377   : > { %v2365_v31 = vadd.f32 %v2222_v11, %v2108_v54  ;;  %v2224_v8 = vpop.f32.mrb[9].mxu1  ;;  %v6382_v54 = vpop.permute.xlu1 %2041 }
 0x378   : > { %v2114_v8 = vmul.f32 %v6346_v33, %v1922_v19  ;;  %v6386_v32 = vpop.permute.xlu0 %2076 }
 0x379   : > { %2397 = vst.msk [vmem:[#allocation4 + $0x20] sm:$0xff] %vm560_vm2, %v2365_v31 }
 0x37a   : > { %v2227_v17 = vpop.f32.mrb[10].mxu1 }
 0x37b   : > { %v2366_v9 = vadd.f32 %v2227_v17, %v2109_v56  ;;  %v2229_v23 = vpop.f32.mrb[11].mxu1 }
 0x37c   : > { %v2115_v23 = vmul.f32 %v2002_v10, %v1923_v61  ;;  %v6392_v33 = vpop.permute.xlu0 %2086  ;;  %v1690_v61 = vld [vmem:[#allocation3 + $0x18] sm:$0xff] }
 0x37d   : > { %2398 = vst.msk [vmem:[#allocation4 + $0x28] sm:$0xff] %vm560_vm2, %v2366_v9  ;;  %v6388_v9 = vpop.permute.xlu1 %2051 }
 0x37e   : > { %v2232_v1 = vpop.f32.mrb[12].mxu1 }
 0x37f   : > { %v2367_v24 = vadd.f32 %v2232_v1, %v2110_v22  ;;  %v2234_v55 = vpop.f32.mrb[13].mxu1  ;;  %v1924_v22 = vld [vmem:[#allocation4 + $0x60] sm:$0xff] }
 0x380   : > { %v2116_v55 = vmul.f32 %v6351_v47, %v1924_v22  ;;  %v1722_v22 = vmul.f32 %v6118_v43, %v1690_v61  ;;  %v1930_v61 = vld [vmem:[#allocation4 + $0x90] sm:$0xff] }
 0x381   : > { %2399 = vst.msk [vmem:[#allocation4 + $0x30] sm:$0xff] %vm560_vm2, %v2367_v24 }
 0x382   : > { %v2237_v36 = vpop.f32.mrb[14].mxu1 }
 0x383   : > { %v2368_v0 = vadd.f32 %v2237_v36, %v2111_v49  ;;  %v2239_v44 = vpop.f32.mrb[15].mxu1  ;;  %v6395_v49 = vpop.permute.xlu1 %2061  ;;  %v1687_v36 = vld [vmem:[#allocation3] sm:$0xff] }
 0x384   : > { %v1719_v10 = vmul.f32 %v6065_v20, %v1687_v36 }
 0x385   : > { %2400 = vst.msk [vmem:[#allocation4 + $0x38] sm:$0xff] %vm560_vm2, %v2368_v0  ;;  %v1925_v0 = vld [vmem:[#allocation4 + $0x68] sm:$0xff] }
 0x386   : > { %v2242_v34 = vpop.f32.mrb[16].mxu1  ;;  %v2117_v12 = vmul.f32 %v2012_v27, %v1925_v0 }
 0x387   : > { %v2369_v7 = vadd.f32 %v2242_v34, %v2112_v59  ;;  %v2244_v15 = vpop.f32.mrb[17].mxu1  ;;  %v6399_v19 = vpop.permute.xlu1 %2071 }
 0x389   : > { %2401 = vst.msk [vmem:[#allocation4 + $0x40] sm:$0xff] %vm560_vm2, %v2369_v7  ;;  %v1689_v7 = vld [vmem:[#allocation3 + $0x10] sm:$0xff] }
 0x38a   : > { %v2247_v4 = vpop.f32.mrb[18].mxu1 }
 0x38b   : > { %v2370_v11 = vadd.f32 %v2247_v4, %v2113_v50  ;;  %v2249_v31 = vpop.f32.mrb[19].mxu1  ;;  %v1926_v50 = vld [vmem:[#allocation4 + $0x70] sm:$0xff] }
 0x38c   : > { %v1721_v31 = vmul.f32 %v6084_v29, %v1689_v7  ;;  %v2118_v20 = vmul.f32 %v6357_v58, %v1926_v50 }
 0x38d   : > { %2402 = vst.msk [vmem:[#allocation4 + $0x48] sm:$0xff] %vm560_vm2, %v2370_v11 }
 0x38e   : > { %v2252_v56 = vpop.f32.mrb[20].mxu1 }
 0x38f   : > { %v2371_v17 = vadd.f32 %v2252_v56, %v2114_v8  ;;  %v2254_v5 = vpop.f32.mrb[21].mxu1  ;;  %v1927_v56 = vld [vmem:[#allocation4 + $0x78] sm:$0xff] }
 0x390   : > { %v2119_v29 = vmul.f32 %v6370_v21, %v1927_v56  ;;  %v1691_v56 = vld [vmem:[#allocation3 + $0x20] sm:$0xff] }
 0x391   : > { %2403 = vst.msk [vmem:[#allocation4 + $0x50] sm:$0xff] %vm560_vm2, %v2371_v17 }
 0x392   : > { %v2257_v42 = vpop.f32.mrb[22].mxu1 }
 0x393   : > { %v2372_v1 = vadd.f32 %v2257_v42, %v2115_v23  ;;  %v2259_v24 = vpop.f32.mrb[23].mxu1  ;;  %v6407_v42 = vpop.permute.xlu1 %2081 }
 0x394   : > { %v1692_v24 = vld [vmem:[#allocation3 + $0x28] sm:$0xff] }
 0x395   : > { %2404 = vst.msk [vmem:[#allocation4 + $0x58] sm:$0xff] %vm560_vm2, %v2372_v1 }
 0x396   : > { %v2262_v3 = vpop.f32.mrb[24].mxu1 }
 0x397   : > { %v2373_v44 = vadd.f32 %v2262_v3, %v2116_v55  ;;  %v2264_v59 = vpop.f32.mrb[25].mxu1  ;;  %v1928_v3 = vld [vmem:[#allocation4 + $0x80] sm:$0xff]  ;;  %v6415_v21 = vpop.permute.xlu1 %2091 }
 0x398   : > { %v2120_v43 = vmul.f32 %v6360_v37, %v1928_v3 }
 0x399   : > { %2405 = vst.msk [vmem:[#allocation4 + $0x60] sm:$0xff] %vm560_vm2, %v2373_v44  ;;  %v1724_v44 = vmul.f32 %v6125_v38, %v1692_v24  ;;  %v1696_v38 = vld [vmem:[#allocation3 + $0x48] sm:$0xff]  ;;  %v1723_v24 = vmul.f32 %v6096_v14, %v1691_v56 }
 0x39a   : > { %v1753_v34 = vpop.xlane.xlu0 %1752 }
 0x39b   : > { %v2267_v15 = vpop.f32.mrb[26].mxu1  ;;  %v1847_v47 = vadd.f32 %v1753_v34, %v1719_v10  ;;  %v1694_v10 = vld [vmem:[#allocation3 + $0x38] sm:$0xff]  ;;  %v1929_v34 = vld [vmem:[#allocation4 + $0x88] sm:$0xff] }
 0x39c   : > { %v2374_v4 = vadd.f32 %v2267_v15, %v2117_v12  ;;  %v2269_v11 = vpop.f32.mrb[27].mxu1  ;;  %v1688_v15 = vld [vmem:[#allocation3 + $0x8] sm:$0xff] }
 0x39d   : > { %1880 = vst.msk [vmem:[#allocation3] sm:$0xff] %vm1879_vm4, %v1847_v47 }
 0x39e   : > { %2406 = vst.msk [vmem:[#allocation4 + $0x68] sm:$0xff] %vm560_vm2, %v2374_v4  ;;  %v1759_v8 = vpop.xlane.xlu0 %1758  ;;  %v1726_v4 = vmul.f32 %v6139_v25, %v1694_v10  ;;  %v1728_v25 = vmul.f32 %v6163_v30, %v1696_v38 }
 0x39f   : > { %v1849_v27 = vadd.f32 %v1759_v8, %v1721_v31  ;;  %v2121_v31 = vmul.f32 %v6375_v45, %v1929_v34  ;;  %v1720_v8 = vmul.f32 %v6074_v26, %v1688_v15  ;;  %v2122_v45 = vmul.f32 %v6364_v13, %v1930_v61  ;;  %v1700_v13 = vld [vmem:[#allocation3 + $0x68] sm:$0xff]  ;;  %v1695_v15 = vld [vmem:[#allocation3 + $0x40] sm:$0xff] }
 0x3a0   : > { %v2272_v17 = vpop.f32.mrb[28].mxu1 }
 0x3a1   : > { %1882 = vst.msk [vmem:[#allocation3 + $0x10] sm:$0xff] %vm1879_vm4, %v1849_v27  ;;  %v2375_v5 = vadd.f32 %v2272_v17, %v2118_v20  ;;  %v2274_v23 = vpop.f32.mrb[29].mxu1 }
 0x3a2   : > { %v1762_v1 = vpop.xlane.xlu0 %1761 }
 0x3a3   : > { %2407 = vst.msk [vmem:[#allocation4 + $0x70] sm:$0xff] %vm560_vm2, %v2375_v5  ;;  %v1850_v55 = vadd.f32 %v1762_v1, %v1722_v22  ;;  %v1698_v1 = vld [vmem:[#allocation3 + $0x58] sm:$0xff] }
 0x3a4   : > { %v2277_v58 = vpop.f32.mrb[30].mxu1 }
 0x3a5   : > { %1883 = vst.msk [vmem:[#allocation3 + $0x18] sm:$0xff] %vm1879_vm4, %v1850_v55  ;;  %v2376_v36 = vadd.f32 %v2277_v58, %v2119_v29  ;;  %v2279_v0 = vpop.f32.mrb[31].mxu1  ;;  %v1931_v29 = vld [vmem:[#allocation4 + $0x98] sm:$0xff]  ;;  %v1693_v58 = vld [vmem:[#allocation3 + $0x30] sm:$0xff] }
 0x3a6   : > { %v1768_v59 = vpop.xlane.xlu0 %1767  ;;  %v2123_v10 = vmul.f32 %v6382_v54, %v1931_v29  ;;  %v1702_v54 = vld [vmem:[#allocation3 + $0x78] sm:$0xff] }
 0x3a7   : > { %2408 = vst.msk [vmem:[#allocation4 + $0x78] sm:$0xff] %vm560_vm2, %v2376_v36  ;;  %v1852_v12 = vadd.f32 %v1768_v59, %v1724_v44  ;;  %v1730_v44 = vmul.f32 %v6179_v57, %v1698_v1 }
 0x3a8   : > { %v2282_v7 = vpop.f32.mrb[32].mxu1 }
 0x3a9   : > { %1885 = vst.msk [vmem:[#allocation3 + $0x28] sm:$0xff] %vm1879_vm4, %v1852_v12  ;;  %v2377_v47 = vadd.f32 %v2282_v7, %v2120_v43  ;;  %v2284_v50 = vpop.f32.mrb[33].mxu1  ;;  %v1725_v43 = vmul.f32 %v6106_v52, %v1693_v58  ;;  %v1932_v12 = vld [vmem:[#allocation4 + $0xa0] sm:$0xff] }
 0x3aa   : > { %v1774_v11 = vpop.xlane.xlu0 %1773  ;;  %v2124_v38 = vmul.f32 %v6367_v53, %v1932_v12  ;;  %v1704_v53 = vld [vmem:[#allocation3 + $0x88] sm:$0xff] }
 0x3ab   : > { %2409 = vst.msk [vmem:[#allocation4 + $0x80] sm:$0xff] %vm560_vm2, %v2377_v47  ;;  %v1854_v37 = vadd.f32 %v1774_v11, %v1726_v4  ;;  %v1732_v4 = vmul.f32 %v6209_v39, %v1700_v13 }
 0x3ac   : > { %v2287_v20 = vpop.f32.mrb[34].mxu1  ;;  %v1756_v27 = vpop.xlane.xlu1 %1755 }
 0x3ad   : > { %1887 = vst.msk [vmem:[#allocation3 + $0x38] sm:$0xff] %vm1879_vm4, %v1854_v37  ;;  %v2378_v17 = vadd.f32 %v2287_v20, %v2121_v31  ;;  %v1848_v5 = vadd.f32 %v1756_v27, %v1720_v8  ;;  %v2289_v23 = vpop.f32.mrb[35].mxu1  ;;  %v1727_v31 = vmul.f32 %v6128_v35, %v1695_v15  ;;  %v1933_v37 = vld [vmem:[#allocation4 + $0xa8] sm:$0xff]  ;;  %v1697_v20 = vld [vmem:[#allocation3 + $0x50] sm:$0xff] }
 0x3ae   : > { %v1780_v22 = vpop.xlane.xlu0 %1779  ;;  %v2125_v23 = vmul.f32 %v6388_v9, %v1933_v37  ;;  %v1706_v9 = vld [vmem:[#allocation3 + $0x98] sm:$0xff] }
 0x3af   : > { %2410 = vst.msk [vmem:[#allocation4 + $0x88] sm:$0xff] %vm560_vm2, %v2378_v17  ;;  %v1856_v26 = vadd.f32 %v1780_v22, %v1728_v25  ;;  %v1734_v17 = vmul.f32 %v6225_v18, %v1702_v54  ;;  %v1729_v25 = vmul.f32 %v6144_v63, %v1697_v20  ;;  %v1934_v22 = vld [vmem:[#allocation4 + $0xb0] sm:$0xff] }
 0x3b0   : > { %1881 = vst.msk [vmem:[#allocation3 + $0x8] sm:$0xff] %vm1879_vm4, %v1848_v5  ;;  %v2292_v55 = vpop.f32.mrb[36].mxu1  ;;  %v1765_v3 = vpop.xlane.xlu1 %1764  ;;  %v2126_v58 = vmul.f32 %v6373_v62, %v1934_v22  ;;  %v1708_v62 = vld [vmem:[#allocation3 + $0xa8] sm:$0xff] }
 0x3b1   : > { %1889 = vst.msk [vmem:[#allocation3 + $0x48] sm:$0xff] %vm1879_vm4, %v1856_v26  ;;  %v2379_v36 = vadd.f32 %v2292_v55, %v2122_v45  ;;  %v1851_v0 = vadd.f32 %v1765_v3, %v1723_v24  ;;  %v2294_v30 = vpop.f32.mrb[37].mxu1  ;;  %v1699_v26 = vld [vmem:[#allocation3 + $0x60] sm:$0xff]  ;;  %v1736_v55 = vmul.f32 %v6238_v2, %v1704_v53  ;;  %v7450_v22 = vld [vmem:[#allocation21_spill] sm:$0xff] }
 0x3b2   : > { %v1786_v59 = vpop.xlane.xlu0 %1785 }
 0x3b3   : > { %2411 = vst.msk [vmem:[#allocation4 + $0x90] sm:$0xff] %vm560_vm2, %v2379_v36  ;;  %v1858_v14 = vadd.f32 %v1786_v59, %v1730_v44  ;;  %v1731_v36 = vmul.f32 %v6146_v51, %v1699_v26  ;;  %v1701_v59 = vld [vmem:[#allocation3 + $0x70] sm:$0xff] }
 0x3b4   : > { %1884 = vst.msk [vmem:[#allocation3 + $0x20] sm:$0xff] %vm1879_vm4, %v1851_v0  ;;  %v2297_v34 = vpop.f32.mrb[38].mxu1  ;;  %v1771_v7 = vpop.xlane.xlu1 %1770  ;;  %v1935_v0 = vld [vmem:[#allocation4 + $0xb8] sm:$0xff] }
 0x3b5   : > { %1891 = vst.msk [vmem:[#allocation3 + $0x58] sm:$0xff] %vm1879_vm4, %v1858_v14  ;;  %v2380_v47 = vadd.f32 %v2297_v34, %v2123_v10  ;;  %v1853_v50 = vadd.f32 %v1771_v7, %v1725_v43  ;;  %v2299_v57 = vpop.f32.mrb[39].mxu1  ;;  %v1738_v14 = vmul.f32 %v6251_v6, %v1706_v9  ;;  %v2127_v12 = vmul.f32 %v6395_v49, %v1935_v0  ;;  %v1936_v7 = vld [vmem:[#allocation4 + $0xc0] sm:$0xff]  ;;  %v1710_v49 = vld [vmem:[#allocation3 + $0xb8] sm:$0xff]  ;;  %v7451_v0 = vld [vmem:[#allocation22_spill] sm:$0xff] }
 0x3b6   : > { %v1792_v11 = vpop.xlane.xlu0 %1791  ;;  %v1733_v34 = vmul.f32 %v6170_v28, %v1701_v59 }
 0x3b7   : > { %2412 = vst.msk [vmem:[#allocation4 + $0x98] sm:$0xff] %vm560_vm2, %v2380_v47  ;;  %v1860_v52 = vadd.f32 %v1792_v11, %v1732_v4  ;;  %v7447_v11 = vld [vmem:[#allocation18_spill] sm:$0xff] }
 0x3b8   : > { %1886 = vst.msk [vmem:[#allocation3 + $0x30] sm:$0xff] %vm1879_vm4, %v1853_v50  ;;  %v2302_v8 = vpop.f32.mrb[40].mxu1  ;;  %v1777_v61 = vpop.xlane.xlu1 %1776  ;;  %v1703_v50 = vld [vmem:[#allocation3 + $0x80] sm:$0xff]  ;;  %v1740_v54 = vmul.f32 %v7447_v11, %v1708_v62 }
 0x3b9   : > { %1893 = vst.msk [vmem:[#allocation3 + $0x68] sm:$0xff] %vm1879_vm4, %v1860_v52  ;;  %v2381_v27 = vadd.f32 %v2302_v8, %v2124_v38  ;;  %v1855_v56 = vadd.f32 %v1777_v61, %v1727_v31  ;;  %v2304_v39 = vpop.f32.mrb[41].mxu1  ;;  %v2128_v52 = vmul.f32 %v6379_v60, %v1936_v7  ;;  %v7448_v31 = vld [vmem:[#allocation16_spill] sm:$0xff]  ;;  %v1937_v8 = vld [vmem:[#allocation4 + $0xc8] sm:$0xff] }
 0x3ba   : > { %v1798_v5 = vpop.xlane.xlu0 %1797  ;;  %v1735_v37 = vmul.f32 %v7448_v31, %v1703_v50  ;;  %v1712_v60 = vld [vmem:[#allocation3 + $0xc8] sm:$0xff] }
 0x3bb   : > { %2413 = vst.msk [vmem:[#allocation4 + $0xa0] sm:$0xff] %vm560_vm2, %v2381_v27  ;;  %v1862_v35 = vadd.f32 %v1798_v5, %v1734_v17  ;;  %v1705_v27 = vld [vmem:[#allocation3 + $0x90] sm:$0xff]  ;;  %v1744_v9 = vmul.f32 %v6285_v41, %v1712_v60  ;;  %v1941_v31 = vld [vmem:[#allocation4 + $0xe8] sm:$0xff] }
 0x3bc   : > { %1888 = vst.msk [vmem:[#allocation3 + $0x40] sm:$0xff] %vm1879_vm4, %v1855_v56  ;;  %v2307_v1 = vpop.f32.mrb[42].mxu1  ;;  %v1783_v45 = vpop.xlane.xlu1 %1782  ;;  %v7449_v5 = vld [vmem:[#allocation30_spill] sm:$0xff] }
 0x3bd   : > { %1895 = vst.msk [vmem:[#allocation3 + $0x78] sm:$0xff] %vm1879_vm4, %v1862_v35  ;;  %v2382_v24 = vadd.f32 %v2307_v1, %v2125_v23  ;;  %v1857_v29 = vadd.f32 %v1783_v45, %v1729_v25  ;;  %v2309_v18 = vpop.f32.mrb[43].mxu1  ;;  %v1742_v53 = vmul.f32 %v7449_v5, %v1710_v49  ;;  %v2129_v35 = vmul.f32 %v6399_v19, %v1937_v8  ;;  %v1938_v45 = vld [vmem:[#allocation4 + $0xd0] sm:$0xff]  ;;  %v1714_v19 = vld [vmem:[#allocation3 + $0xd8] sm:$0xff]  ;;  %v7454_v5 = vld [vmem:[#allocation17_spill] sm:$0xff] }
 0x3be   : > { %v1804_v3 = vpop.xlane.xlu0 %1803  ;;  %v1737_v1 = vmul.f32 %v7450_v22, %v1705_v27 }
 0x3bf   : > { %2414 = vst.msk [vmem:[#allocation4 + $0xa8] sm:$0xff] %vm560_vm2, %v2382_v24  ;;  %v1864_v63 = vadd.f32 %v1804_v3, %v1736_v55 }
 0x3c0   : > { %1890 = vst.msk [vmem:[#allocation3 + $0x50] sm:$0xff] %vm1879_vm4, %v1857_v29  ;;  %v2312_v30 = vpop.f32.mrb[44].mxu1  ;;  %v1789_v44 = vpop.xlane.xlu1 %1788  ;;  %v1707_v29 = vld [vmem:[#allocation3 + $0xa0] sm:$0xff] }
 0x3c1   : > { %1897 = vst.msk [vmem:[#allocation3 + $0x88] sm:$0xff] %vm1879_vm4, %v1864_v63  ;;  %v2383_v13 = vadd.f32 %v2312_v30, %v2126_v58  ;;  %v1859_v10 = vadd.f32 %v1789_v44, %v1731_v36  ;;  %v2314_v2 = vpop.f32.mrb[45].mxu1  ;;  %v2130_v63 = vmul.f32 %v6386_v32, %v1938_v45  ;;  %v1739_v30 = vmul.f32 %v7451_v0, %v1707_v29  ;;  %v1939_v44 = vld [vmem:[#allocation4 + $0xd8] sm:$0xff]  ;;  %v1716_v32 = vld [vmem:[#allocation3 + $0xe8] sm:$0xff] }
 0x3c2   : > { %v1810_v43 = vpop.xlane.xlu0 %1809  ;;  %v1748_v11 = vmul.f32 %v6299_v48, %v1716_v32  ;;  %v2465_v32 = vld [vmem:[#allocation3 + $0x20] sm:$0xff] (!%p4019_p3) }
 0x3c3   : > { %2415 = vst.msk [vmem:[#allocation4 + $0xb0] sm:$0xff] %vm560_vm2, %v2383_v13  ;;  %v1866_v51 = vadd.f32 %v1810_v43, %v1738_v14  ;;  %v1746_v43 = vmul.f32 %v6292_v46, %v1714_v19 }
 0x3c4   : > { %1892 = vst.msk [vmem:[#allocation3 + $0x60] sm:$0xff] %vm1879_vm4, %v1859_v10  ;;  %v2317_v15 = vpop.f32.mrb[46].mxu1  ;;  %v1795_v47 = vpop.xlane.xlu1 %1794  ;;  %v1709_v10 = vld [vmem:[#allocation3 + $0xb0] sm:$0xff] }
 0x3c5   : > { %1899 = vst.msk [vmem:[#allocation3 + $0x98] sm:$0xff] %vm1879_vm4, %v1866_v51  ;;  %v2384_v57 = vadd.f32 %v2317_v15, %v2127_v12  ;;  %v1861_v4 = vadd.f32 %v1795_v47, %v1733_v34  ;;  %v2319_v6 = vpop.f32.mrb[47].mxu1  ;;  %v2131_v12 = vmul.f32 %v6407_v42, %v1939_v44  ;;  %v7452_v34 = vld [vmem:[#allocation25_spill] sm:$0xff]  ;;  %v1940_v15 = vld [vmem:[#allocation4 + $0xe0] sm:$0xff]  ;;  %v1718_v42 = vld [vmem:[#allocation3 + $0xf8] sm:$0xff] }
 0x3c6   : > { %v1816_v38 = vpop.xlane.xlu0 %1815  ;;  %v1741_v7 = vmul.f32 %v7452_v34, %v1709_v10 }
 0x3c7   : > { %2416 = vst.msk [vmem:[#allocation4 + $0xb8] sm:$0xff] %vm560_vm2, %v2384_v57  ;;  %v1868_v28 = vadd.f32 %v1816_v38, %v1740_v54  ;;  %v1711_v57 = vld [vmem:[#allocation3 + $0xc0] sm:$0xff]  ;;  %v2132_v38 = vmul.f32 %v6392_v33, %v1940_v15  ;;  %v2133_v33 = vmul.f32 %v6415_v21, %v1941_v31  ;;  %v2470_v15 = vld [vmem:[#allocation3 + $0x48] sm:$0xff] (!%p4019_p3) }
 0x3c8   : > { %1894 = vst.msk [vmem:[#allocation3 + $0x70] sm:$0xff] %vm1879_vm4, %v1861_v4  ;;  %v2322_v61 = vpop.f32.mrb[48].mxu1  ;;  %v1801_v20 = vpop.xlane.xlu1 %1800 }
 0x3c9   : > { %1901 = vst.msk [vmem:[#allocation3 + $0xa8] sm:$0xff] %vm1879_vm4, %v1868_v28  ;;  %v2385_v56 = vadd.f32 %v2322_v61, %v2128_v52  ;;  %v1863_v39 = vadd.f32 %v1801_v20, %v1735_v37  ;;  %v2324_v17 = vpop.f32.mrb[49].mxu1  ;;  %v7453_v52 = vld [vmem:[#allocation26_spill] sm:$0xff] }
 0x3ca   : > { %v1822_v23 = vpop.xlane.xlu0 %1821  ;;  %v1743_v28 = vmul.f32 %v7453_v52, %v1711_v57  ;;  %v1713_v61 = vld [vmem:[#allocation3 + $0xd0] sm:$0xff]  ;;  %v2476_v52 = vld [vmem:[#allocation3 + $0x78] sm:$0xff] (!%p4019_p3) }
 0x3cb   : > { %2417 = vst.msk [vmem:[#allocation4 + $0xc0] sm:$0xff] %vm560_vm2, %v2385_v56  ;;  %v1870_v25 = vadd.f32 %v1822_v23, %v1742_v53  ;;  %v1750_v56 = vmul.f32 %v6353_v16, %v1718_v42  ;;  %v1745_v53 = vmul.f32 %v7454_v5, %v1713_v61  ;;  %v7455_v16 = vld [vmem:[#allocation29_spill] sm:$0xff] }
 0x3cc   : > { %1896 = vst.msk [vmem:[#allocation3 + $0x80] sm:$0xff] %vm1879_vm4, %v1863_v39  ;;  %v2327_v26 = vpop.f32.mrb[50].mxu1  ;;  %v1807_v24 = vpop.xlane.xlu1 %1806 }
 0x3cd   : > { %1903 = vst.msk [vmem:[#allocation3 + $0xb8] sm:$0xff] %vm1879_vm4, %v1870_v25  ;;  %v2386_v18 = vadd.f32 %v2327_v26, %v2129_v35  ;;  %v1865_v55 = vadd.f32 %v1807_v24, %v1737_v1  ;;  %v2329_v3 = vpop.f32.mrb[51].mxu1  ;;  %v1715_v35 = vld [vmem:[#allocation3 + $0xe0] sm:$0xff]  ;;  %v1717_v26 = vld [vmem:[#allocation3 + $0xf0] sm:$0xff] }
 0x3ce   : > { %v1828_v58 = vpop.xlane.xlu0 %1827  ;;  %v1747_v21 = vmul.f32 %v7455_v16, %v1715_v35  ;;  %v1749_v29 = vmul.f32 %v6348_v40, %v1717_v26  ;;  %v1942_v3 = vld [vmem:[#allocation4 + $0xf0] sm:$0xff] }
 0x3cf   : > { %2418 = vst.msk [vmem:[#allocation4 + $0xc8] sm:$0xff] %vm560_vm2, %v2386_v18  ;;  %v1872_v36 = vadd.f32 %v1828_v58, %v1744_v9  ;;  %v2463_v40 = vld [vmem:[#allocation3 + $0x10] sm:$0xff] (!%p4019_p3) }
 0x3d0   : > { %1898 = vst.msk [vmem:[#allocation3 + $0x90] sm:$0xff] %vm1879_vm4, %v1865_v55  ;;  %v2332_v59 = vpop.f32.mrb[52].mxu1  ;;  %v1813_v13 = vpop.xlane.xlu1 %1812  ;;  %4550 = vrcp.f32 (!%p4019_p3), %v2463_v40  ;;  %v2475_v31 = vld [vmem:[#allocation3 + $0x70] sm:$0xff] (!%p4019_p3) }
 0x3d1   : > { %1905 = vst.msk [vmem:[#allocation3 + $0xc8] sm:$0xff] %vm1879_vm4, %v1872_v36  ;;  %v2387_v2 = vadd.f32 %v2332_v59, %v2130_v63  ;;  %v1867_v14 = vadd.f32 %v1813_v13, %v1739_v30  ;;  %v2334_v41 = vpop.f32.mrb[53].mxu1  ;;  %v1943_v63 = vld [vmem:[#allocation4 + $0xf8] sm:$0xff] }
 0x3d2   : > { %v1834_v62 = vpop.xlane.xlu0 %1833  ;;  %v4986_v41 = vmov (!%p4019_p3), 0  }
 0x3d3   : > { %2419 = vst.msk [vmem:[#allocation4 + $0xd0] sm:$0xff] %vm560_vm2, %v2387_v2  ;;  %v1874_v51 = vadd.f32 %v1834_v62, %v1746_v43  ;;  %v2461_v2 = vld [vmem:[#allocation3] sm:$0xff] (!%p4019_p3)  ;;  %4549 = vset.pattern.permute.xlu1 (!%p4019_p3), %v4986_v41  ;;  %4548 = vset.pattern.permute.xlu0 (!%p4019_p3), %v4986_v41  ;;  %v2462_v43 = vld [vmem:[#allocation3 + $0x8] sm:$0xff] (!%p4019_p3)  ;;  %v2912_v41 = vld [vmem:[#allocation2 + $0x18] sm:$0xff] (!%p4019_p3) }
 0x3d4   : > { %1900 = vst.msk [vmem:[#allocation3 + $0xa0] sm:$0xff] %vm1879_vm4, %v1867_v14  ;;  %v2337_v47 = vpop.f32.mrb[54].mxu1  ;;  %v1819_v50 = vpop.xlane.xlu1 %1818  ;;  %v2464_v14 = vld [vmem:[#allocation3 + $0x18] sm:$0xff] (!%p4019_p3)  ;;  %4552 = vrcp.f32 (!%p4019_p3), %v2461_v2  ;;  %v2466_v62 = vld [vmem:[#allocation3 + $0x28] sm:$0xff] (!%p4019_p3) }
 0x3d5   : > { %1907 = vst.msk [vmem:[#allocation3 + $0xd8] sm:$0xff] %vm1879_vm4, %v1874_v51  ;;  %v2388_v4 = vadd.f32 %v2337_v47, %v2131_v12  ;;  %v1869_v6 = vadd.f32 %v1819_v50, %v1741_v7  ;;  %v2339_v46 = vpop.f32.mrb[55].mxu1  ;;  %4554 = vrcp.f32 (!%p4019_p3), %v2464_v14  ;;  %v2468_v12 = vld [vmem:[#allocation3 + $0x38] sm:$0xff] (!%p4019_p3)  ;;  %v2467_v51 = vld [vmem:[#allocation3 + $0x30] sm:$0xff] (!%p4019_p3)  ;;  %v2469_v50 = vld [vmem:[#allocation3 + $0x40] sm:$0xff] (!%p4019_p3) }
 0x3d6   : > { %v1840_v54 = vpop.xlane.xlu0 %1839  ;;  %4556 = vrcp.f32 (!%p4019_p3), %v2462_v43  ;;  %v2471_v46 = vld [vmem:[#allocation3 + $0x50] sm:$0xff] (!%p4019_p3)  ;;  %v2910_v2 = vld [vmem:[#allocation2 + $0x8] sm:$0xff] (!%p4019_p3)  ;;  %v2909_v14 = vld [vmem:[#allocation2] sm:$0xff] (!%p4019_p3) }
 0x3d7   : > { %2420 = vst.msk [vmem:[#allocation4 + $0xd8] sm:$0xff] %vm560_vm2, %v2388_v4  ;;  %v1876_v49 = vadd.f32 %v1840_v54, %v1748_v11  ;;  %4558 = vrcp.f32 (!%p4019_p3), %v2466_v62  ;;  %v2472_v4 = vld [vmem:[#allocation3 + $0x58] sm:$0xff] (!%p4019_p3)  ;;  %v2474_v54 = vld [vmem:[#allocation3 + $0x68] sm:$0xff] (!%p4019_p3)  ;;  %v2911_v43 = vld [vmem:[#allocation2 + $0x10] sm:$0xff] (!%p4019_p3) }
 0x3d8   : > { %1902 = vst.msk [vmem:[#allocation3 + $0xb0] sm:$0xff] %vm1879_vm4, %v1869_v6  ;;  %v2342_v37 = vpop.f32.mrb[56].mxu1  ;;  %v1825_v8 = vpop.xlane.xlu1 %1824  ;;  %4560 = vrcp.f32 (!%p4019_p3), %v2465_v32  ;;  %v2914_v62 = vld [vmem:[#allocation2 + $0x28] sm:$0xff] (!%p4019_p3)  ;;  %v2913_v32 = vld [vmem:[#allocation2 + $0x20] sm:$0xff] (!%p4019_p3) }
 0x3d9   : > { %1909 = vst.msk [vmem:[#allocation3 + $0xe8] sm:$0xff] %vm1879_vm4, %v1876_v49  ;;  %v2389_v20 = vadd.f32 %v2342_v37, %v2132_v38  ;;  %v1871_v27 = vadd.f32 %v1825_v8, %v1743_v28  ;;  %v2344_v48 = vpop.f32.mrb[57].mxu1  ;;  %4562 = vrcp.f32 (!%p4019_p3), %v2468_v12  ;;  %v2473_v38 = vld [vmem:[#allocation3 + $0x60] sm:$0xff] (!%p4019_p3)  ;;  %v2478_v8 = vld [vmem:[#allocation3 + $0x88] sm:$0xff] (!%p4019_p3)  ;;  %v2916_v12 = vld [vmem:[#allocation2 + $0x38] sm:$0xff] (!%p4019_p3) }
 0x3da   : > { %v1846_v39 = vpop.xlane.xlu0 %1845  ;;  %v4551_v34 = vpop.eup (!%p4019_p3), %4550  ;;  %4564 = vrcp.f32 (!%p4019_p3), %v2467_v51  ;;  %v2480_v48 = vld [vmem:[#allocation3 + $0x98] sm:$0xff] (!%p4019_p3)  ;;  %v2915_v51 = vld [vmem:[#allocation2 + $0x30] sm:$0xff] (!%p4019_p3) }
 0x3db   : > { %2421 = vst.msk [vmem:[#allocation4 + $0xe0] sm:$0xff] %vm560_vm2, %v2389_v20  ;;  %v1878_v17 = vadd.f32 %v1846_v39, %v1750_v56  ;;  %2569 = vperm.xlu1 (!%p4019_p3), %4549, %v4551_v34   ;;  %4566 = vrcp.f32 (!%p4019_p3), %v2470_v15  ;;  %v2477_v20 = vld [vmem:[#allocation3 + $0x80] sm:$0xff] (!%p4019_p3)  ;;  %v2479_v39 = vld [vmem:[#allocation3 + $0x90] sm:$0xff] (!%p4019_p3)  ;;  %v2918_v34 = vld [vmem:[#allocation2 + $0x48] sm:$0xff] (!%p4019_p3) }
 0x3dc   : > { %1904 = vst.msk [vmem:[#allocation3 + $0xc0] sm:$0xff] %vm1879_vm4, %v1871_v27  ;;  %v2347_v23 = vpop.f32.mrb[58].mxu1  ;;  %v1831_v60 = vpop.xlane.xlu1 %1830  ;;  %4568 = vrcp.f32 (!%p4019_p3), %v2469_v50  ;;  %v2488_v26 = vld [vmem:[#allocation3 + $0xd8] sm:$0xff] (!%p4019_p3)  ;;  %v2922_v50 = vld [vmem:[#allocation2 + $0x68] sm:$0xff] (!%p4019_p3) }
 0x3dd   : > { %1911 = vst.msk [vmem:[#allocation3 + $0xf8] sm:$0xff] %vm1879_vm4, %v1878_v17  ;;  %v2390_v25 = vadd.f32 %v2347_v23, %v2133_v33  ;;  %v1873_v22 = vadd.f32 %v1831_v60, %v1745_v53  ;;  %v2349_v1 = vpop.f32.mrb[59].mxu1  ;;  %4570 = vrcp.f32 (!%p4019_p3), %v2472_v4  ;;  %v2482_v17 = vld [vmem:[#allocation3 + $0xa8] sm:$0xff] (!%p4019_p3)  ;;  %v2481_v53 = vld [vmem:[#allocation3 + $0xa0] sm:$0xff] (!%p4019_p3)  ;;  %v2484_v60 = vld [vmem:[#allocation3 + $0xb8] sm:$0xff] (!%p4019_p3) }
 0x3de   : > { %v4553_v7 = vpop.eup (!%p4019_p3), %4552  ;;  %4572 = vrcp.f32 (!%p4019_p3), %v2471_v46  ;;  %v2486_v1 = vld [vmem:[#allocation3 + $0xc8] sm:$0xff] (!%p4019_p3)  ;;  %v2920_v15 = vld [vmem:[#allocation2 + $0x58] sm:$0xff] (!%p4019_p3) }
 0x3df   : > { %2422 = vst.msk [vmem:[#allocation4 + $0xe8] sm:$0xff] %vm560_vm2, %v2390_v25  ;;  %v4555_v47 = vpop.eup (!%p4019_p3), %4554  ;;  %2559 = vperm.xlu0 (!%p4019_p3), %4548, %v4553_v7   ;;  %4574 = vrcp.f32 (!%p4019_p3), %v2474_v54  ;;  %v2483_v25 = vld [vmem:[#allocation3 + $0xb0] sm:$0xff] (!%p4019_p3)  ;;  %v2917_v7 = vld [vmem:[#allocation2 + $0x40] sm:$0xff] (!%p4019_p3)  ;;  %v2924_v4 = vld [vmem:[#allocation2 + $0x78] sm:$0xff] (!%p4019_p3) }
 0x3e0   : > { %1906 = vst.msk [vmem:[#allocation3 + $0xd0] sm:$0xff] %vm1879_vm4, %v1873_v22  ;;  %v1837_v45 = vpop.xlane.xlu1 %1836  ;;  %v4557_v57 = vpop.eup (!%p4019_p3), %4556  ;;  %2574 = vperm.xlu1 (!%p4019_p3), %4549, %v4555_v47   ;;  %4576 = vrcp.f32 (!%p4019_p3), %v2473_v38  ;;  %v2919_v47 = vld [vmem:[#allocation2 + $0x50] sm:$0xff] (!%p4019_p3)  ;;  %v2926_v46 = vld [vmem:[#allocation2 + $0x88] sm:$0xff] (!%p4019_p3)  ;;  %v2928_v54 = vld [vmem:[#allocation2 + $0x98] sm:$0xff] (!%p4019_p3) }
 0x3e1   : > { %v1875_v24 = vadd.f32 %v1837_v45, %v1747_v21  ;;  %v4559_v6 = vpop.eup (!%p4019_p3), %4558  ;;  %4578 = vrcp.f32 (!%p4019_p3), %v2476_v52  ;;  %v2930_v38 = vld [vmem:[#allocation2 + $0xa8] sm:$0xff] (!%p4019_p3)  ;;  %v2932_v52 = vld [vmem:[#allocation2 + $0xb8] sm:$0xff] (!%p4019_p3) }
 0x3e2   : > { %v2097_v9 = vpop.permute.xlu0 %2096  ;;  %v4561_v11 = vpop.eup (!%p4019_p3), %4560  ;;  %4580 = vrcp.f32 (!%p4019_p3), %v2475_v31  ;;  %v2934_v31 = vld [vmem:[#allocation2 + $0xc8] sm:$0xff] (!%p4019_p3) }
 0x3e3   : > { %1908 = vst.msk [vmem:[#allocation3 + $0xe0] sm:$0xff] %vm1879_vm4, %v1875_v24  ;;  %v2134_v58 = vmul.f32 %v2097_v9, %v1942_v3  ;;  %2564 = vperm.xlu0 (!%p4019_p3), %4548, %v4557_v57   ;;  %v4563_v42 = vpop.eup (!%p4019_p3), %4562  ;;  %4582 = vrcp.f32 (!%p4019_p3), %v2478_v8  ;;  %v2485_v21 = vld [vmem:[#allocation3 + $0xc0] sm:$0xff] (!%p4019_p3)  ;;  %v2936_v8 = vld [vmem:[#allocation2 + $0xd8] sm:$0xff] (!%p4019_p3) }
 0x3e4   : > { %v1843_v18 = vpop.xlane.xlu1 %1842  ;;  %2584 = vperm.xlu1 (!%p4019_p3), %4549, %v4559_v6   ;;  %v4565_v49 = vpop.eup (!%p4019_p3), %4564  ;;  %4584 = vrcp.f32 (!%p4019_p3), %v2477_v20  ;;  %v2921_v57 = vld [vmem:[#allocation2 + $0x60] sm:$0xff] (!%p4019_p3)  ;;  %v2923_v6 = vld [vmem:[#allocation2 + $0x70] sm:$0xff] (!%p4019_p3)  ;;  %v2938_v20 = vld [vmem:[#allocation2 + $0xe8] sm:$0xff] (!%p4019_p3) }
 0x3e5   : > { %v1877_v55 = vadd.f32 %v1843_v18, %v1749_v29  ;;  %v4567_v28 = vpop.eup (!%p4019_p3), %4566  ;;  %4586 = vrcp.f32 (!%p4019_p3), %v2480_v48  ;;  %v2940_v48 = vld [vmem:[#allocation2 + $0xf8] sm:$0xff] (!%p4019_p3) }
 0x3e6   : > { %v4569_v37 = vpop.eup (!%p4019_p3), %4568  ;;  %4588 = vrcp.f32 (!%p4019_p3), %v2479_v39  ;;  %v2527_v39 = vld [vmem:[#allocation4 + $0x10] sm:$0xff] (!%p4019_p3) }
 0x3e7   : > { %1910 = vst.msk [vmem:[#allocation3 + $0xf0] sm:$0xff] %vm1879_vm4, %v1877_v55  ;;  %2579 = vperm.xlu0 (!%p4019_p3), %4548, %v4561_v11   ;;  %v4571_v61 = vpop.eup (!%p4019_p3), %4570  ;;  %4590 = vrcp.f32 (!%p4019_p3), %v2482_v17  ;;  %v2487_v29 = vld [vmem:[#allocation3 + $0xd0] sm:$0xff] (!%p4019_p3)  ;;  %v2490_v55 = vld [vmem:[#allocation3 + $0xe8] sm:$0xff] (!%p4019_p3)  ;;  %v2925_v11 = vld [vmem:[#allocation2 + $0x80] sm:$0xff] (!%p4019_p3) }
 0x3e8   : > { %v2102_v36 = vpop.permute.xlu1 %2101  ;;  %2594 = vperm.xlu1 (!%p4019_p3), %4549, %v4563_v42   ;;  %v4573_v27 = vpop.eup (!%p4019_p3), %4572  ;;  %4592 = vrcp.f32 (!%p4019_p3), %v2481_v53  ;;  %v2927_v42 = vld [vmem:[#allocation2 + $0x90] sm:$0xff] (!%p4019_p3) }
 0x3e9   : > { %v2135_v44 = vmul.f32 %v2102_v36, %v1943_v63  ;;  %v4575_v56 = vpop.eup (!%p4019_p3), %4574  ;;  %4594 = vrcp.f32 (!%p4019_p3), %v2484_v60  ;;  %v2528_v60 = vld [vmem:[#allocation4 + $0x18] sm:$0xff] (!%p4019_p3) }
 0x3ea   : > { %v4577_v33 = vpop.eup (!%p4019_p3), %4576  ;;  %4596 = vrcp.f32 (!%p4019_p3), %v2483_v25  ;;  %v2489_v9 = vld [vmem:[#allocation3 + $0xe0] sm:$0xff] (!%p4019_p3) }
 0x3eb   : > { %2589 = vperm.xlu0 (!%p4019_p3), %4548, %v4565_v49   ;;  %v4579_v5 = vpop.eup (!%p4019_p3), %4578  ;;  %4598 = vrcp.f32 (!%p4019_p3), %v2486_v1  ;;  %v2929_v49 = vld [vmem:[#allocation2 + $0xa0] sm:$0xff] (!%p4019_p3) }
 0x3ec   : > { %2604 = vperm.xlu1 (!%p4019_p3), %4549, %v4567_v28   ;;  %v4581_v23 = vpop.eup (!%p4019_p3), %4580  ;;  %4600 = vrcp.f32 (!%p4019_p3), %v2485_v21  ;;  %v2931_v28 = vld [vmem:[#allocation2 + $0xb0] sm:$0xff] (!%p4019_p3)  ;;  %v2530_v21 = vld [vmem:[#allocation4 + $0x28] sm:$0xff] (!%p4019_p3) }
 0x3ed   : > { %v4583_v35 = vpop.eup (!%p4019_p3), %4582  ;;  %4602 = vrcp.f32 (!%p4019_p3), %v2488_v26 }
 0x3ee   : > { %v4585_v22 = vpop.eup (!%p4019_p3), %4584  ;;  %4604 = vrcp.f32 (!%p4019_p3), %v2487_v29  ;;  %v2491_v36 = vld [vmem:[#allocation3 + $0xf0] sm:$0xff] (!%p4019_p3) }
 0x3ef   : > { %2599 = vperm.xlu0 (!%p4019_p3), %4548, %v4569_v37   ;;  %v4587_v16 = vpop.eup (!%p4019_p3), %4586  ;;  %4606 = vrcp.f32 (!%p4019_p3), %v2490_v55  ;;  %v2933_v37 = vld [vmem:[#allocation2 + $0xc0] sm:$0xff] (!%p4019_p3)  ;;  %v2532_v55 = vld [vmem:[#allocation4 + $0x38] sm:$0xff] (!%p4019_p3) }
 0x3f0   : > { %2614 = vperm.xlu1 (!%p4019_p3), %4549, %v4571_v61   ;;  %v4589_v45 = vpop.eup (!%p4019_p3), %4588  ;;  %4608 = vrcp.f32 (!%p4019_p3), %v2489_v9  ;;  %v2935_v61 = vld [vmem:[#allocation2 + $0xd0] sm:$0xff] (!%p4019_p3) }
 0x3f1   : > { %v4591_v24 = vpop.eup (!%p4019_p3), %4590 }
 0x3f2   : > { %v4593_v18 = vpop.eup (!%p4019_p3), %4592 }
 0x3f3   : > { %2609 = vperm.xlu0 (!%p4019_p3), %4548, %v4573_v27   ;;  %v4595_v3 = vpop.eup (!%p4019_p3), %4594  ;;  %v2937_v27 = vld [vmem:[#allocation2 + $0xe0] sm:$0xff] (!%p4019_p3) }
 0x3f4   : > { %2624 = vperm.xlu1 (!%p4019_p3), %4549, %v4575_v56   ;;  %v2939_v56 = vld [vmem:[#allocation2 + $0xf0] sm:$0xff] (!%p4019_p3) }
 0x3f7   : > { %2619 = vperm.xlu0 (!%p4019_p3), %4548, %v4577_v33   ;;  %v2525_v33 = vld [vmem:[#allocation4] sm:$0xff] (!%p4019_p3) }
 0x3f8   : > { %2634 = vperm.xlu1 (!%p4019_p3), %4549, %v4579_v5  }
 0x3fb   : > { %2629 = vperm.xlu0 (!%p4019_p3), %4548, %v4581_v23  }
 0x3fc   : > { %2644 = vperm.xlu1 (!%p4019_p3), %4549, %v4583_v35   ;;  %v2526_v35 = vld [vmem:[#allocation4 + $0x8] sm:$0xff] (!%p4019_p3) }
 0x3ff   : > { %2639 = vperm.xlu0 (!%p4019_p3), %4548, %v4585_v22  }
 0x400   : > { %2654 = vperm.xlu1 (!%p4019_p3), %4549, %v4587_v16  }
 0x403   : > { %2649 = vperm.xlu0 (!%p4019_p3), %4548, %v4589_v45   ;;  %v2529_v45 = vld [vmem:[#allocation4 + $0x20] sm:$0xff] (!%p4019_p3) }
 0x404   : > { %2664 = vperm.xlu1 (!%p4019_p3), %4549, %v4591_v24  }
 0x407   : > { %2659 = vperm.xlu0 (!%p4019_p3), %4548, %v4593_v18  }
 0x408   : > { %2674 = vperm.xlu1 (!%p4019_p3), %4549, %v4595_v3   ;;  %v2531_v3 = vld [vmem:[#allocation4 + $0x30] sm:$0xff] (!%p4019_p3) }
 0x41a   : > { %v2352_v19 = vpop.f32.mrb[60].mxu1 }
 0x41b   : > { %v2391_v0 = vadd.f32 %v2352_v19, %v2134_v58  ;;  %v2354_v30 = vpop.f32.mrb[61].mxu1  ;;  %v4597_v58 = vpop.eup (!%p4019_p3), %4596  ;;  %v2492_v19 = vld [vmem:[#allocation3 + $0xf8] sm:$0xff] (!%p4019_p3) }
 0x41c   : > { %2460 = sbr.rel (%p4019_p3) target bundleno = 1342 (0x53e), region = 40  ;;  %v4599_v63 = vpop.eup (!%p4019_p3), %4598  ;;  %2669 = vperm.xlu0 (!%p4019_p3), %4548, %v4597_v58   ;;  %4610 = vrcp.f32 (!%p4019_p3), %v2492_v19 }
 0x41d   : > { %2423 = vst.msk [vmem:[#allocation4 + $0xf0] sm:$0xff] %vm560_vm2, %v2391_v0  ;;  %v4601_v0 = vpop.eup (!%p4019_p3), %4600  ;;  %2684 = vperm.xlu1 (!%p4019_p3), %4549, %v4599_v63   ;;  %4612 = vrcp.f32 (!%p4019_p3), %v2491_v36  ;;  %v2534_v36 = vld [vmem:[#allocation4 + $0x48] sm:$0xff] (!%p4019_p3) }
 0x41e   : > { %v4603_v30 = vpop.eup (!%p4019_p3), %4602 }
 0x41f   : > { %v2357_v59 = vpop.f32.mrb[62].mxu1 }
 0x420   : > { %v2392_v13 = vadd.f32 %v2357_v59, %v2135_v44  ;;  %v2359_v10 = vpop.f32.mrb[63].mxu1  ;;  %2679 = vperm.xlu0 (!%p4019_p3), %4548, %v4601_v0   ;;  %v4605_v44 = vpop.eup (!%p4019_p3), %4604  ;;  %v2533_v0 = vld [vmem:[#allocation4 + $0x40] sm:$0xff] (!%p4019_p3) }
 0x421   : > { %2694 = vperm.xlu1 (!%p4019_p3), %4549, %v4603_v30   ;;  %v4607_v59 = vpop.eup (!%p4019_p3), %4606 }
 0x422   : > { %2424 = vst.msk [vmem:[#allocation4 + $0xf8] sm:$0xff] %vm560_vm2, %v2392_v13  ;;  %v4609_v13 = vpop.eup (!%p4019_p3), %4608 }
 0x424   : > { %2689 = vperm.xlu0 %4548, %v4605_v44  }
 0x425   : > { %2704 = vperm.xlu1 %4549, %v4607_v59  }
 0x426   : > { %v4611_v10 = vpop.eup %4610 }
 0x427   : > { %v4613_v40 = vpop.eup %4612 }
 0x428   : > { %2699 = vperm.xlu0 %4548, %v4609_v13  }
 0x429   : > { %2714 = vperm.xlu1 %4549, %v4611_v10   ;;  %v2536_v10 = vld [vmem:[#allocation4 + $0x58] sm:$0xff] }
 0x42c   : > { %2709 = vperm.xlu0 %4548, %v4613_v40   ;;  %v2535_v40 = vld [vmem:[#allocation4 + $0x50] sm:$0xff] }
 0x42d   : > { %2948 = vperm.xlu1 %4549, %v2910_v2  }
 0x430   : > { %2943 = vperm.xlu0 %4548, %v2909_v14  }
 0x431   : > { %2958 = vperm.xlu1 %4549, %v2912_v41  }
 0x434   : > { %2953 = vperm.xlu0 %4548, %v2911_v43  }
 0x435   : > { %2968 = vperm.xlu1 %4549, %v2914_v62   ;;  %v2538_v62 = vld [vmem:[#allocation4 + $0x68] sm:$0xff] }
 0x438   : > { %2963 = vperm.xlu0 %4548, %v2913_v32   ;;  %v2537_v32 = vld [vmem:[#allocation4 + $0x60] sm:$0xff] }
 0x439   : > { %2978 = vperm.xlu1 %4549, %v2916_v12  }
 0x43c   : > { %2973 = vperm.xlu0 %4548, %v2915_v51  }
 0x43d   : > { %2988 = vperm.xlu1 %4549, %v2918_v34  }
 0x440   : > { %2983 = vperm.xlu0 %4548, %v2917_v7  }
 0x441   : > { %2998 = vperm.xlu1 %4549, %v2920_v15   ;;  %v2540_v15 = vld [vmem:[#allocation4 + $0x78] sm:$0xff] }
 0x444   : > { %2993 = vperm.xlu0 %4548, %v2919_v47   ;;  %v2539_v47 = vld [vmem:[#allocation4 + $0x70] sm:$0xff] }
 0x445   : > { %3008 = vperm.xlu1 %4549, %v2922_v50  }
 0x448   : > { %3003 = vperm.xlu0 %4548, %v2921_v57  }
 0x449   : > { %3018 = vperm.xlu1 %4549, %v2924_v4  }
 0x44c   : > { %3013 = vperm.xlu0 %4548, %v2923_v6  }
 0x44d   : > { %3028 = vperm.xlu1 %4549, %v2926_v46   ;;  %v2542_v46 = vld [vmem:[#allocation4 + $0x88] sm:$0xff] }
 0x450   : > { %3023 = vperm.xlu0 %4548, %v2925_v11   ;;  %v2541_v11 = vld [vmem:[#allocation4 + $0x80] sm:$0xff] }
 0x451   : > { %3038 = vperm.xlu1 %4549, %v2928_v54  }
 0x454   : > { %3033 = vperm.xlu0 %4548, %v2927_v42  }
 0x455   : > { %3048 = vperm.xlu1 %4549, %v2930_v38  }
 0x458   : > { %3043 = vperm.xlu0 %4548, %v2929_v49  }
 0x459   : > { %3058 = vperm.xlu1 %4549, %v2932_v52   ;;  %v2544_v52 = vld [vmem:[#allocation4 + $0x98] sm:$0xff] }
 0x45a   : > { %v6504_v17 = vpop.permute.xlu1 %2569 }
 0x45b   : > { %v2719_v5 = vmul.f32 %v6504_v17, %v2527_v39 }
 0x45c   : > { %3053 = vperm.xlu0 %4548, %v2931_v28   ;;  %v2543_v28 = vld [vmem:[#allocation4 + $0x90] sm:$0xff] }
 0x45d   : > { %3068 = vperm.xlu1 %4549, %v2934_v31   ;;  %2751 = vst.msk [vmem:[%s5115_s23 + $0x10] sm:$0xff] %vm560_vm2, %v2719_v5  ;;  %v2548_v5 = vld [vmem:[#allocation4 + $0xb8] sm:$0xff] }
 0x45e   : > { %v6507_v53 = vpop.permute.xlu0 %2559 }
 0x45f   : > { %v2717_v23 = vmul.f32 %v6507_v53, %v2525_v33  ;;  %v6514_v25 = vpop.permute.xlu1 %2574 }
 0x460   : > { %3063 = vperm.xlu0 %4548, %v2933_v37   ;;  %v2720_v22 = vmul.f32 %v6514_v25, %v2528_v60 }
 0x461   : > { %3078 = vperm.xlu1 %4549, %v2936_v8   ;;  %2749 = vst.msk [vmem:[%s5115_s23] sm:$0xff] %vm560_vm2, %v2717_v23  ;;  %v2547_v23 = vld [vmem:[#allocation4 + $0xb0] sm:$0xff] }
 0x462   : > { %v6517_v1 = vpop.permute.xlu0 %2564  ;;  %2752 = vst.msk [vmem:[%s5115_s23 + $0x18] sm:$0xff] %vm560_vm2, %v2720_v22 }
 0x463   : > { %v2718_v16 = vmul.f32 %v6517_v1, %v2526_v35  ;;  %v6524_v26 = vpop.permute.xlu1 %2584 }
 0x464   : > { %3073 = vperm.xlu0 %4548, %v2935_v61   ;;  %v2722_v24 = vmul.f32 %v6524_v26, %v2530_v21  ;;  %v2550_v21 = vld [vmem:[#allocation4 + $0xc8] sm:$0xff] }
 0x465   : > { %3088 = vperm.xlu1 %4549, %v2938_v20   ;;  %2750 = vst.msk [vmem:[%s5115_s23 + $0x8] sm:$0xff] %vm560_vm2, %v2718_v16  ;;  %v2546_v20 = vld [vmem:[#allocation4 + $0xa8] sm:$0xff] }
 0x466   : > { %v6527_v29 = vpop.permute.xlu0 %2579  ;;  %2754 = vst.msk [vmem:[%s5115_s23 + $0x28] sm:$0xff] %vm560_vm2, %v2722_v24 }
 0x467   : > { %v2721_v18 = vmul.f32 %v6527_v29, %v2529_v45  ;;  %v6534_v9 = vpop.permute.xlu1 %2594  ;;  %v2549_v45 = vld [vmem:[#allocation4 + $0xc0] sm:$0xff] }
 0x468   : > { %3083 = vperm.xlu0 %4548, %v2937_v27   ;;  %v2724_v58 = vmul.f32 %v6534_v9, %v2532_v55  ;;  %v2545_v27 = vld [vmem:[#allocation4 + $0xa0] sm:$0xff] }
 0x469   : > { %3098 = vperm.xlu1 %4549, %v2940_v48   ;;  %2753 = vst.msk [vmem:[%s5115_s23 + $0x20] sm:$0xff] %vm560_vm2, %v2721_v18 }
 0x46a   : > { %v6537_v19 = vpop.permute.xlu0 %2589  ;;  %2756 = vst.msk [vmem:[%s5115_s23 + $0x38] sm:$0xff] %vm560_vm2, %v2724_v58  ;;  %v2552_v58 = vld [vmem:[#allocation4 + $0xd8] sm:$0xff] }
 0x46b   : > { %v2723_v63 = vmul.f32 %v6537_v19, %v2531_v3  ;;  %v6544_v30 = vpop.permute.xlu1 %2604 }
 0x46c   : > { %3093 = vperm.xlu0 %4548, %v2939_v56   ;;  %v2726_v44 = vmul.f32 %v6544_v30, %v2534_v36 }
 0x46d   : > { %2755 = vst.msk [vmem:[%s5115_s23 + $0x30] sm:$0xff] %vm560_vm2, %v2723_v63  ;;  %v2551_v63 = vld [vmem:[#allocation4 + $0xd0] sm:$0xff] }
 0x46e   : > { %v6547_v59 = vpop.permute.xlu0 %2599  ;;  %2758 = vst.msk [vmem:[%s5115_s23 + $0x48] sm:$0xff] %vm560_vm2, %v2726_v44 }
 0x46f   : > { %v2725_v13 = vmul.f32 %v6547_v59, %v2533_v0  ;;  %v6554_v2 = vpop.permute.xlu1 %2614 }
 0x470   : > { %v2728_v14 = vmul.f32 %v6554_v2, %v2536_v10  ;;  %v2554_v10 = vld [vmem:[#allocation4 + $0xe8] sm:$0xff] }
 0x471   : > { %2757 = vst.msk [vmem:[%s5115_s23 + $0x40] sm:$0xff] %vm560_vm2, %v2725_v13 }
 0x472   : > { %v6557_v41 = vpop.permute.xlu0 %2609  ;;  %2760 = vst.msk [vmem:[%s5115_s23 + $0x58] sm:$0xff] %vm560_vm2, %v2728_v14 }
 0x473   : > { %v2727_v43 = vmul.f32 %v6557_v41, %v2535_v40  ;;  %v6564_v12 = vpop.permute.xlu1 %2624  ;;  %v2553_v40 = vld [vmem:[#allocation4 + $0xe0] sm:$0xff] }
 0x474   : > { %v2730_v51 = vmul.f32 %v6564_v12, %v2538_v62 }
 0x475   : > { %2759 = vst.msk [vmem:[%s5115_s23 + $0x50] sm:$0xff] %vm560_vm2, %v2727_v43 }
 0x476   : > { %v6567_v34 = vpop.permute.xlu0 %2619  ;;  %2762 = vst.msk [vmem:[%s5115_s23 + $0x68] sm:$0xff] %vm560_vm2, %v2730_v51  ;;  %v2556_v51 = vld [vmem:[#allocation4 + $0xf8] sm:$0xff] }
 0x477   : > { %v2729_v7 = vmul.f32 %v6567_v34, %v2537_v32  ;;  %v6574_v50 = vpop.permute.xlu1 %2634 }
 0x478   : > { %v2732_v57 = vmul.f32 %v6574_v50, %v2540_v15 }
 0x479   : > { %2761 = vst.msk [vmem:[%s5115_s23 + $0x60] sm:$0xff] %vm560_vm2, %v2729_v7  ;;  %v2555_v7 = vld [vmem:[#allocation4 + $0xf0] sm:$0xff] }
 0x47a   : > { %v6577_v4 = vpop.permute.xlu0 %2629  ;;  %2764 = vst.msk [vmem:[%s5115_s23 + $0x78] sm:$0xff] %vm560_vm2, %v2732_v57 }
 0x47b   : > { %v2731_v6 = vmul.f32 %v6577_v4, %v2539_v47  ;;  %v6584_v54 = vpop.permute.xlu1 %2644 }
 0x47c   : > { %v2734_v42 = vmul.f32 %v6584_v54, %v2542_v46 }
 0x47d   : > { %2763 = vst.msk [vmem:[%s5115_s23 + $0x70] sm:$0xff] %vm560_vm2, %v2731_v6  ;;  %v2785_v6 = vld [vmem:[%s5127_s8 + $0x20] sm:$0xff] }
 0x47e   : > { %v6587_v38 = vpop.permute.xlu0 %2639  ;;  %2766 = vst.msk [vmem:[%s5115_s23 + $0x88] sm:$0xff] %vm560_vm2, %v2734_v42  ;;  %v2787_v42 = vld [vmem:[%s5127_s8 + $0x30] sm:$0xff] }
 0x47f   : > { %v2733_v49 = vmul.f32 %v6587_v38, %v2541_v11  ;;  %v6594_v31 = vpop.permute.xlu1 %2654  ;;  %v2786_v11 = vld [vmem:[%s5127_s8 + $0x28] sm:$0xff] }
 0x480   : > { %v2736_v37 = vmul.f32 %v6594_v31, %v2544_v52  ;;  %v2781_v52 = vld [vmem:[%s5127_s8] sm:$0xff] }
 0x481   : > { %2765 = vst.msk [vmem:[%s5115_s23 + $0x80] sm:$0xff] %vm560_vm2, %v2733_v49  ;;  %v2788_v49 = vld [vmem:[%s5127_s8 + $0x38] sm:$0xff] }
 0x482   : > { %v6597_v8 = vpop.permute.xlu0 %2649  ;;  %2768 = vst.msk [vmem:[%s5115_s23 + $0x98] sm:$0xff] %vm560_vm2, %v2736_v37 }
 0x483   : > { %v2735_v61 = vmul.f32 %v6597_v8, %v2543_v28  ;;  %v6604_v48 = vpop.permute.xlu1 %2664  ;;  %v2782_v28 = vld [vmem:[%s5127_s8 + $0x8] sm:$0xff] }
 0x484   : > { %v2738_v56 = vmul.f32 %v6604_v48, %v2546_v20 }
 0x485   : > { %2767 = vst.msk [vmem:[%s5115_s23 + $0x90] sm:$0xff] %vm560_vm2, %v2735_v61  ;;  %v2783_v61 = vld [vmem:[%s5127_s8 + $0x10] sm:$0xff] }
 0x486   : > { %v6607_v39 = vpop.permute.xlu0 %2659  ;;  %2770 = vst.msk [vmem:[%s5115_s23 + $0xa8] sm:$0xff] %vm560_vm2, %v2738_v56 }
 0x487   : > { %v2737_v33 = vmul.f32 %v6607_v39, %v2545_v27  ;;  %v6614_v60 = vpop.permute.xlu1 %2674 }
 0x488   : > { %v2740_v35 = vmul.f32 %v6614_v60, %v2548_v5  ;;  %v2784_v5 = vld [vmem:[%s5127_s8 + $0x18] sm:$0xff] }
 0x489   : > { %2769 = vst.msk [vmem:[%s5115_s23 + $0xa0] sm:$0xff] %vm560_vm2, %v2737_v33 }
 0x48a   : > { %2772 = vst.msk [vmem:[%s5115_s23 + $0xb8] sm:$0xff] %vm560_vm2, %v2740_v35 }
 0x49b   : > { %v6617_v22 = vpop.permute.xlu0 %2669 }
 0x49c   : > { %v2739_v16 = vmul.f32 %v6617_v22, %v2547_v23  ;;  %v6624_v24 = vpop.permute.xlu1 %2684 }
 0x49d   : > { %v2742_v18 = vmul.f32 %v6624_v24, %v2550_v21  ;;  %v2793_v21 = vld [vmem:[%s5127_s8 + $0x60] sm:$0xff] }
 0x49e   : > { %2771 = vst.msk [vmem:[%s5115_s23 + $0xb0] sm:$0xff] %vm560_vm2, %v2739_v16 }
 0x49f   : > { %v6627_v55 = vpop.permute.xlu0 %2679  ;;  %2774 = vst.msk [vmem:[%s5115_s23 + $0xc8] sm:$0xff] %vm560_vm2, %v2742_v18 }
 0x4a0   : > { %v2741_v3 = vmul.f32 %v6627_v55, %v2549_v45  ;;  %v6634_v36 = vpop.permute.xlu1 %2694  ;;  %v2794_v45 = vld [vmem:[%s5127_s8 + $0x68] sm:$0xff] }
 0x4a1   : > { %v2744_v0 = vmul.f32 %v6634_v36, %v2552_v58 }
 0x4a2   : > { %2773 = vst.msk [vmem:[%s5115_s23 + $0xc0] sm:$0xff] %vm560_vm2, %v2741_v3 }
 0x4a3   : > { %v6637_v44 = vpop.permute.xlu0 %2689  ;;  %2776 = vst.msk [vmem:[%s5115_s23 + $0xd8] sm:$0xff] %vm560_vm2, %v2744_v0 }
 0x4a4   : > { %v2743_v13 = vmul.f32 %v6637_v44, %v2551_v63  ;;  %v6644_v14 = vpop.permute.xlu1 %2704 }
 0x4a5   : > { %v2746_v43 = vmul.f32 %v6644_v14, %v2554_v10  ;;  %v2795_v10 = vld [vmem:[%s5127_s8 + $0x70] sm:$0xff] }
 0x4a6   : > { %2775 = vst.msk [vmem:[%s5115_s23 + $0xd0] sm:$0xff] %vm560_vm2, %v2743_v13 }
 0x4a7   : > { %v6647_v62 = vpop.permute.xlu0 %2699  ;;  %2778 = vst.msk [vmem:[%s5115_s23 + $0xe8] sm:$0xff] %vm560_vm2, %v2746_v43 }
 0x4a8   : > { %v2745_v32 = vmul.f32 %v6647_v62, %v2553_v40  ;;  %v6654_v15 = vpop.permute.xlu1 %2714 }
 0x4a9   : > { %v2748_v47 = vmul.f32 %v6654_v15, %v2556_v51 }
 0x4aa   : > { %2777 = vst.msk [vmem:[%s5115_s23 + $0xe0] sm:$0xff] %vm560_vm2, %v2745_v32  ;;  %v2796_v32 = vld [vmem:[%s5127_s8 + $0x78] sm:$0xff] }
 0x4ab   : > { %v6657_v57 = vpop.permute.xlu0 %2709  ;;  %2780 = vst.msk [vmem:[%s5115_s23 + $0xf8] sm:$0xff] %vm560_vm2, %v2748_v47 }
 0x4ac   : > { %v2747_v46 = vmul.f32 %v6657_v57, %v2555_v7  ;;  %v2949_v37 = vpop.permute.xlu1 %2948 }
 0x4ad   : > { %v3105_v20 = vsub.f32 %v2785_v6, %v2949_v37  ;;  %v3106_v27 = vsub.f32 %v2786_v11, %v2949_v37  ;;  %v3107_v56 = vsub.f32 %v2787_v42, %v2949_v37  ;;  %v3108_v33 = vsub.f32 %v2788_v49, %v2949_v37  ;;  %v2789_v6 = vld [vmem:[%s5127_s8 + $0x40] sm:$0xff]  ;;  %v2790_v49 = vld [vmem:[%s5127_s8 + $0x48] sm:$0xff]  ;;  %v2791_v37 = vld [vmem:[%s5127_s8 + $0x50] sm:$0xff] }
 0x4ae   : > { %2779 = vst.msk [vmem:[%s5115_s23 + $0xf0] sm:$0xff] %vm560_vm2, %v2747_v46 }
 0x4af   : > { %v2944_v23 = vpop.permute.xlu0 %2943  ;;  %v3237_v18 = vmul.f32 1.442695, %v3105_v20  ;;  %v3239_v3 = vmul.f32 1.442695, %v3106_v27  ;;  %v3241_v58 = vmul.f32 1.442695, %v3107_v56 }
 0x4b0   : > { %v3101_v35 = vsub.f32 %v2781_v52, %v2944_v23  ;;  %v3102_v16 = vsub.f32 %v2782_v28, %v2944_v23  ;;  %v3103_v63 = vsub.f32 %v2783_v61, %v2944_v23  ;;  %v3243_v0 = vmul.f32 1.442695, %v3108_v33  ;;  %v2959_v40 = vpop.permute.xlu1 %2958  ;;  %v2792_v20 = vld [vmem:[%s5127_s8 + $0x58] sm:$0xff] }
 0x4b1   : > { %v3104_v13 = vsub.f32 %v2784_v5, %v2944_v23  ;;  %4614 = vpow2.f32 %v3237_v18  ;;  %v3113_v51 = vsub.f32 %v2793_v21, %v2959_v40  ;;  %v3114_v47 = vsub.f32 %v2794_v45, %v2959_v40  ;;  %v2801_v5 = vld [vmem:[%s5127_s8 + $0xa0] sm:$0xff]  ;;  %v2802_v21 = vld [vmem:[%s5127_s8 + $0xa8] sm:$0xff] }
 0x4b2   : > { %v3229_v43 = vmul.f32 1.442695, %v3101_v35  ;;  %4616 = vpow2.f32 %v3239_v3  ;;  %v3231_v7 = vmul.f32 1.442695, %v3102_v16  ;;  %v3233_v11 = vmul.f32 1.442695, %v3103_v63 }
 0x4b3   : > { %v2954_v46 = vpop.permute.xlu0 %2953  ;;  %4618 = vpow2.f32 %v3241_v58  ;;  %v3115_v42 = vsub.f32 %v2795_v10, %v2959_v40  ;;  %v3235_v52 = vmul.f32 1.442695, %v3104_v13  ;;  %v3116_v28 = vsub.f32 %v2796_v32, %v2959_v40  ;;  %v2803_v3 = vld [vmem:[%s5127_s8 + $0xb0] sm:$0xff]  ;;  %v2804_v63 = vld [vmem:[%s5127_s8 + $0xb8] sm:$0xff]  ;;  %v2797_v40 = vld [vmem:[%s5127_s8 + $0x80] sm:$0xff] }
 0x4b4   : > { %4620 = vpow2.f32 %v3243_v0  ;;  %v3253_v61 = vmul.f32 1.442695, %v3113_v51  ;;  %v3109_v27 = vsub.f32 %v2789_v6, %v2954_v46  ;;  %v3255_v56 = vmul.f32 1.442695, %v3114_v47  ;;  %v2969_v23 = vpop.permute.xlu1 %2968  ;;  %v2798_v47 = vld [vmem:[%s5127_s8 + $0x88] sm:$0xff] }
 0x4b5   : > { %4622 = vpow2.f32 %v3229_v43  ;;  %v3110_v33 = vsub.f32 %v2790_v49, %v2954_v46  ;;  %v3257_v35 = vmul.f32 1.442695, %v3115_v42  ;;  %v3111_v16 = vsub.f32 %v2791_v37, %v2954_v46  ;;  %v2799_v49 = vld [vmem:[%s5127_s8 + $0x90] sm:$0xff] }
 0x4b6   : > { %4624 = vpow2.f32 %v3231_v7  ;;  %v3259_v45 = vmul.f32 1.442695, %v3116_v28  ;;  %v3112_v18 = vsub.f32 %v2792_v20, %v2954_v46  ;;  %v3245_v58 = vmul.f32 1.442695, %v3109_v27 }
 0x4b7   : > { %4626 = vpow2.f32 %v3233_v11  ;;  %v3121_v0 = vsub.f32 %v2801_v5, %v2969_v23  ;;  %v3247_v13 = vmul.f32 1.442695, %v3110_v33  ;;  %v3122_v10 = vsub.f32 %v2802_v21, %v2969_v23  ;;  %v6685_v43 = vpop.permute.xlu0 %2963 }
 0x4b8   : > { %4628 = vpow2.f32 %v3235_v52  ;;  %v3249_v51 = vmul.f32 1.442695, %v3111_v16  ;;  %v3123_v7 = vsub.f32 %v2803_v3, %v2969_v23  ;;  %v3251_v11 = vmul.f32 1.442695, %v3112_v18  ;;  %v2810_v3 = vld [vmem:[%s5127_s8 + $0xe8] sm:$0xff] }
 0x4b9   : > { %4630 = vpow2.f32 %v3253_v61  ;;  %v3124_v42 = vsub.f32 %v2804_v63, %v2969_v23  ;;  %v3269_v37 = vmul.f32 1.442695, %v3121_v0  ;;  %v2800_v61 = vld [vmem:[%s5127_s8 + $0x98] sm:$0xff]  ;;  %v3117_v20 = vsub.f32 %v2797_v40, %v6685_v43  ;;  %v2809_v23 = vld [vmem:[%s5127_s8 + $0xe0] sm:$0xff] }
 0x4ba   : > { %4632 = vpow2.f32 %v3255_v56  ;;  %v3271_v33 = vmul.f32 1.442695, %v3122_v10  ;;  %v3118_v5 = vsub.f32 %v2798_v47, %v6685_v43  ;;  %v3119_v18 = vsub.f32 %v2799_v49, %v6685_v43  ;;  %v2811_v10 = vld [vmem:[%s5127_s8 + $0xf0] sm:$0xff] }
 0x4bb   : > { %v4615_v32 = vpop.eup %4614  ;;  %4634 = vpow2.f32 %v3257_v35  ;;  %v6697_v35 = vpop.permute.xlu1 %2978  ;;  %v3275_v0 = vmul.f32 1.442695, %v3124_v42 }
 0x4bc   : > { %v4617_v6 = vpop.eup %4616  ;;  %v3489_v46 = vmul.f32 %v4615_v32, %v6517_v1  ;;  %4636 = vpow2.f32 %v3259_v45  ;;  %v3273_v45 = vmul.f32 1.442695, %v3123_v7  ;;  %v3261_v32 = vmul.f32 1.442695, %v3117_v20  ;;  %v6715_v42 = vpop.permute.xlu0 %2973 }
 0x4bd   : > { %v4619_v52 = vpop.eup %4618  ;;  %v3490_v28 = vmul.f32 %v4617_v6, %v6517_v1  ;;  %4638 = vpow2.f32 %v3245_v58  ;;  %v3129_v7 = vsub.f32 %v2809_v23, %v6697_v35 }
 0x4be   : > { %v4621_v27 = vpop.eup %4620  ;;  %v3491_v56 = vmul.f32 %v4619_v52, %v6517_v1  ;;  %3617 = vst [vmem:[%s5127_s8 + $0x20] sm:$0xff] %v3489_v46  ;;  %4640 = vpow2.f32 %v3247_v13  ;;  %v3120_v13 = vsub.f32 %v2800_v61, %v6685_v43  ;;  %v3263_v46 = vmul.f32 1.442695, %v3118_v5  ;;  %v2806_v61 = vld [vmem:[%s5127_s8 + $0xc8] sm:$0xff]  ;;  %v2807_v5 = vld [vmem:[%s5127_s8 + $0xd0] sm:$0xff] }
 0x4bf   : > { %v4623_v16 = vpop.eup %4622  ;;  %v3492_v21 = vmul.f32 %v4621_v27, %v6517_v1  ;;  %3618 = vst [vmem:[%s5127_s8 + $0x28] sm:$0xff] %v3490_v28  ;;  %4642 = vpow2.f32 %v3249_v51  ;;  %v2812_v51 = vld [vmem:[%s5127_s8 + $0xf8] sm:$0xff]  ;;  %v3130_v43 = vsub.f32 %v2810_v3, %v6697_v35  ;;  %v3265_v28 = vmul.f32 1.442695, %v3119_v18 }
 0x4c0   : > { %v4625_v58 = vpop.eup %4624  ;;  %3619 = vst [vmem:[%s5127_s8 + $0x30] sm:$0xff] %v3491_v56  ;;  %v3485_v63 = vmul.f32 %v4623_v16, %v6507_v53  ;;  %4644 = vpow2.f32 %v3251_v11  ;;  %v2805_v11 = vld [vmem:[%s5127_s8 + $0xc0] sm:$0xff]  ;;  %v3267_v56 = vmul.f32 1.442695, %v3120_v13  ;;  %v3285_v16 = vmul.f32 1.442695, %v3129_v7 }
 0x4c1   : > { %v4627_v40 = vpop.eup %4626  ;;  %3620 = vst [vmem:[%s5127_s8 + $0x38] sm:$0xff] %v3492_v21  ;;  %v3486_v1 = vmul.f32 %v4625_v58, %v6507_v53  ;;  %4646 = vpow2.f32 %v3269_v37  ;;  %v3131_v37 = vsub.f32 %v2811_v10, %v6697_v35  ;;  %v2808_v21 = vld [vmem:[%s5127_s8 + $0xd8] sm:$0xff]  ;;  %v3287_v58 = vmul.f32 1.442695, %v3130_v43 }
 0x4c2   : > { %v4629_v47 = vpop.eup %4628  ;;  %v3487_v6 = vmul.f32 %v4627_v40, %v6507_v53  ;;  %3613 = vst [vmem:[%s5127_s8] sm:$0xff] %v3485_v63  ;;  %4648 = vpow2.f32 %v3271_v33  ;;  %v3132_v33 = vsub.f32 %v2812_v51, %v6697_v35  ;;  %v3126_v35 = vsub.f32 %v2806_v61, %v6715_v42  ;;  %v2817_v63 = vld [vmem:[%s5127_s8 + $0x120] sm:$0xff] }
 0x4c3   : > { %v4631_v49 = vpop.eup %4630  ;;  %v3488_v52 = vmul.f32 %v4629_v47, %v6507_v53  ;;  %3614 = vst [vmem:[%s5127_s8 + $0x8] sm:$0xff] %v3486_v1  ;;  %4650 = vpow2.f32 %v3273_v45  ;;  %v3125_v45 = vsub.f32 %v2805_v11, %v6715_v42  ;;  %v3289_v40 = vmul.f32 1.442695, %v3131_v37 }
 0x4c4   : > { %v4633_v20 = vpop.eup %4632  ;;  %3615 = vst [vmem:[%s5127_s8 + $0x10] sm:$0xff] %v3487_v6  ;;  %v3497_v27 = vmul.f32 %v4631_v49, %v6514_v25  ;;  %4652 = vpow2.f32 %v3275_v0  ;;  %v6733_v0 = vpop.permute.xlu1 %2988  ;;  %v3127_v1 = vsub.f32 %v2807_v5, %v6715_v42  ;;  %v3291_v47 = vmul.f32 1.442695, %v3132_v33  ;;  %v2820_v49 = vld [vmem:[%s5127_s8 + $0x138] sm:$0xff] }
 0x4c5   : > { %v4635_v23 = vpop.eup %4634  ;;  %3616 = vst [vmem:[%s5127_s8 + $0x18] sm:$0xff] %v3488_v52  ;;  %v3498_v53 = vmul.f32 %v4633_v20, %v6514_v25  ;;  %4654 = vpow2.f32 %v3261_v32  ;;  %v2818_v32 = vld [vmem:[%s5127_s8 + $0x128] sm:$0xff]  ;;  %v3128_v6 = vsub.f32 %v2808_v21, %v6715_v42  ;;  %v3277_v11 = vmul.f32 1.442695, %v3125_v45  ;;  %v2813_v20 = vld [vmem:[%s5127_s8 + $0x100] sm:$0xff] }
 0x4c6   : > { %v4637_v18 = vpop.eup %4636  ;;  %v3499_v3 = vmul.f32 %v4635_v23, %v6514_v25  ;;  %3625 = vst [vmem:[%s5127_s8 + $0x60] sm:$0xff] %v3497_v27  ;;  %4656 = vpow2.f32 %v3263_v46  ;;  %v2819_v46 = vld [vmem:[%s5127_s8 + $0x130] sm:$0xff]  ;;  %v3137_v52 = vsub.f32 %v2817_v63, %v6733_v0  ;;  %v3279_v61 = vmul.f32 1.442695, %v3126_v35  ;;  %v6751_v27 = vpop.permute.xlu0 %2983  ;;  %v2816_v63 = vld [vmem:[%s5127_s8 + $0x118] sm:$0xff] }
 0x4c7   : > { %v4639_v13 = vpop.eup %4638  ;;  %v3500_v10 = vmul.f32 %v4637_v18, %v6514_v25  ;;  %3626 = vst [vmem:[%s5127_s8 + $0x68] sm:$0xff] %v3498_v53  ;;  %4658 = vpow2.f32 %v3265_v28  ;;  %v3138_v42 = vsub.f32 %v2818_v32, %v6733_v0  ;;  %v3281_v5 = vmul.f32 1.442695, %v3127_v1  ;;  %v2814_v53 = vld [vmem:[%s5127_s8 + $0x108] sm:$0xff]  ;;  %v2825_v32 = vld [vmem:[%s5127_s8 + $0x160] sm:$0xff] }
 0x4c8   : > { %v4641_v51 = vpop.eup %4640  ;;  %3627 = vst [vmem:[%s5127_s8 + $0x70] sm:$0xff] %v3499_v3  ;;  %v3493_v7 = vmul.f32 %v4639_v13, %v6504_v17  ;;  %4660 = vpow2.f32 %v3267_v56  ;;  %v3139_v23 = vsub.f32 %v2819_v46, %v6733_v0  ;;  %v3283_v45 = vmul.f32 1.442695, %v3128_v6  ;;  %v2815_v3 = vld [vmem:[%s5127_s8 + $0x110] sm:$0xff] }
 0x4c9   : > { %v4643_v43 = vpop.eup %4642  ;;  %3628 = vst [vmem:[%s5127_s8 + $0x78] sm:$0xff] %v3500_v10  ;;  %v3494_v25 = vmul.f32 %v4641_v51, %v6504_v17  ;;  %4662 = vpow2.f32 %v3285_v16  ;;  %v3140_v18 = vsub.f32 %v2820_v49, %v6733_v0  ;;  %v3301_v35 = vmul.f32 1.442695, %v3137_v52  ;;  %v6769_v51 = vpop.permute.xlu1 %2998 }
 0x4ca   : > { %v4645_v28 = vpop.eup %4644  ;;  %v3495_v37 = vmul.f32 %v4643_v43, %v6504_v17  ;;  %3621 = vst [vmem:[%s5127_s8 + $0x40] sm:$0xff] %v3493_v7  ;;  %4664 = vpow2.f32 %v3287_v58  ;;  %v3133_v13 = vsub.f32 %v2813_v20, %v6751_v27  ;;  %v3303_v1 = vmul.f32 1.442695, %v3138_v42  ;;  %v2826_v43 = vld [vmem:[%s5127_s8 + $0x168] sm:$0xff]  ;;  %v2828_v42 = vld [vmem:[%s5127_s8 + $0x178] sm:$0xff] }
 0x4cb   : > { %v4647_v56 = vpop.eup %4646  ;;  %v3496_v33 = vmul.f32 %v4645_v28, %v6504_v17  ;;  %3622 = vst [vmem:[%s5127_s8 + $0x48] sm:$0xff] %v3494_v25  ;;  %4666 = vpow2.f32 %v3289_v40  ;;  %v3134_v0 = vsub.f32 %v2814_v53, %v6751_v27  ;;  %v3305_v6 = vmul.f32 1.442695, %v3139_v23  ;;  %v2827_v28 = vld [vmem:[%s5127_s8 + $0x170] sm:$0xff]  ;;  %v2821_v23 = vld [vmem:[%s5127_s8 + $0x140] sm:$0xff]  ;;  %v6787_v53 = vpop.permute.xlu0 %2993 }
 0x4cc   : > { %v4649_v16 = vpop.eup %4648  ;;  %3623 = vst [vmem:[%s5127_s8 + $0x50] sm:$0xff] %v3495_v37  ;;  %v3505_v21 = vmul.f32 %v4647_v56, %v6524_v26  ;;  %4668 = vpow2.f32 %v3291_v47  ;;  %v3135_v46 = vsub.f32 %v2815_v3, %v6751_v27  ;;  %v3307_v49 = vmul.f32 1.442695, %v3140_v18  ;;  %v2822_v3 = vld [vmem:[%s5127_s8 + $0x148] sm:$0xff] }
 0x4cd   : > { %v4651_v58 = vpop.eup %4650  ;;  %3624 = vst [vmem:[%s5127_s8 + $0x58] sm:$0xff] %v3496_v33  ;;  %v3506_v17 = vmul.f32 %v4649_v16, %v6524_v26  ;;  %4670 = vpow2.f32 %v3277_v11  ;;  %v3136_v52 = vsub.f32 %v2816_v63, %v6751_v27  ;;  %v3145_v20 = vsub.f32 %v2825_v32, %v6769_v51 }
 0x4ce   : > { %v4653_v10 = vpop.eup %4652  ;;  %v3507_v40 = vmul.f32 %v4651_v58, %v6524_v26  ;;  %3633 = vst [vmem:[%s5127_s8 + $0xa0] sm:$0xff] %v3505_v21  ;;  %4672 = vpow2.f32 %v3279_v61  ;;  %v3293_v61 = vmul.f32 1.442695, %v3133_v13  ;;  %v3146_v27 = vsub.f32 %v2826_v43, %v6769_v51  ;;  %v2823_v13 = vld [vmem:[%s5127_s8 + $0x150] sm:$0xff] }
 0x4cf   : > { %v4655_v7 = vpop.eup %4654  ;;  %v3508_v47 = vmul.f32 %v4653_v10, %v6524_v26  ;;  %3634 = vst [vmem:[%s5127_s8 + $0xa8] sm:$0xff] %v3506_v17  ;;  %4674 = vpow2.f32 %v3281_v5  ;;  %v3295_v5 = vmul.f32 1.442695, %v3134_v0  ;;  %v3147_v18 = vsub.f32 %v2827_v28, %v6769_v51 }
 0x4d0   : > { %v4657_v25 = vpop.eup %4656  ;;  %3635 = vst [vmem:[%s5127_s8 + $0xb0] sm:$0xff] %v3507_v40  ;;  %v3501_v11 = vmul.f32 %v4655_v7, %v6527_v29  ;;  %4676 = vpow2.f32 %v3283_v45  ;;  %v3297_v45 = vmul.f32 1.442695, %v3135_v46  ;;  %v3148_v63 = vsub.f32 %v2828_v42, %v6769_v51  ;;  %v6805_v46 = vpop.permute.xlu1 %3008  ;;  %v2835_v42 = vld [vmem:[%s5127_s8 + $0x1b0] sm:$0xff] }
 0x4d1   : > { %v4659_v37 = vpop.eup %4658  ;;  %3636 = vst [vmem:[%s5127_s8 + $0xb8] sm:$0xff] %v3508_v47  ;;  %v3502_v26 = vmul.f32 %v4657_v25, %v6527_v29  ;;  %4678 = vpow2.f32 %v3301_v35  ;;  %v3299_v35 = vmul.f32 1.442695, %v3136_v52  ;;  %v3317_v40 = vmul.f32 1.442695, %v3145_v20  ;;  %v2834_v52 = vld [vmem:[%s5127_s8 + $0x1a8] sm:$0xff] }
 0x4d2   : > { %v4661_v56 = vpop.eup %4660  ;;  %v3503_v33 = vmul.f32 %v4659_v37, %v6527_v29  ;;  %3629 = vst [vmem:[%s5127_s8 + $0x80] sm:$0xff] %v3501_v11  ;;  %4680 = vpow2.f32 %v3303_v1  ;;  %v2824_v1 = vld [vmem:[%s5127_s8 + $0x158] sm:$0xff]  ;;  %v3141_v0 = vsub.f32 %v2821_v23, %v6787_v53  ;;  %v3319_v47 = vmul.f32 1.442695, %v3146_v27 }
 0x4d3   : > { %v4663_v16 = vpop.eup %4662  ;;  %v3504_v21 = vmul.f32 %v4661_v56, %v6527_v29  ;;  %3630 = vst [vmem:[%s5127_s8 + $0x88] sm:$0xff] %v3502_v26  ;;  %4682 = vpow2.f32 %v3305_v6  ;;  %v3142_v51 = vsub.f32 %v2822_v3, %v6787_v53  ;;  %v2833_v6 = vld [vmem:[%s5127_s8 + $0x1a0] sm:$0xff]  ;;  %v3321_v11 = vmul.f32 1.442695, %v3147_v18 }
 0x4d4   : > { %v4665_v58 = vpop.eup %4664  ;;  %3631 = vst [vmem:[%s5127_s8 + $0x90] sm:$0xff] %v3503_v33  ;;  %v3513_v17 = vmul.f32 %v4663_v16, %v6534_v9  ;;  %4684 = vpow2.f32 %v3307_v49  ;;  %v3143_v49 = vsub.f32 %v2823_v13, %v6787_v53  ;;  %v3323_v26 = vmul.f32 1.442695, %v3148_v63  ;;  %v2836_v33 = vld [vmem:[%s5127_s8 + $0x1b8] sm:$0xff] }
 0x4d5   : > { %v4667_v10 = vpop.eup %4666  ;;  %3632 = vst [vmem:[%s5127_s8 + $0x98] sm:$0xff] %v3504_v21  ;;  %v3514_v29 = vmul.f32 %v4665_v58, %v6534_v9  ;;  %4686 = vpow2.f32 %v3293_v61  ;;  %v3144_v61 = vsub.f32 %v2824_v1, %v6787_v53  ;;  %v3309_v56 = vmul.f32 1.442695, %v3141_v0  ;;  %v2829_v21 = vld [vmem:[%s5127_s8 + $0x180] sm:$0xff] }
 0x4d6   : > { %v4669_v32 = vpop.eup %4668  ;;  %v3515_v7 = vmul.f32 %v4667_v10, %v6534_v9  ;;  %3641 = vst [vmem:[%s5127_s8 + $0xe0] sm:$0xff] %v3513_v17  ;;  %4688 = vpow2.f32 %v3295_v5  ;;  %v3153_v5 = vsub.f32 %v2833_v6, %v6805_v46  ;;  %v3311_v16 = vmul.f32 1.442695, %v3142_v51 }
 0x4d7   : > { %v4671_v43 = vpop.eup %4670  ;;  %v3516_v25 = vmul.f32 %v4669_v32, %v6534_v9  ;;  %3642 = vst [vmem:[%s5127_s8 + $0xe8] sm:$0xff] %v3514_v29  ;;  %4690 = vpow2.f32 %v3297_v45  ;;  %v3154_v53 = vsub.f32 %v2834_v52, %v6805_v46  ;;  %v6823_v45 = vpop.permute.xlu0 %3003  ;;  %v3313_v58 = vmul.f32 1.442695, %v3143_v49  ;;  %v2832_v32 = vld [vmem:[%s5127_s8 + $0x198] sm:$0xff] }
 0x4d8   : > { %v4673_v28 = vpop.eup %4672  ;;  %3643 = vst [vmem:[%s5127_s8 + $0xf0] sm:$0xff] %v3515_v7  ;;  %v3509_v37 = vmul.f32 %v4671_v43, %v6537_v19  ;;  %4692 = vpow2.f32 %v3299_v35  ;;  %v3155_v17 = vsub.f32 %v2835_v42, %v6805_v46  ;;  %v2830_v35 = vld [vmem:[%s5127_s8 + $0x188] sm:$0xff]  ;;  %v3315_v10 = vmul.f32 1.442695, %v3144_v61  ;;  %v2841_v43 = vld [vmem:[%s5127_s8 + $0x1e0] sm:$0xff] }
 0x4d9   : > { %v4675_v20 = vpop.eup %4674  ;;  %3644 = vst [vmem:[%s5127_s8 + $0xf8] sm:$0xff] %v3516_v25  ;;  %v3510_v9 = vmul.f32 %v4673_v28, %v6537_v19  ;;  %4694 = vpow2.f32 %v3317_v40  ;;  %v3156_v29 = vsub.f32 %v2836_v33, %v6805_v46  ;;  %v2831_v40 = vld [vmem:[%s5127_s8 + $0x190] sm:$0xff]  ;;  %v3333_v0 = vmul.f32 1.442695, %v3153_v5  ;;  %v6841_v25 = vpop.permute.xlu1 %3018  ;;  %v2844_v5 = vld [vmem:[%s5127_s8 + $0x1f8] sm:$0xff] }
 0x4da   : > { %v4677_v27 = vpop.eup %4676  ;;  %v3511_v23 = vmul.f32 %v4675_v20, %v6537_v19  ;;  %3637 = vst [vmem:[%s5127_s8 + $0xc0] sm:$0xff] %v3509_v37  ;;  %4696 = vpow2.f32 %v3319_v47  ;;  %v3149_v7 = vsub.f32 %v2829_v21, %v6823_v45  ;;  %v3335_v6 = vmul.f32 1.442695, %v3154_v53  ;;  %v2842_v37 = vld [vmem:[%s5127_s8 + $0x1e8] sm:$0xff] }
 0x4db   : > { %v4679_v18 = vpop.eup %4678  ;;  %v3512_v3 = vmul.f32 %v4677_v27, %v6537_v19  ;;  %3638 = vst [vmem:[%s5127_s8 + $0xc8] sm:$0xff] %v3510_v9  ;;  %4698 = vpow2.f32 %v3321_v11  ;;  %v3150_v46 = vsub.f32 %v2830_v35, %v6823_v45  ;;  %v3337_v52 = vmul.f32 1.442695, %v3155_v17  ;;  %v2843_v9 = vld [vmem:[%s5127_s8 + $0x1f0] sm:$0xff] }
 0x4dc   : > { %v4681_v63 = vpop.eup %4680  ;;  %3639 = vst [vmem:[%s5127_s8 + $0xd0] sm:$0xff] %v3511_v23  ;;  %v3521_v13 = vmul.f32 %v4679_v18, %v6544_v30  ;;  %4700 = vpow2.f32 %v3323_v26  ;;  %v3151_v28 = vsub.f32 %v2831_v40, %v6823_v45  ;;  %v3339_v42 = vmul.f32 1.442695, %v3156_v29  ;;  %v6859_v18 = vpop.permute.xlu0 %3013 }
 0x4dd   : > { %v4683_v1 = vpop.eup %4682  ;;  %3640 = vst [vmem:[%s5127_s8 + $0xd8] sm:$0xff] %v3512_v3  ;;  %v3522_v19 = vmul.f32 %v4681_v63, %v6544_v30  ;;  %4702 = vpow2.f32 %v3309_v56  ;;  %v3152_v20 = vsub.f32 %v2832_v32, %v6823_v45  ;;  %v3325_v33 = vmul.f32 1.442695, %v3149_v7  ;;  %v2837_v45 = vld [vmem:[%s5127_s8 + $0x1c0] sm:$0xff]  ;;  %v2838_v63 = vld [vmem:[%s5127_s8 + $0x1c8] sm:$0xff]  ;;  %v2840_v32 = vld [vmem:[%s5127_s8 + $0x1d8] sm:$0xff] }
 0x4de   : > { %v4685_v47 = vpop.eup %4684  ;;  %v3523_v51 = vmul.f32 %v4683_v1, %v6544_v30  ;;  %3649 = vst [vmem:[%s5127_s8 + $0x120] sm:$0xff] %v3521_v13  ;;  %4704 = vpow2.f32 %v3311_v16  ;;  %v3161_v27 = vsub.f32 %v2841_v43, %v6841_v25  ;;  %v3327_v53 = vmul.f32 1.442695, %v3150_v46  ;;  %v2839_v1 = vld [vmem:[%s5127_s8 + $0x1d0] sm:$0xff]  ;;  %v2849_v43 = vld [vmem:[%s5127_s8 + $0x220] sm:$0xff] }
 0x4df   : > { %v4687_v11 = vpop.eup %4686  ;;  %v3524_v49 = vmul.f32 %v4685_v47, %v6544_v30  ;;  %3650 = vst [vmem:[%s5127_s8 + $0x128] sm:$0xff] %v3522_v19  ;;  %4706 = vpow2.f32 %v3313_v58  ;;  %v3162_v21 = vsub.f32 %v2842_v37, %v6841_v25  ;;  %v3329_v17 = vmul.f32 1.442695, %v3151_v28  ;;  %v2850_v37 = vld [vmem:[%s5127_s8 + $0x228] sm:$0xff] }
 0x4e0   : > { %v4689_v26 = vpop.eup %4688  ;;  %3651 = vst [vmem:[%s5127_s8 + $0x130] sm:$0xff] %v3523_v51  ;;  %v3517_v61 = vmul.f32 %v4687_v11, %v6547_v59  ;;  %4708 = vpow2.f32 %v3315_v10  ;;  %v3163_v35 = vsub.f32 %v2843_v9, %v6841_v25  ;;  %v3331_v29 = vmul.f32 1.442695, %v3152_v20  ;;  %v2851_v9 = vld [vmem:[%s5127_s8 + $0x230] sm:$0xff] }
 0x4e1   : > { %v4691_v56 = vpop.eup %4690  ;;  %3652 = vst [vmem:[%s5127_s8 + $0x138] sm:$0xff] %v3524_v49  ;;  %v3518_v30 = vmul.f32 %v4689_v26, %v6547_v59  ;;  %4710 = vpow2.f32 %v3333_v0  ;;  %v3164_v40 = vsub.f32 %v2844_v5, %v6841_v25  ;;  %v3349_v0 = vmul.f32 1.442695, %v3161_v27  ;;  %v6877_v25 = vpop.permute.xlu1 %3028 }
 0x4e2   : > { %v4693_v23 = vpop.eup %4692  ;;  %v3519_v16 = vmul.f32 %v4691_v56, %v6547_v59  ;;  %3645 = vst [vmem:[%s5127_s8 + $0x100] sm:$0xff] %v3517_v61  ;;  %4712 = vpow2.f32 %v3335_v6  ;;  %v3157_v7 = vsub.f32 %v2837_v45, %v6859_v18  ;;  %v3351_v6 = vmul.f32 1.442695, %v3162_v21  ;;  %v2845_v21 = vld [vmem:[%s5127_s8 + $0x200] sm:$0xff]  ;;  %v6895_v45 = vpop.permute.xlu0 %3023 }
 0x4e3   : > { %v4695_v3 = vpop.eup %4694  ;;  %v3520_v58 = vmul.f32 %v4693_v23, %v6547_v59  ;;  %3646 = vst [vmem:[%s5127_s8 + $0x108] sm:$0xff] %v3518_v30  ;;  %4714 = vpow2.f32 %v3337_v52  ;;  %v3158_v46 = vsub.f32 %v2838_v63, %v6859_v18  ;;  %v3353_v52 = vmul.f32 1.442695, %v3163_v35  ;;  %v2846_v35 = vld [vmem:[%s5127_s8 + $0x208] sm:$0xff] }
 0x4e4   : > { %v4697_v13 = vpop.eup %4696  ;;  %3647 = vst [vmem:[%s5127_s8 + $0x110] sm:$0xff] %v3519_v16  ;;  %v3529_v10 = vmul.f32 %v4695_v3, %v6554_v2  ;;  %4716 = vpow2.f32 %v3339_v42  ;;  %v3159_v28 = vsub.f32 %v2839_v1, %v6859_v18  ;;  %v3355_v42 = vmul.f32 1.442695, %v3164_v40  ;;  %v2847_v40 = vld [vmem:[%s5127_s8 + $0x210] sm:$0xff] }
 0x4e5   : > { %v4699_v19 = vpop.eup %4698  ;;  %3648 = vst [vmem:[%s5127_s8 + $0x118] sm:$0xff] %v3520_v58  ;;  %v3530_v59 = vmul.f32 %v4697_v13, %v6554_v2  ;;  %4718 = vpow2.f32 %v3325_v33  ;;  %v3160_v20 = vsub.f32 %v2840_v32, %v6859_v18  ;;  %v3341_v30 = vmul.f32 1.442695, %v3157_v7  ;;  %v2852_v33 = vld [vmem:[%s5127_s8 + $0x238] sm:$0xff] }
 0x4e6   : > { %v4701_v47 = vpop.eup %4700  ;;  %v3531_v51 = vmul.f32 %v4699_v19, %v6554_v2  ;;  %3657 = vst [vmem:[%s5127_s8 + $0x160] sm:$0xff] %v3529_v10  ;;  %4720 = vpow2.f32 %v3327_v53  ;;  %v3169_v5 = vsub.f32 %v2849_v43, %v6877_v25  ;;  %v3343_v16 = vmul.f32 1.442695, %v3158_v46  ;;  %v6913_v46 = vpop.permute.xlu1 %3038 }
 0x4e7   : > { %v4703_v11 = vpop.eup %4702  ;;  %v3532_v49 = vmul.f32 %v4701_v47, %v6554_v2  ;;  %3658 = vst [vmem:[%s5127_s8 + $0x168] sm:$0xff] %v3530_v59  ;;  %4722 = vpow2.f32 %v3329_v17  ;;  %v3170_v53 = vsub.f32 %v2850_v37, %v6877_v25  ;;  %v3345_v58 = vmul.f32 1.442695, %v3159_v28  ;;  %v2848_v59 = vld [vmem:[%s5127_s8 + $0x218] sm:$0xff] }
 0x4e8   : > { %v4705_v26 = vpop.eup %4704  ;;  %3659 = vst [vmem:[%s5127_s8 + $0x170] sm:$0xff] %v3531_v51  ;;  %v3525_v61 = vmul.f32 %v4703_v11, %v6557_v41  ;;  %4724 = vpow2.f32 %v3331_v29  ;;  %v3171_v17 = vsub.f32 %v2851_v9, %v6877_v25  ;;  %v3347_v10 = vmul.f32 1.442695, %v3160_v20 }
 0x4e9   : > { %v4707_v56 = vpop.eup %4706  ;;  %3660 = vst [vmem:[%s5127_s8 + $0x178] sm:$0xff] %v3532_v49  ;;  %v3526_v2 = vmul.f32 %v4705_v26, %v6557_v41  ;;  %4726 = vpow2.f32 %v3349_v0  ;;  %v3172_v29 = vsub.f32 %v2852_v33, %v6877_v25  ;;  %v3365_v19 = vmul.f32 1.442695, %v3169_v5 }
 0x4ea   : > { %v4709_v27 = vpop.eup %4708  ;;  %v3527_v23 = vmul.f32 %v4707_v56, %v6557_v41  ;;  %3653 = vst [vmem:[%s5127_s8 + $0x140] sm:$0xff] %v3525_v61  ;;  %4728 = vpow2.f32 %v3351_v6  ;;  %v3165_v0 = vsub.f32 %v2845_v21, %v6895_v45  ;;  %v3367_v47 = vmul.f32 1.442695, %v3170_v53  ;;  %v2857_v6 = vld [vmem:[%s5127_s8 + $0x260] sm:$0xff]  ;;  %v2860_v56 = vld [vmem:[%s5127_s8 + $0x278] sm:$0xff] }
 0x4eb   : > { %v4711_v18 = vpop.eup %4710  ;;  %v3528_v3 = vmul.f32 %v4709_v27, %v6557_v41  ;;  %3654 = vst [vmem:[%s5127_s8 + $0x148] sm:$0xff] %v3526_v2  ;;  %4730 = vpow2.f32 %v3353_v52  ;;  %v3166_v51 = vsub.f32 %v2846_v35, %v6895_v45  ;;  %v3369_v11 = vmul.f32 1.442695, %v3171_v17  ;;  %v2858_v52 = vld [vmem:[%s5127_s8 + $0x268] sm:$0xff] }
 0x4ec   : > { %v4713_v63 = vpop.eup %4712  ;;  %3655 = vst [vmem:[%s5127_s8 + $0x150] sm:$0xff] %v3527_v23  ;;  %v3537_v13 = vmul.f32 %v4711_v18, %v6564_v12  ;;  %4732 = vpow2.f32 %v3355_v42  ;;  %v3167_v49 = vsub.f32 %v2847_v40, %v6895_v45  ;;  %v3371_v26 = vmul.f32 1.442695, %v3172_v29  ;;  %v2859_v42 = vld [vmem:[%s5127_s8 + $0x270] sm:$0xff]  ;;  %v2853_v23 = vld [vmem:[%s5127_s8 + $0x240] sm:$0xff]  ;;  %v2856_v40 = vld [vmem:[%s5127_s8 + $0x258] sm:$0xff] }
 0x4ed   : > { %v4715_v1 = vpop.eup %4714  ;;  %3656 = vst [vmem:[%s5127_s8 + $0x158] sm:$0xff] %v3528_v3  ;;  %v3538_v41 = vmul.f32 %v4713_v63, %v6564_v12  ;;  %4734 = vpow2.f32 %v3341_v30  ;;  %v3168_v61 = vsub.f32 %v2848_v59, %v6895_v45  ;;  %v3357_v9 = vmul.f32 1.442695, %v3165_v0  ;;  %v2854_v3 = vld [vmem:[%s5127_s8 + $0x248] sm:$0xff] }
 0x4ee   : > { %v4717_v32 = vpop.eup %4716  ;;  %v3539_v7 = vmul.f32 %v4715_v1, %v6564_v12  ;;  %3665 = vst [vmem:[%s5127_s8 + $0x1a0] sm:$0xff] %v3537_v13  ;;  %4736 = vpow2.f32 %v3343_v16  ;;  %v3177_v2 = vsub.f32 %v2857_v6, %v6913_v46  ;;  %v3359_v5 = vmul.f32 1.442695, %v3166_v51  ;;  %v6931_v16 = vpop.permute.xlu0 %3033  ;;  %v2855_v13 = vld [vmem:[%s5127_s8 + $0x250] sm:$0xff] }
 0x4ef   : > { %v4719_v43 = vpop.eup %4718  ;;  %v3540_v25 = vmul.f32 %v4717_v32, %v6564_v12  ;;  %3666 = vst [vmem:[%s5127_s8 + $0x1a8] sm:$0xff] %v3538_v41  ;;  %4738 = vpow2.f32 %v3345_v58  ;;  %v3178_v27 = vsub.f32 %v2858_v52, %v6913_v46  ;;  %v3361_v45 = vmul.f32 1.442695, %v3167_v49  ;;  %v2865_v32 = vld [vmem:[%s5127_s8 + $0x2a0] sm:$0xff] }
 0x4f0   : > { %v4721_v28 = vpop.eup %4720  ;;  %3667 = vst [vmem:[%s5127_s8 + $0x1b0] sm:$0xff] %v3539_v7  ;;  %v3533_v37 = vmul.f32 %v4719_v43, %v6567_v34  ;;  %4740 = vpow2.f32 %v3347_v10  ;;  %v3179_v18 = vsub.f32 %v2859_v42, %v6913_v46  ;;  %v3363_v35 = vmul.f32 1.442695, %v3168_v61  ;;  %v6949_v7 = vpop.permute.xlu1 %3048  ;;  %v2866_v43 = vld [vmem:[%s5127_s8 + $0x2a8] sm:$0xff]  ;;  %v2868_v61 = vld [vmem:[%s5127_s8 + $0x2b8] sm:$0xff] }
 0x4f1   : > { %v4723_v20 = vpop.eup %4722  ;;  %3668 = vst [vmem:[%s5127_s8 + $0x1b8] sm:$0xff] %v3540_v25  ;;  %v3534_v12 = vmul.f32 %v4721_v28, %v6567_v34  ;;  %4742 = vpow2.f32 %v3365_v19  ;;  %v3180_v63 = vsub.f32 %v2860_v56, %v6913_v46  ;;  %v3381_v29 = vmul.f32 1.442695, %v3177_v2  ;;  %v2867_v28 = vld [vmem:[%s5127_s8 + $0x2b0] sm:$0xff]  ;;  %v2861_v2 = vld [vmem:[%s5127_s8 + $0x280] sm:$0xff] }
 0x4f2   : > { %v4725_v30 = vpop.eup %4724  ;;  %v3535_v33 = vmul.f32 %v4723_v20, %v6567_v34  ;;  %3661 = vst [vmem:[%s5127_s8 + $0x180] sm:$0xff] %v3533_v37  ;;  %4744 = vpow2.f32 %v3367_v47  ;;  %v3173_v1 = vsub.f32 %v2853_v23, %v6931_v16  ;;  %v3383_v59 = vmul.f32 1.442695, %v3178_v27 }
 0x4f3   : > { %v4727_v53 = vpop.eup %4726  ;;  %v3536_v21 = vmul.f32 %v4725_v30, %v6567_v34  ;;  %3662 = vst [vmem:[%s5127_s8 + $0x188] sm:$0xff] %v3534_v12  ;;  %4746 = vpow2.f32 %v3369_v11  ;;  %v3174_v0 = vsub.f32 %v2854_v3, %v6931_v16  ;;  %v3385_v6 = vmul.f32 1.442695, %v3179_v18  ;;  %v6967_v30 = vpop.permute.xlu0 %3043  ;;  %v2863_v3 = vld [vmem:[%s5127_s8 + $0x290] sm:$0xff] }
 0x4f4   : > { %v4729_v58 = vpop.eup %4728  ;;  %3663 = vst [vmem:[%s5127_s8 + $0x190] sm:$0xff] %v3535_v33  ;;  %v3545_v17 = vmul.f32 %v4727_v53, %v6574_v50  ;;  %4748 = vpow2.f32 %v3371_v26  ;;  %v3175_v46 = vsub.f32 %v2855_v13, %v6931_v16  ;;  %v3387_v49 = vmul.f32 1.442695, %v3180_v63 }
 0x4f5   : > { %v4731_v10 = vpop.eup %4730  ;;  %3664 = vst [vmem:[%s5127_s8 + $0x198] sm:$0xff] %v3536_v21  ;;  %v3546_v34 = vmul.f32 %v4729_v58, %v6574_v50  ;;  %4750 = vpow2.f32 %v3357_v9  ;;  %v3176_v52 = vsub.f32 %v2856_v40, %v6931_v16  ;;  %v3373_v26 = vmul.f32 1.442695, %v3173_v1  ;;  %v2862_v16 = vld [vmem:[%s5127_s8 + $0x288] sm:$0xff]  ;;  %v2873_v40 = vld [vmem:[%s5127_s8 + $0x2e0] sm:$0xff]  ;;  %v6985_v1 = vpop.permute.xlu1 %3058 }
 0x4f6   : > { %v4733_v41 = vpop.eup %4732  ;;  %v3547_v19 = vmul.f32 %v4731_v10, %v6574_v50  ;;  %3673 = vst [vmem:[%s5127_s8 + $0x1e0] sm:$0xff] %v3545_v17  ;;  %4752 = vpow2.f32 %v3359_v5  ;;  %v3185_v42 = vsub.f32 %v2865_v32, %v6949_v7  ;;  %v3375_v9 = vmul.f32 1.442695, %v3174_v0  ;;  %v2874_v32 = vld [vmem:[%s5127_s8 + $0x2e8] sm:$0xff] }
 0x4f7   : > { %v4735_v47 = vpop.eup %4734  ;;  %v3548_v51 = vmul.f32 %v4733_v41, %v6574_v50  ;;  %3674 = vst [vmem:[%s5127_s8 + $0x1e8] sm:$0xff] %v3546_v34  ;;  %4754 = vpow2.f32 %v3361_v45  ;;  %v3186_v56 = vsub.f32 %v2866_v43, %v6949_v7  ;;  %v3377_v27 = vmul.f32 1.442695, %v3175_v46  ;;  %v2875_v46 = vld [vmem:[%s5127_s8 + $0x2f0] sm:$0xff] }
 0x4f8   : > { %v4737_v25 = vpop.eup %4736  ;;  %3675 = vst [vmem:[%s5127_s8 + $0x1f0] sm:$0xff] %v3547_v19  ;;  %v3541_v11 = vmul.f32 %v4735_v47, %v6577_v4  ;;  %4756 = vpow2.f32 %v3363_v35  ;;  %v3187_v23 = vsub.f32 %v2867_v28, %v6949_v7  ;;  %v3379_v45 = vmul.f32 1.442695, %v3176_v52  ;;  %v2864_v35 = vld [vmem:[%s5127_s8 + $0x298] sm:$0xff] }
 0x4f9   : > { %v4739_v37 = vpop.eup %4738  ;;  %3676 = vst [vmem:[%s5127_s8 + $0x1f8] sm:$0xff] %v3548_v51  ;;  %v3542_v50 = vmul.f32 %v4737_v25, %v6577_v4  ;;  %4758 = vpow2.f32 %v3381_v29  ;;  %v3188_v18 = vsub.f32 %v2868_v61, %v6949_v7  ;;  %v3397_v17 = vmul.f32 1.442695, %v3185_v42  ;;  %v7003_v61 = vpop.permute.xlu0 %3053 }
 0x4fa   : > { %v4741_v20 = vpop.eup %4740  ;;  %v3543_v12 = vmul.f32 %v4739_v37, %v6577_v4  ;;  %3669 = vst [vmem:[%s5127_s8 + $0x1c0] sm:$0xff] %v3541_v11  ;;  %4760 = vpow2.f32 %v3383_v59  ;;  %v3181_v63 = vsub.f32 %v2861_v2, %v6967_v30  ;;  %v3399_v34 = vmul.f32 1.442695, %v3186_v56  ;;  %v2876_v11 = vld [vmem:[%s5127_s8 + $0x2f8] sm:$0xff]  ;;  %v2870_v56 = vld [vmem:[%s5127_s8 + $0x2c8] sm:$0xff] }
 0x4fb   : > { %v4743_v33 = vpop.eup %4742  ;;  %v3544_v5 = vmul.f32 %v4741_v20, %v6577_v4  ;;  %3670 = vst [vmem:[%s5127_s8 + $0x1c8] sm:$0xff] %v3542_v50  ;;  %4762 = vpow2.f32 %v3385_v6  ;;  %v3182_v29 = vsub.f32 %v2862_v16, %v6967_v30  ;;  %v3401_v59 = vmul.f32 1.442695, %v3187_v23 }
 0x4fc   : > { %v4745_v53 = vpop.eup %4744  ;;  %3671 = vst [vmem:[%s5127_s8 + $0x1d0] sm:$0xff] %v3543_v12  ;;  %v3553_v21 = vmul.f32 %v4743_v33, %v6584_v54  ;;  %4764 = vpow2.f32 %v3387_v49  ;;  %v3183_v0 = vsub.f32 %v2863_v3, %v6967_v30  ;;  %v3403_v51 = vmul.f32 1.442695, %v3188_v18 }
 0x4fd   : > { %v4747_v58 = vpop.eup %4746  ;;  %3672 = vst [vmem:[%s5127_s8 + $0x1d8] sm:$0xff] %v3544_v5  ;;  %v3554_v4 = vmul.f32 %v4745_v53, %v6584_v54  ;;  %4766 = vpow2.f32 %v3373_v26  ;;  %v3184_v6 = vsub.f32 %v2864_v35, %v6967_v30  ;;  %v3389_v25 = vmul.f32 1.442695, %v3181_v63  ;;  %v2869_v26 = vld [vmem:[%s5127_s8 + $0x2c0] sm:$0xff]  ;;  %v2872_v53 = vld [vmem:[%s5127_s8 + $0x2d8] sm:$0xff] }
 0x4fe   : > { %v4749_v13 = vpop.eup %4748  ;;  %v3555_v10 = vmul.f32 %v4747_v58, %v6584_v54  ;;  %3681 = vst [vmem:[%s5127_s8 + $0x220] sm:$0xff] %v3553_v21  ;;  %4768 = vpow2.f32 %v3375_v9  ;;  %v3193_v49 = vsub.f32 %v2873_v40, %v6985_v1  ;;  %v3391_v37 = vmul.f32 1.442695, %v3182_v29 }
 0x4ff   : > { %v4751_v41 = vpop.eup %4750  ;;  %v3556_v19 = vmul.f32 %v4749_v13, %v6584_v54  ;;  %3682 = vst [vmem:[%s5127_s8 + $0x228] sm:$0xff] %v3554_v4  ;;  %4770 = vpow2.f32 %v3377_v27  ;;  %v3194_v50 = vsub.f32 %v2874_v32, %v6985_v1  ;;  %v3393_v12 = vmul.f32 1.442695, %v3183_v0  ;;  %v2871_v27 = vld [vmem:[%s5127_s8 + $0x2d0] sm:$0xff]  ;;  %v2881_v4 = vld [vmem:[%s5127_s8 + $0x320] sm:$0xff]  ;;  %v2884_v32 = vld [vmem:[%s5127_s8 + $0x338] sm:$0xff] }
 0x500   : > { %v4753_v7 = vpop.eup %4752  ;;  %3683 = vst [vmem:[%s5127_s8 + $0x230] sm:$0xff] %v3555_v10  ;;  %v3549_v47 = vmul.f32 %v4751_v41, %v6587_v38  ;;  %4772 = vpow2.f32 %v3379_v45  ;;  %v3195_v9 = vsub.f32 %v2875_v46, %v6985_v1  ;;  %v3395_v33 = vmul.f32 1.442695, %v3184_v6 }
 0x501   : > { %v4755_v43 = vpop.eup %4754  ;;  %3684 = vst [vmem:[%s5127_s8 + $0x238] sm:$0xff] %v3556_v19  ;;  %v3550_v54 = vmul.f32 %v4753_v7, %v6587_v38  ;;  %4774 = vpow2.f32 %v3397_v17  ;;  %v3196_v5 = vsub.f32 %v2876_v11, %v6985_v1  ;;  %v3413_v16 = vmul.f32 1.442695, %v3193_v49  ;;  %v7021_v17 = vpop.permute.xlu1 %3068  ;;  %v2883_v19 = vld [vmem:[%s5127_s8 + $0x330] sm:$0xff] }
 0x502   : > { %v4757_v52 = vpop.eup %4756  ;;  %v3551_v28 = vmul.f32 %v4755_v43, %v6587_v38  ;;  %3677 = vst [vmem:[%s5127_s8 + $0x200] sm:$0xff] %v3549_v47  ;;  %4776 = vpow2.f32 %v3399_v34  ;;  %v3189_v21 = vsub.f32 %v2869_v26, %v7003_v61  ;;  %v3415_v3 = vmul.f32 1.442695, %v3194_v50  ;;  %v2882_v34 = vld [vmem:[%s5127_s8 + $0x328] sm:$0xff]  ;;  %v2877_v43 = vld [vmem:[%s5127_s8 + $0x300] sm:$0xff] }
 0x503   : > { %v4759_v42 = vpop.eup %4758  ;;  %v3552_v20 = vmul.f32 %v4757_v52, %v6587_v38  ;;  %3678 = vst [vmem:[%s5127_s8 + $0x208] sm:$0xff] %v3550_v54  ;;  %4778 = vpow2.f32 %v3401_v59  ;;  %v3190_v58 = vsub.f32 %v2870_v56, %v7003_v61  ;;  %v3417_v13 = vmul.f32 1.442695, %v3195_v9  ;;  %v7039_v54 = vpop.permute.xlu0 %3063  ;;  %v2880_v9 = vld [vmem:[%s5127_s8 + $0x318] sm:$0xff] }
 0x504   : > { %v4761_v2 = vpop.eup %4760  ;;  %3679 = vst [vmem:[%s5127_s8 + $0x210] sm:$0xff] %v3551_v28  ;;  %v3561_v30 = vmul.f32 %v4759_v42, %v6594_v31  ;;  %4780 = vpow2.f32 %v3403_v51  ;;  %v3191_v10 = vsub.f32 %v2871_v27, %v7003_v61  ;;  %v3419_v1 = vmul.f32 1.442695, %v3196_v5  ;;  %v2878_v28 = vld [vmem:[%s5127_s8 + $0x308] sm:$0xff]  ;;  %v2879_v42 = vld [vmem:[%s5127_s8 + $0x310] sm:$0xff]  ;;  %v2889_v27 = vld [vmem:[%s5127_s8 + $0x360] sm:$0xff] }
 0x505   : > { %v4763_v23 = vpop.eup %4762  ;;  %3680 = vst [vmem:[%s5127_s8 + $0x218] sm:$0xff] %v3552_v20  ;;  %v3562_v38 = vmul.f32 %v4761_v2, %v6594_v31  ;;  %4782 = vpow2.f32 %v3389_v25  ;;  %v3192_v41 = vsub.f32 %v2872_v53, %v7003_v61  ;;  %v3405_v0 = vmul.f32 1.442695, %v3189_v21 }
 0x506   : > { %v4765_v45 = vpop.eup %4764  ;;  %v3563_v18 = vmul.f32 %v4763_v23, %v6594_v31  ;;  %3689 = vst [vmem:[%s5127_s8 + $0x260] sm:$0xff] %v3561_v30  ;;  %4784 = vpow2.f32 %v3391_v37  ;;  %v3201_v7 = vsub.f32 %v2881_v4, %v7021_v17  ;;  %v3407_v6 = vmul.f32 1.442695, %v3190_v58  ;;  %v7057_v23 = vpop.permute.xlu1 %3078 }
 0x507   : > { %v4767_v35 = vpop.eup %4766  ;;  %v3564_v63 = vmul.f32 %v4765_v45, %v6594_v31  ;;  %3690 = vst [vmem:[%s5127_s8 + $0x268] sm:$0xff] %v3562_v38  ;;  %4786 = vpow2.f32 %v3393_v12  ;;  %v3202_v46 = vsub.f32 %v2882_v34, %v7021_v17  ;;  %v3409_v49 = vmul.f32 1.442695, %v3191_v10  ;;  %v2890_v45 = vld [vmem:[%s5127_s8 + $0x368] sm:$0xff] }
 0x508   : > { %v4769_v29 = vpop.eup %4768  ;;  %3691 = vst [vmem:[%s5127_s8 + $0x270] sm:$0xff] %v3563_v18  ;;  %v3557_v40 = vmul.f32 %v4767_v35, %v6597_v8  ;;  %4788 = vpow2.f32 %v3395_v33  ;;  %v3203_v52 = vsub.f32 %v2883_v19, %v7021_v17  ;;  %v3411_v26 = vmul.f32 1.442695, %v3192_v41  ;;  %v2885_v41 = vld [vmem:[%s5127_s8 + $0x340] sm:$0xff]  ;;  %v7075_v19 = vpop.permute.xlu0 %3073 }
 0x509   : > { %v4771_v59 = vpop.eup %4770  ;;  %3692 = vst [vmem:[%s5127_s8 + $0x278] sm:$0xff] %v3564_v63  ;;  %v3558_v31 = vmul.f32 %v4769_v29, %v6597_v8  ;;  %4790 = vpow2.f32 %v3413_v16  ;;  %v3204_v61 = vsub.f32 %v2884_v32, %v7021_v17  ;;  %v3429_v12 = vmul.f32 1.442695, %v3201_v7  ;;  %v2891_v17 = vld [vmem:[%s5127_s8 + $0x370] sm:$0xff]  ;;  %v2886_v7 = vld [vmem:[%s5127_s8 + $0x348] sm:$0xff] }
 0x50a   : > { %v4773_v47 = vpop.eup %4772  ;;  %v3559_v51 = vmul.f32 %v4771_v59, %v6597_v8  ;;  %3685 = vst [vmem:[%s5127_s8 + $0x240] sm:$0xff] %v3557_v40  ;;  %4792 = vpow2.f32 %v3415_v3  ;;  %v3197_v56 = vsub.f32 %v2877_v43, %v7039_v54  ;;  %v3431_v33 = vmul.f32 1.442695, %v3202_v46  ;;  %v2887_v43 = vld [vmem:[%s5127_s8 + $0x350] sm:$0xff] }
 0x50b   : > { %v4775_v25 = vpop.eup %4774  ;;  %v3560_v11 = vmul.f32 %v4773_v47, %v6597_v8  ;;  %3686 = vst [vmem:[%s5127_s8 + $0x248] sm:$0xff] %v3558_v31  ;;  %4794 = vpow2.f32 %v3417_v13  ;;  %v3198_v5 = vsub.f32 %v2878_v28, %v7039_v54  ;;  %v3433_v53 = vmul.f32 1.442695, %v3203_v52  ;;  %v2892_v13 = vld [vmem:[%s5127_s8 + $0x378] sm:$0xff] }
 0x50c   : > { %v4777_v37 = vpop.eup %4776  ;;  %3687 = vst [vmem:[%s5127_s8 + $0x250] sm:$0xff] %v3559_v51  ;;  %v3569_v50 = vmul.f32 %v4775_v25, %v6604_v48  ;;  %4796 = vpow2.f32 %v3419_v1  ;;  %v3199_v21 = vsub.f32 %v2879_v42, %v7039_v54  ;;  %v3435_v58 = vmul.f32 1.442695, %v3204_v61  ;;  %v7093_v61 = vpop.permute.xlu1 %3088 }
 0x50d   : > { %v4779_v20 = vpop.eup %4778  ;;  %3688 = vst [vmem:[%s5127_s8 + $0x258] sm:$0xff] %v3560_v11  ;;  %v3570_v8 = vmul.f32 %v4777_v37, %v6604_v48  ;;  %4798 = vpow2.f32 %v3405_v0  ;;  %v3200_v4 = vsub.f32 %v2880_v9, %v7039_v54  ;;  %v3421_v63 = vmul.f32 1.442695, %v3197_v56  ;;  %v2888_v11 = vld [vmem:[%s5127_s8 + $0x358] sm:$0xff]  ;;  %v2898_v9 = vld [vmem:[%s5127_s8 + $0x3a8] sm:$0xff] }
 0x50e   : > { %v4781_v2 = vpop.eup %4780  ;;  %v3571_v30 = vmul.f32 %v4779_v20, %v6604_v48  ;;  %3697 = vst [vmem:[%s5127_s8 + $0x2a0] sm:$0xff] %v3569_v50  ;;  %4800 = vpow2.f32 %v3407_v6  ;;  %v3209_v10 = vsub.f32 %v2889_v27, %v7057_v23  ;;  %v3423_v40 = vmul.f32 1.442695, %v3198_v5  ;;  %v2899_v5 = vld [vmem:[%s5127_s8 + $0x3b0] sm:$0xff] }
 0x50f   : > { %v4783_v38 = vpop.eup %4782  ;;  %v3572_v16 = vmul.f32 %v4781_v2, %v6604_v48  ;;  %3698 = vst [vmem:[%s5127_s8 + $0x2a8] sm:$0xff] %v3570_v8  ;;  %4802 = vpow2.f32 %v3409_v49  ;;  %v3210_v1 = vsub.f32 %v2890_v45, %v7057_v23  ;;  %v3425_v0 = vmul.f32 1.442695, %v3199_v21 }
 0x510   : > { %v4785_v18 = vpop.eup %4784  ;;  %3699 = vst [vmem:[%s5127_s8 + $0x2b0] sm:$0xff] %v3571_v30  ;;  %v3565_v3 = vmul.f32 %v4783_v38, %v6607_v39  ;;  %4804 = vpow2.f32 %v3411_v26  ;;  %v3211_v32 = vsub.f32 %v2891_v17, %v7057_v23  ;;  %v3427_v6 = vmul.f32 1.442695, %v3200_v4  ;;  %v2897_v26 = vld [vmem:[%s5127_s8 + $0x3a0] sm:$0xff]  ;;  %v2900_v38 = vld [vmem:[%s5127_s8 + $0x3b8] sm:$0xff] }
 0x511   : > { %v4787_v35 = vpop.eup %4786  ;;  %3700 = vst [vmem:[%s5127_s8 + $0x2b8] sm:$0xff] %v3572_v16  ;;  %v3566_v48 = vmul.f32 %v4785_v18, %v6607_v39  ;;  %4806 = vpow2.f32 %v3429_v12  ;;  %v3212_v46 = vsub.f32 %v2892_v13, %v7057_v23  ;;  %v3445_v25 = vmul.f32 1.442695, %v3209_v10 }
 0x512   : > { %v4789_v34 = vpop.eup %4788  ;;  %v3567_v29 = vmul.f32 %v4787_v35, %v6607_v39  ;;  %3693 = vst [vmem:[%s5127_s8 + $0x280] sm:$0xff] %v3565_v3  ;;  %4808 = vpow2.f32 %v3431_v33  ;;  %v3205_v49 = vsub.f32 %v2885_v41, %v7075_v19  ;;  %v3447_v37 = vmul.f32 1.442695, %v3210_v1  ;;  %v2893_v3 = vld [vmem:[%s5127_s8 + $0x380] sm:$0xff] }
 0x513   : > { %v4791_v59 = vpop.eup %4790  ;;  %v3568_v31 = vmul.f32 %v4789_v34, %v6607_v39  ;;  %3694 = vst [vmem:[%s5127_s8 + $0x288] sm:$0xff] %v3566_v48  ;;  %4810 = vpow2.f32 %v3433_v53  ;;  %v3206_v50 = vsub.f32 %v2886_v7, %v7075_v19  ;;  %v3449_v8 = vmul.f32 1.442695, %v3211_v32 }
 0x514   : > { %v4793_v47 = vpop.eup %4792  ;;  %3695 = vst [vmem:[%s5127_s8 + $0x290] sm:$0xff] %v3567_v29  ;;  %v3577_v51 = vmul.f32 %v4791_v59, %v6614_v60  ;;  %4812 = vpow2.f32 %v3435_v58  ;;  %v3207_v12 = vsub.f32 %v2887_v43, %v7075_v19  ;;  %v3451_v30 = vmul.f32 1.442695, %v3212_v46  ;;  %v7111_v58 = vpop.permute.xlu0 %3083 }
 0x515   : > { %v4795_v54 = vpop.eup %4794  ;;  %3696 = vst [vmem:[%s5127_s8 + $0x298] sm:$0xff] %v3568_v31  ;;  %v3578_v39 = vmul.f32 %v4793_v47, %v6614_v60  ;;  %4814 = vpow2.f32 %v3421_v63  ;;  %v3208_v33 = vsub.f32 %v2888_v11, %v7075_v19  ;;  %v3437_v23 = vmul.f32 1.442695, %v3205_v49  ;;  %v2894_v63 = vld [vmem:[%s5127_s8 + $0x388] sm:$0xff]  ;;  %v2896_v19 = vld [vmem:[%s5127_s8 + $0x398] sm:$0xff]  ;;  %v2905_v47 = vld [vmem:[%s5127_s8 + $0x3e0] sm:$0xff] }
 0x516   : > { %v4797_v52 = vpop.eup %4796  ;;  %v3579_v28 = vmul.f32 %v4795_v54, %v6614_v60  ;;  %3705 = vst [vmem:[%s5127_s8 + $0x2e0] sm:$0xff] %v3577_v51  ;;  %4816 = vpow2.f32 %v3423_v40  ;;  %v3217_v16 = vsub.f32 %v2897_v26, %v7093_v61  ;;  %v3439_v45 = vmul.f32 1.442695, %v3206_v50  ;;  %v2895_v40 = vld [vmem:[%s5127_s8 + $0x390] sm:$0xff]  ;;  %v7129_v51 = vpop.permute.xlu1 %3098  ;;  %v2908_v26 = vld [vmem:[%s5127_s8 + $0x3f8] sm:$0xff] }
 0x517   : > { %v4799_v42 = vpop.eup %4798  ;;  %v3580_v20 = vmul.f32 %v4797_v52, %v6614_v60  ;;  %3706 = vst [vmem:[%s5127_s8 + $0x2e8] sm:$0xff] %v3578_v39  ;;  %4818 = vpow2.f32 %v3425_v0  ;;  %v3218_v18 = vsub.f32 %v2898_v9, %v7093_v61  ;;  %v3441_v35 = vmul.f32 1.442695, %v3207_v12  ;;  %v2906_v39 = vld [vmem:[%s5127_s8 + $0x3e8] sm:$0xff]  ;;  %v2901_v9 = vld [vmem:[%s5127_s8 + $0x3c0] sm:$0xff] }
 0x518   : > { %v4801_v56 = vpop.eup %4800  ;;  %3707 = vst [vmem:[%s5127_s8 + $0x2f0] sm:$0xff] %v3579_v28  ;;  %v3573_v2 = vmul.f32 %v4799_v42, %v6617_v22  ;;  %4820 = vpow2.f32 %v3427_v6  ;;  %v3219_v48 = vsub.f32 %v2899_v5, %v7093_v61  ;;  %v3443_v34 = vmul.f32 1.442695, %v3208_v33  ;;  %v2907_v28 = vld [vmem:[%s5127_s8 + $0x3f0] sm:$0xff] }
 0x519   : > { %v4803_v27 = vpop.eup %4802  ;;  %3708 = vst [vmem:[%s5127_s8 + $0x2f8] sm:$0xff] %v3580_v20  ;;  %v3574_v60 = vmul.f32 %v4801_v56, %v6617_v22  ;;  %4822 = vpow2.f32 %v3445_v25  ;;  %v3220_v29 = vsub.f32 %v2900_v38, %v7093_v61  ;;  %v3461_v41 = vmul.f32 1.442695, %v3217_v16  ;;  %v3094_v56 = vpop.permute.xlu0 %3093 }
 0x51a   : > { %v4805_v53 = vpop.eup %4804  ;;  %v3575_v21 = vmul.f32 %v4803_v27, %v6617_v22  ;;  %3701 = vst [vmem:[%s5127_s8 + $0x2c0] sm:$0xff] %v3573_v2  ;;  %4824 = vpow2.f32 %v3447_v37  ;;  %v3213_v59 = vsub.f32 %v2893_v3, %v7111_v58  ;;  %v3463_v32 = vmul.f32 1.442695, %v3218_v18  ;;  %v2902_v27 = vld [vmem:[%s5127_s8 + $0x3c8] sm:$0xff]  ;;  %v2904_v18 = vld [vmem:[%s5127_s8 + $0x3d8] sm:$0xff] }
 0x51b   : > { %v4807_v4 = vpop.eup %4806  ;;  %v3576_v17 = vmul.f32 %v4805_v53, %v6617_v22  ;;  %3702 = vst [vmem:[%s5127_s8 + $0x2c8] sm:$0xff] %v3574_v60  ;;  %4826 = vpow2.f32 %v3449_v8  ;;  %v3214_v7 = vsub.f32 %v2894_v63, %v7111_v58  ;;  %v3465_v43 = vmul.f32 1.442695, %v3219_v48  ;;  %v2903_v53 = vld [vmem:[%s5127_s8 + $0x3d0] sm:$0xff] }
 0x51c   : > { %v4809_v13 = vpop.eup %4808  ;;  %3703 = vst [vmem:[%s5127_s8 + $0x2d0] sm:$0xff] %v3575_v21  ;;  %v3585_v10 = vmul.f32 %v4807_v4, %v6624_v24  ;;  %4828 = vpow2.f32 %v3451_v30  ;;  %v3215_v54 = vsub.f32 %v2895_v40, %v7111_v58  ;;  %v3467_v49 = vmul.f32 1.442695, %v3220_v29 }
 0x51d   : > { %v4811_v1 = vpop.eup %4810  ;;  %3704 = vst [vmem:[%s5127_s8 + $0x2d8] sm:$0xff] %v3576_v17  ;;  %v3586_v22 = vmul.f32 %v4809_v13, %v6624_v24  ;;  %4830 = vpow2.f32 %v3437_v23  ;;  %v3216_v52 = vsub.f32 %v2896_v19, %v7111_v58  ;;  %v3453_v50 = vmul.f32 1.442695, %v3213_v59 }
 0x51e   : > { %v4813_v31 = vpop.eup %4812  ;;  %v3587_v0 = vmul.f32 %v4811_v1, %v6624_v24  ;;  %3713 = vst [vmem:[%s5127_s8 + $0x320] sm:$0xff] %v3585_v10  ;;  %4832 = vpow2.f32 %v3439_v45  ;;  %v3225_v61 = vsub.f32 %v2905_v47, %v7129_v51  ;;  %v3455_v8 = vmul.f32 1.442695, %v3214_v7 }
 0x51f   : > { %v4815_v6 = vpop.eup %4814  ;;  %v3588_v46 = vmul.f32 %v4813_v31, %v6624_v24  ;;  %3714 = vst [vmem:[%s5127_s8 + $0x328] sm:$0xff] %v3586_v22  ;;  %4834 = vpow2.f32 %v3441_v35  ;;  %v3226_v12 = vsub.f32 %v2906_v39, %v7129_v51  ;;  %v3457_v33 = vmul.f32 1.442695, %v3215_v54 }
 0x520   : > { %v4817_v25 = vpop.eup %4816  ;;  %3715 = vst [vmem:[%s5127_s8 + $0x330] sm:$0xff] %v3587_v0  ;;  %v3581_v11 = vmul.f32 %v4815_v6, %v6627_v55  ;;  %4836 = vpow2.f32 %v3443_v34  ;;  %v3227_v5 = vsub.f32 %v2907_v28, %v7129_v51  ;;  %v3459_v38 = vmul.f32 1.442695, %v3216_v52 }
 0x521   : > { %v4819_v37 = vpop.eup %4818  ;;  %3716 = vst [vmem:[%s5127_s8 + $0x338] sm:$0xff] %v3588_v46  ;;  %v3582_v24 = vmul.f32 %v4817_v25, %v6627_v55  ;;  %4838 = vpow2.f32 %v3461_v41  ;;  %v3228_v16 = vsub.f32 %v2908_v26, %v7129_v51  ;;  %v3477_v45 = vmul.f32 1.442695, %v3225_v61 }
 0x522   : > { %v4821_v42 = vpop.eup %4820  ;;  %v3583_v20 = vmul.f32 %v4819_v37, %v6627_v55  ;;  %3709 = vst [vmem:[%s5127_s8 + $0x300] sm:$0xff] %v3581_v11  ;;  %4840 = vpow2.f32 %v3463_v32  ;;  %v3221_v3 = vsub.f32 %v2901_v9, %v3094_v56  ;;  %v3479_v17 = vmul.f32 1.442695, %v3226_v12 }
 0x523   : > { %v4823_v2 = vpop.eup %4822  ;;  %v3584_v30 = vmul.f32 %v4821_v42, %v6627_v55  ;;  %3710 = vst [vmem:[%s5127_s8 + $0x308] sm:$0xff] %v3582_v24  ;;  %4842 = vpow2.f32 %v3465_v43  ;;  %v3222_v35 = vsub.f32 %v2902_v27, %v3094_v56  ;;  %v3481_v13 = vmul.f32 1.442695, %v3227_v5 }
 0x524   : > { %v4825_v60 = vpop.eup %4824  ;;  %3711 = vst [vmem:[%s5127_s8 + $0x310] sm:$0xff] %v3583_v20  ;;  %v3593_v23 = vmul.f32 %v4823_v2, %v6634_v36  ;;  %4844 = vpow2.f32 %v3467_v49  ;;  %v3223_v10 = vsub.f32 %v2903_v53, %v3094_v56  ;;  %v3483_v40 = vmul.f32 1.442695, %v3228_v16 }
 0x525   : > { %v4827_v21 = vpop.eup %4826  ;;  %3712 = vst [vmem:[%s5127_s8 + $0x318] sm:$0xff] %v3584_v30  ;;  %v3594_v55 = vmul.f32 %v4825_v60, %v6634_v36  ;;  %4846 = vpow2.f32 %v3453_v50  ;;  %v3224_v1 = vsub.f32 %v2904_v18, %v3094_v56  ;;  %v3471_v31 = vmul.f32 1.442695, %v3222_v35 }
 0x526   : > { %v4829_v58 = vpop.eup %4828  ;;  %v3595_v4 = vmul.f32 %v4827_v21, %v6634_v36  ;;  %3721 = vst [vmem:[%s5127_s8 + $0x360] sm:$0xff] %v3593_v23  ;;  %4848 = vpow2.f32 %v3455_v8  ;;  %v3473_v7 = vmul.f32 1.442695, %v3223_v10 }
 0x527   : > { %v4831_v48 = vpop.eup %4830  ;;  %v3596_v63 = vmul.f32 %v4829_v58, %v6634_v36  ;;  %3722 = vst [vmem:[%s5127_s8 + $0x368] sm:$0xff] %v3594_v55  ;;  %4850 = vpow2.f32 %v3457_v33  ;;  %v3469_v36 = vmul.f32 1.442695, %v3221_v3  ;;  %v3475_v6 = vmul.f32 1.442695, %v3224_v1 }
 0x528   : > { %v4833_v34 = vpop.eup %4832  ;;  %3723 = vst [vmem:[%s5127_s8 + $0x370] sm:$0xff] %v3595_v4  ;;  %v3589_v29 = vmul.f32 %v4831_v48, %v6637_v44  ;;  %4852 = vpow2.f32 %v3459_v38 }
 0x529   : > { %v4835_v22 = vpop.eup %4834  ;;  %3724 = vst [vmem:[%s5127_s8 + $0x378] sm:$0xff] %v3596_v63  ;;  %v3590_v41 = vmul.f32 %v4833_v34, %v6637_v44  ;;  %4854 = vpow2.f32 %v3477_v45 }
 0x52a   : > { %v4837_v19 = vpop.eup %4836  ;;  %v3591_v59 = vmul.f32 %v4835_v22, %v6637_v44  ;;  %3717 = vst [vmem:[%s5127_s8 + $0x340] sm:$0xff] %v3589_v29  ;;  %4856 = vpow2.f32 %v3479_v17 }
 0x52b   : > { %v4839_v0 = vpop.eup %4838  ;;  %v3592_v32 = vmul.f32 %v4837_v19, %v6637_v44  ;;  %3718 = vst [vmem:[%s5127_s8 + $0x348] sm:$0xff] %v3590_v41  ;;  %4858 = vpow2.f32 %v3481_v13 }
 0x52c   : > { %v4841_v47 = vpop.eup %4840  ;;  %3719 = vst [vmem:[%s5127_s8 + $0x350] sm:$0xff] %v3591_v59  ;;  %v3601_v51 = vmul.f32 %v4839_v0, %v6644_v14  ;;  %4860 = vpow2.f32 %v3483_v40 }
 0x52d   : > { %v4843_v46 = vpop.eup %4842  ;;  %3720 = vst [vmem:[%s5127_s8 + $0x358] sm:$0xff] %v3592_v32  ;;  %v3602_v43 = vmul.f32 %v4841_v47, %v6644_v14  ;;  %4862 = vpow2.f32 %v3469_v36 }
 0x52e   : > { %v4845_v54 = vpop.eup %4844  ;;  %v3603_v44 = vmul.f32 %v4843_v46, %v6644_v14  ;;  %3729 = vst [vmem:[%s5127_s8 + $0x3a0] sm:$0xff] %v3601_v51  ;;  %4864 = vpow2.f32 %v3471_v31 }
 0x52f   : > { %v4847_v39 = vpop.eup %4846  ;;  %v3604_v25 = vmul.f32 %v4845_v54, %v6644_v14  ;;  %3730 = vst [vmem:[%s5127_s8 + $0x3a8] sm:$0xff] %v3602_v43  ;;  %4866 = vpow2.f32 %v3473_v7 }
 0x530   : > { %v4849_v11 = vpop.eup %4848  ;;  %3731 = vst [vmem:[%s5127_s8 + $0x3b0] sm:$0xff] %v3603_v44  ;;  %v3597_v49 = vmul.f32 %v4847_v39, %v6647_v62  ;;  %4868 = vpow2.f32 %v3475_v6 }
 0x531   : > { %v4851_v52 = vpop.eup %4850  ;;  %3732 = vst [vmem:[%s5127_s8 + $0x3b8] sm:$0xff] %v3604_v25  ;;  %v3598_v28 = vmul.f32 %v4849_v11, %v6647_v62 }
 0x532   : > { %v4853_v37 = vpop.eup %4852  ;;  %v3599_v24 = vmul.f32 %v4851_v52, %v6647_v62  ;;  %3725 = vst [vmem:[%s5127_s8 + $0x380] sm:$0xff] %v3597_v49 }
 0x533   : > { %v4855_v14 = vpop.eup %4854  ;;  %v3600_v50 = vmul.f32 %v4853_v37, %v6647_v62  ;;  %3726 = vst [vmem:[%s5127_s8 + $0x388] sm:$0xff] %v3598_v28 }
 0x534   : > { %v4857_v26 = vpop.eup %4856  ;;  %3727 = vst [vmem:[%s5127_s8 + $0x390] sm:$0xff] %v3599_v24  ;;  %v3609_v61 = vmul.f32 %v4855_v14, %v6654_v15 }
 0x535   : > { %v4859_v42 = vpop.eup %4858  ;;  %3728 = vst [vmem:[%s5127_s8 + $0x398] sm:$0xff] %v3600_v50  ;;  %v3610_v20 = vmul.f32 %v4857_v26, %v6654_v15 }
 0x536   : > { %v4861_v8 = vpop.eup %4860  ;;  %v3611_v12 = vmul.f32 %v4859_v42, %v6654_v15  ;;  %3737 = vst [vmem:[%s5127_s8 + $0x3e0] sm:$0xff] %v3609_v61 }
 0x537   : > { %v4863_v9 = vpop.eup %4862  ;;  %v3612_v62 = vmul.f32 %v4861_v8, %v6654_v15  ;;  %3738 = vst [vmem:[%s5127_s8 + $0x3e8] sm:$0xff] %v3610_v20 }
 0x538   : > { %v4865_v56 = vpop.eup %4864  ;;  %3739 = vst [vmem:[%s5127_s8 + $0x3f0] sm:$0xff] %v3611_v12  ;;  %v3605_v2 = vmul.f32 %v4863_v9, %v6657_v57 }
 0x539   : > { %v4867_v30 = vpop.eup %4866  ;;  %3740 = vst [vmem:[%s5127_s8 + $0x3f8] sm:$0xff] %v3612_v62  ;;  %v3606_v33 = vmul.f32 %v4865_v56, %v6657_v57 }
 0x53a   : > { %v4869_v5 = vpop.eup %4868  ;;  %v3607_v27 = vmul.f32 %v4867_v30, %v6657_v57  ;;  %3733 = vst [vmem:[%s5127_s8 + $0x3c0] sm:$0xff] %v3605_v2 }
 0x53b   : > { %v3608_v60 = vmul.f32 %v4869_v5, %v6657_v57  ;;  %3734 = vst [vmem:[%s5127_s8 + $0x3c8] sm:$0xff] %v3606_v33 }
 0x53c   : > { %3735 = vst [vmem:[%s5127_s8 + $0x3d0] sm:$0xff] %v3607_v27 }
 0x53d   : > { %3736 = vst [vmem:[%s5127_s8 + $0x3d8] sm:$0xff] %v3608_v60 }
 0x53e PF: > { %s4027_s17 = sshll.u32 %s4960_s19, 7  ;;  %s4023_s18 = sshll.u32 %s4964_s20, 8 }
 0x53f   : > { %s3771_s23 = sshll.u32 %s5127_s8, 4  ;;  %s3768_s29 = sadd.s32 %s4027_s17, %s4023_s18  ;;  %s7207_s23 = int_to_ptr.vmem [resolvable:$true] %s3771_s23 }
 0x540   : > { %s4024_s10 = sshll.u32 %s3768_s29, 7  ;;  %s7456_s26 = sand.u32 1, %s4948_s16  }
 0x541   : > { %s7212_s25 = scalar_lea.hbm %s7278_s4, %s4024_s10  ;;  %s7216_s7 = scalar_lea.sflag [#allocation6], %s7456_s26 }
 0x542   : > { %s4870_s9 = scalar_lea.vmem %s7207_s23, 16384  ;;  %s4987_s19 = smov [#allocation5]  }
 0x543   : > { %p4871_p4 = scmp.ne.s32.totalorder %s7207_s23, %s4870_s9  ;;  %s4874_s20 = sshll.u32 %s4987_s19, 4  ;;  %s4875_s20 = int_to_ptr.vmem [resolvable:$false] %s4874_s20 }
 0x544   : > { %s4876_s14 = scalar_lea.vmem %s4875_s20, 32768  ;;  %p4877_p9 = scmp.lt.s32.totalorder %s7207_s23, %s4875_s20 }
 0x545   : > { %p4872_p5 = pnand %p4871_p4, %p5077_p6  ;;  %p4878_p10 = scmp.lt.s32.totalorder %s4876_s14, %s4870_s9 }
 0x547   : > { %p4873_p8 = pneg %p4872_p5  ;;  %p4879_p11 = por %p4878_p10, %p4877_p9 }
 0x549   : > { %p4880_p12 = pnand %p4879_p11, %p4873_p8 }
 0x54b   : > { %4883 = shalt.err (!%p4880_p12)
}
 0x54c   : > { %s4884_s12 = scalar_lea.hbm %s7212_s25, 16384  ;;  %s4888_s21 = scalar_lea.hbm %s7278_s4, 262144 }
 0x54d   : > { %p4885_p13 = scmp.ne.s32.totalorder %s7212_s25, %s4884_s12  ;;  %p4889_p2 = scmp.lt.u32.totalorder %s7212_s25, %s7278_s4 }
 0x54e   : > { %p4890_p3 = scmp.lt.u32.totalorder %s4888_s21, %s4884_s12  ;;  %p4892_p5 = scmp.lt.u32.totalorder %s4884_s12, %s7212_s25 }
 0x54f   : > { %p4886_p0 = pnand %p4885_p13, %p5077_p6 }
 0x550   : > { %p4891_p4 = por %p4890_p3, %p4889_p2 }
 0x551   : > { %p4887_p1 = pneg %p4886_p0 }
 0x552   : > { %p4893_p8 = por %p4892_p5, %p4891_p4 }
 0x554   : > { %p4894_p9 = pnand %p4893_p8, %p4887_p1 }
 0x556   : > { %4897 = shalt.err (!%p4894_p9)
}
 0x557   : > { %s4988_s28 = smov 512   ;;  %s4989_s17 = smov 32  }
 0x558   : > { %4220 = dma.vmem_to_hbm [thread:$0]  (%p5077_p6), %s7207_s23, 16384, %s7212_s25, %s7216_s7, %s4988_s28, %s4988_s28, %s4989_s17  }
 0x559 PF: > { %p4226_p10 = scmp.ge.s32.totalorder %s4980_s24, 2  ;;  %s3798_s18 = sand.u32 1, %s4944_s15  }
 0x55a   : > { %s3799_s29 = scalar_lea.sflag [#allocation6], %s3798_s18 }
 0x55b   : > { %p4223_p11 = pnand %p4226_p10, %p5084_p7 }
 0x55d   : > { %4939 = dma.done.wait (!%p4223_p11), %s3799_s29, 16384  }
 0x55e   : > { %4941 = vsyncadd (!%p4223_p11), %s3799_s29, 4294950912  ;;  %s18_s24 = sadd.s32 1, %s4980_s24   ;;  %s7457_s10 = sld [smem:[#allocation8_spill]] }
 0x55f   : > { %p15_p12 = scmp.ge.s32.totalorder %s18_s24, 34   ;;  %s7458_s17 = sld [smem:[#allocation15_spill]] }
 0x560   : > { %s7459_s18 = sld [smem:[#allocation9_spill]]  ;;  %s7460_s19 = sld [smem:[#allocation10_spill]] }
 0x561   : > { %s7461_s20 = sld [smem:[#allocation11_spill]]  ;;  %s7462_s21 = sld [smem:[#allocation12_spill]] }
 0x562   : > { %s7463_s22 = sld [smem:[#allocation13_spill]]  ;;  %s7464_s23 = sld [smem:[#allocation14_spill]] }
 0x563   : > { %s7465_s15 = smov %s4948_s16  ;;  %17 = sbr.rel (!%p15_p12) target bundleno = 6 (0x6), region = 94 }
 0x564   : > { %s7466_s16 = smov %s7457_s10 }
 0x56a   :  { %3804 = vsyncpa [#allocation6], 1 }
 0x56b   :  { %3806 = vsyncpa [#allocation6 + $0x1], 1 }

</bundles_post_ra>
